<compile_context>
chip_gen: v6e
topology: v6e:2x2x1
jax: 0.10.0
libtpu: 0.0.40
codegen_flags: <defaults>
</compile_context>

<pallas_src>
import functools
import math

import jax
import jax.numpy as jnp
from jax import lax
from jax.experimental import pallas as pl
from jax.experimental.pallas import tpu as pltpu

LN_EPS = 1e-5
BN_EPS = 1e-5

# Large per-layer matmul weights (bf16), streamed with l-indexed BlockSpecs.
MAT_ORDER = ("ff1_w1a", "ff1_w1g", "ff1_w2",
             "attn_wqkv", "attn_wo",
             "conv_pw1_wa", "conv_pw1_wg", "conv_pw2_w",
             "ff2_w1a", "ff2_w1g", "ff2_w2")

# Head parameters, resident for the whole call (constant index_map).
HEAD_ORDER = ("pol_w1", "pol_b1", "pol_w2", "pol_b2",
              "val_w1", "val_b1", "val_w2", "val_b2")


def _round_up(x, m):
    return ((x + m - 1) // m) * m


def _small_vec_layout(D, i_ff, i_cv, K):
    """Row layout of the single packed per-layer small-parameter array."""
    names = [
        ("ff1_ln_g", D), ("ff1_ln_b", D),
        ("ff1_b1a", i_ff), ("ff1_b1g", i_ff), ("ff1_b2", D),
        ("attn_ln_g", D), ("attn_ln_b", D), ("attn_bo", D),
        ("conv_ln_g", D), ("conv_ln_b", D),
        ("conv_pw1_ba", i_cv), ("conv_pw1_bg", i_cv), ("conv_dw_b", i_cv),
        ("conv_bn_g", i_cv), ("conv_bn_b", i_cv),
        ("conv_bn_rm", i_cv), ("conv_bn_rv", i_cv),
        ("conv_pw2_b", D),
        ("ff2_ln_g", D), ("ff2_ln_b", D),
        ("ff2_b1a", i_ff), ("ff2_b1g", i_ff), ("ff2_b2", D),
        ("final_ln_g", D), ("final_ln_b", D),
    ]
    rows = {n: (i, w) for i, (n, w) in enumerate(names)}
    dw_row0 = len(names)                 # depthwise-conv taps appended, one row/tap
    n_rows = dw_row0 + K
    vmax = max(D, i_ff, i_cv)
    return rows, dw_row0, n_rows, vmax


def _pick_bt(batch, n, target=256):
    """Smallest divisor Bt of batch with Bt*N >= target rows (MXU-friendly)."""
    for d in range(1, batch + 1):
        if batch % d:
            continue
        if d * n >= target and (d % 8 == 0 or d == batch):
            return d
    return batch


# ---------------------------------------------------------------------------
# In-kernel math helpers (f32 math; bf16 only as matmul operand dtype)
# ---------------------------------------------------------------------------
def _layernorm(x, g, b):
    m = jnp.mean(x, axis=-1, keepdims=True)
    v = jnp.mean((x - m) ** 2, axis=-1, keepdims=True)
    return (x - m) * lax.rsqrt(v + LN_EPS) * g + b


def _ff(x, V, w1a, w1g, w2, pre):
    """ConformerFeedForward: LN -> Linear -> GLU -> Linear (dropout = id)."""
    h = _layernorm(x, V(pre + "_ln_g"), V(pre + "_ln_b"))
    hb = h.astype(jnp.bfloat16)
    a = jnp.dot(hb, w1a, preferred_element_type=jnp.float32) + V(pre + "_b1a")
    g = jnp.dot(hb, w1g, preferred_element_type=jnp.float32) + V(pre + "_b1g")
    h = a * jax.nn.sigmoid(g)                                   # GLU(dim=-1)
    h = jnp.dot(h.astype(jnp.bfloat16), w2, preferred_element_type=jnp.float32)
    return h + V(pre + "_b2")


def _attention(x, V, wqkv, wo, num_heads, bt, n):
    """Multi-head self-attention on the flat (bt*n, D) carry; mask=None."""
    r, d = x.shape
    hd = d // num_heads
    scale = hd ** -0.5
    h = _layernorm(x, V("attn_ln_g"), V("attn_ln_b"))
    qkv = jnp.dot(h.astype(jnp.bfloat16), wqkv,
                  preferred_element_type=jnp.float32)           # (r, 3D)
    q = qkv[:, :d].reshape(bt, n, d)
    k = qkv[:, d:2 * d].reshape(bt, n, d)
    v = qkv[:, 2 * d:].reshape(bt, n, d)
    out = jnp.zeros((r, d), jnp.float32) + V("attn_bo")
    for hh in range(num_heads):                                 # static per-head loop
        sl = slice(hh * hd, (hh + 1) * hd)
        qh, kh, vh = q[..., sl], k[..., sl], v[..., sl]         # (bt, n, hd)
        dots = jnp.einsum("bnd,bmd->bnm", qh, kh,
                          preferred_element_type=jnp.float32) * scale
        m = jnp.max(dots, axis=-1, keepdims=True)
        e = jnp.exp(dots - m)
        attn = e * pl.reciprocal(jnp.sum(e, axis=-1, keepdims=True), approx=True)
        oh = jnp.einsum("bnm,bmd->bnd", attn, vh,
                        preferred_element_type=jnp.float32).reshape(r, hd)
        # per-head accumulation through Wo -> no lane-axis concat of hd-wide chunks
        out = out + jnp.dot(oh.astype(jnp.bfloat16), wo[hh],
                            preferred_element_type=jnp.float32)
    return out


def _conv_module(x, V, dw_tap, pw1_wa, pw1_wg, pw2_w, k_taps, n):
    """ConformerConvModule (eval-mode BatchNorm, dropout = id)."""
    r = x.shape[0]
    h = _layernorm(x, V("conv_ln_g"), V("conv_ln_b"))
    hb = h.astype(jnp.bfloat16)
    # pointwise Conv1d(dim, 2*inner, 1) == matmul; GLU weights pre-split
    a = jnp.dot(hb, pw1_wa, preferred_element_type=jnp.float32) + V("conv_pw1_ba")
    g = jnp.dot(hb, pw1_wg, preferred_element_type=jnp.float32) + V("conv_pw1_bg")
    h = a * jax.nn.sigmoid(g)                                   # (r, inner), GLU over channels
    inner = h.shape[-1]
    pad = k_taps // 2
    # TODO(synk): matches PyTorch Conv1d only for odd kernel sizes (padding=K//2);
    #             even K would produce N+1 outputs in PyTorch.
    # depthwise Conv1d along the node axis of the flattened (bt*n, inner) carry:
    # XLU roll per tap + a mask that forbids reading across sequence boundaries.
    row_in_seq = lax.broadcasted_iota(jnp.int32, (r, 1), 0) % n
    acc = jnp.zeros((r, inner), jnp.float32) + V("conv_dw_b")
    for kk in range(k_taps):                                    # static taps
        d = kk - pad                                            # source offset
        if d == 0:
            shifted = h
        else:
            # shifted[p] = h[(p + d) mod r]   (jnp.roll semantics)
            shifted = pltpu.roll(h, shift=(-d) % r, axis=0)
        valid = (row_in_seq + d >= 0) & (row_in_seq + d < n)
        acc = acc + jnp.where(valid, shifted, 0.0) * dw_tap(kk)
    # BatchNorm1d (eval: running stats), then Swish
    acc = (acc - V("conv_bn_rm")) * lax.rsqrt(V("conv_bn_rv") + BN_EPS)
    acc = acc * V("conv_bn_g") + V("conv_bn_b")
    acc = acc * jax.nn.sigmoid(acc)
    h = jnp.dot(acc.astype(jnp.bfloat16), pw2_w, preferred_element_type=jnp.float32)
    return h + V("conv_pw2_b")


# ---------------------------------------------------------------------------
# The fused Pallas kernel: grid = (B//Bt, L)
# ---------------------------------------------------------------------------
def conformer_stack_kernel(num_heads, k_taps, bt, n, sv_rows, dw_row0,
                           # inputs
                           x_in_ref, in_w_ref, in_small_ref, svec_ref,
                           ff1_w1a, ff1_w1g, ff1_w2,
                           attn_wqkv, attn_wo,
                           conv_pw1_wa, conv_pw1_wg, conv_pw2_w,
                           ff2_w1a, ff2_w1g, ff2_w2,
                           pol_w1, pol_b1, pol_w2, pol_b2,
                           val_w1, val_b1, val_w2, val_b2,
                           # outputs
                           policy_ref, value_ref,
                           # scratch (persistent activation carry)
                           xc_ref):
    l = pl.program_id(1)
    r = bt * n
    d_model = in_w_ref.shape[1]
    i_cv = conv_pw1_wa.shape[2]

    sv = svec_ref[0]                                            # (n_rows, vmax) f32

    def V(name):
        row, w = sv_rows[name]
        return sv[row:row + 1, :w]                              # (1, w)

    def dw_tap(kk):
        return sv[dw_row0 + kk:dw_row0 + kk + 1, :i_cv]         # (1, inner)

    # ---- layer 0 prologue: input projection + LayerNorm (dropout = id) ----
    @pl.when(l == 0)
    def _():
        ins = in_small_ref[...]                                 # rows: [b, ln_g, ln_b]
        xin = x_in_ref[...].reshape(r, x_in_ref.shape[2]).astype(jnp.bfloat16)
        h = jnp.dot(xin, in_w_ref[...],
                    preferred_element_type=jnp.float32) + ins[0:1, :]
        xc_ref[...] = _layernorm(h, ins[1:2, :], ins[2:3, :])

    # ---- one ConformerBlock on the resident VMEM carry ----
    x = xc_ref[...]                                             # (r, D) f32
    x = x + 0.5 * _ff(x, V, ff1_w1a[0], ff1_w1g[0], ff1_w2[0], "ff1")
    x = x + _attention(x, V, attn_wqkv[0], attn_wo[0], num_heads, bt, n)
    x = x + _conv_module(x, V, dw_tap, conv_pw1_wa[0], conv_pw1_wg[0],
                         conv_pw2_w[0], k_taps, n)
    x = x + 0.5 * _ff(x, V, ff2_w1a[0], ff2_w1g[0], ff2_w2[0], "ff2")
    x = _layernorm(x, V("final_ln_g"), V("final_ln_b"))
    xc_ref[...] = x

    # ---- last layer epilogue: mean pool + policy / value heads ----
    @pl.when(l == pl.num_programs(1) - 1)
    def _():
        pooled = jnp.mean(x.reshape(bt, n, d_model), axis=1)    # (bt, D)
        pb = pooled.astype(jnp.bfloat16)
        ph = jnp.dot(pb, pol_w1[...], preferred_element_type=jnp.float32) + pol_b1[...]
        ph = jnp.maximum(ph, 0.0)
        policy_ref[...] = jnp.dot(ph.astype(jnp.bfloat16), pol_w2[...],
                                  preferred_element_type=jnp.float32) + pol_b2[...]
        vh = jnp.dot(pb, val_w1[...], preferred_element_type=jnp.float32) + val_b1[...]
        vh = jnp.maximum(vh, 0.0)
        value_ref[...] = jnp.dot(vh.astype(jnp.bfloat16), val_w2[...],
                                 preferred_element_type=jnp.float32) + val_b2[...]


# ---------------------------------------------------------------------------
# Wrapper: one pallas_call for the whole network
# ---------------------------------------------------------------------------
def conformer_nnet_forward(params, node_features, cfg):
    B, N, F = node_features.shape
    D = cfg["embedding_dim"]
    L = cfg["num_layers"]
    K = cfg["conv_kernel_size"]
    H = cfg["heads"]
    i_ff = D * cfg["ff_expansion_factor"]
    i_cv = D * cfg["conv_expansion_factor"]
    A = cfg["action_size"]
    PA = params["pol_w2"].shape[1]
    PV = params["val_w2"].shape[1]

    sv_rows, dw_row0, n_rows, vmax = _small_vec_layout(D, i_ff, i_cv, K)

    Bt = _pick_bt(B, N, target=256)
    nb = B // Bt

    mats = [params["stack"][name] for name in MAT_ORDER]
    head_params = [params[name] for name in HEAD_ORDER]

    def _layer_spec(arr):                 # (L, *rest) -> (1, *rest) block indexed by l
        nrest = arr.ndim - 1
        return pl.BlockSpec((1,) + arr.shape[1:],
                            lambda b, l, _n=nrest: (l,) + (0,) * _n)

    def _const_spec(arr):                 # resident for the whole call
        nd = arr.ndim
        return pl.BlockSpec(arr.shape, lambda b, l, _n=nd: (0,) * _n)

    # NOTE: x_in stays resident across the layer loop (only read at l==0); its
    # block is tiny here (F small). For large F move it to pl.ANY + manual DMA.
    in_specs = ([pl.BlockSpec((Bt, N, F), lambda b, l: (b, 0, 0)),
                 _const_spec(params["in_w"]),
                 _const_spec(params["in_small"]),
                 _layer_spec(params["svec"])]
                + [_layer_spec(m) for m in mats]
                + [_const_spec(p) for p in head_params])

    out_specs = (pl.BlockSpec((Bt, PA), lambda b, l: (b, 0)),
                 pl.BlockSpec((Bt, PV), lambda b, l: (b, 0)))

    # rough VMEM budget: double-buffered per-layer weights + resident tensors
    per_layer = sum(int(math.prod(m.shape[1:])) * m.dtype.itemsize for m in mats)
    per_layer += n_rows * vmax * 4
    resident = (Bt * N * F * 4
                + sum(int(math.prod(p.shape)) * p.dtype.itemsize for p in head_params)
                + int(math.prod(params["in_w"].shape)) * 2 + 3 * D * 4
                + 2 * Bt * (PA + PV) * 4
                + Bt * N * D * 4)
    work = 8 * Bt * N * max(i_ff, i_cv, 3 * D) * 4
    est = 2 * per_layer + resident + work + (4 << 20)
    vmem_limit = int(min(max(est, 32 << 20), 96 << 20))

    dims = ("parallel" if nb > 1 else "arbitrary", "arbitrary")

    kernel = functools.partial(conformer_stack_kernel, H, K, Bt, N, sv_rows, dw_row0)
    policy_pad, value_pad = pl.pallas_call(
        kernel,
        out_shape=(jax.ShapeDtypeStruct((B, PA), jnp.float32),
                   jax.ShapeDtypeStruct((B, PV), jnp.float32)),
        grid=(nb, L),
        in_specs=in_specs,
        out_specs=out_specs,
        scratch_shapes=[pltpu.VMEM((Bt * N, D), jnp.float32)],   # layer carry
        compiler_params=pltpu.CompilerParams(
            dimension_semantics=dims, vmem_limit_bytes=vmem_limit),
    )(node_features, params["in_w"], params["in_small"], params["svec"],
      *mats, *head_params)

    return policy_pad[:, :A], value_pad[:, 0]                   # value.squeeze(-1)


# ---------------------------------------------------------------------------
# Parameter initialization (deterministic, synthetic)
# ---------------------------------------------------------------------------
def _init_w(key, shape, scale):
    # matmul weights stored bf16 (MXU-native); math stays f32 via
    # preferred_element_type on every dot.
    return (jax.random.normal(key, shape, jnp.float32) * scale).astype(jnp.bfloat16)


def init_model_params(key, cfg):
    D = cfg["embedding_dim"]
    F = cfg["input_dim"]
    i_ff = D * cfg["ff_expansion_factor"]
    i_cv = D * cfg["conv_expansion_factor"]
    K = cfg["conv_kernel_size"]
    L = cfg["num_layers"]
    H = cfg["heads"]
    hd = D // H
    keys = iter(jax.random.split(key, 4096))

    sv_rows, dw_row0, n_rows, vmax = _small_vec_layout(D, i_ff, i_cv, K)

    params = {
        "in_w": _init_w(next(keys), (F, D), F ** -0.5),
        # rows: [input-proj bias, input LN gamma, input LN beta]
        "in_small": jnp.stack([jnp.zeros((D,), jnp.float32),
                               jnp.ones((D,), jnp.float32),
                               jnp.zeros((D,), jnp.float32)]),
    }

    ones = lambda w: jnp.ones((w,), jnp.float32)
    zeros = lambda w: jnp.zeros((w,), jnp.float32)

    mats = {name: [] for name in MAT_ORDER}
    svecs = []
    for _ in range(L):
        mats["ff1_w1a"].append(_init_w(next(keys), (D, i_ff), D ** -0.5))
        mats["ff1_w1g"].append(_init_w(next(keys), (D, i_ff), D ** -0.5))
        mats["ff1_w2"].append(_init_w(next(keys), (i_ff, D), i_ff ** -0.5))
        mats["attn_wqkv"].append(_init_w(next(keys), (D, 3 * D), D ** -0.5))
        # output projection stored per-head: (H, hd, D) so the kernel never
        # lane/sublane-slices Wo
        mats["attn_wo"].append(_init_w(next(keys), (D, D), D ** -0.5).reshape(H, hd, D))
        mats["conv_pw1_wa"].append(_init_w(next(keys), (D, i_cv), D ** -0.5))
        mats["conv_pw1_wg"].append(_init_w(next(keys), (D, i_cv), D ** -0.5))
        mats["conv_pw2_w"].append(_init_w(next(keys), (i_cv, D), i_cv ** -0.5))
        mats["ff2_w1a"].append(_init_w(next(keys), (D, i_ff), D ** -0.5))
        mats["ff2_w1g"].append(_init_w(next(keys), (D, i_ff), D ** -0.5))
        mats["ff2_w2"].append(_init_w(next(keys), (i_ff, D), i_ff ** -0.5))

        vals = {
            "ff1_ln_g": ones(D), "ff1_ln_b": zeros(D),
            "ff1_b1a": zeros(i_ff), "ff1_b1g": zeros(i_ff), "ff1_b2": zeros(D),
            "attn_ln_g": ones(D), "attn_ln_b": zeros(D), "attn_bo": zeros(D),
            "conv_ln_g": ones(D), "conv_ln_b": zeros(D),
            "conv_pw1_ba": zeros(i_cv), "conv_pw1_bg": zeros(i_cv),
            "conv_dw_b": zeros(i_cv),
            "conv_bn_g": ones(i_cv), "conv_bn_b": zeros(i_cv),
            "conv_bn_rm": zeros(i_cv), "conv_bn_rv": ones(i_cv),
            "conv_pw2_b": zeros(D),
            "ff2_ln_g": ones(D), "ff2_ln_b": zeros(D),
            "ff2_b1a": zeros(i_ff), "ff2_b1g": zeros(i_ff), "ff2_b2": zeros(D),
            "final_ln_g": ones(D), "final_ln_b": zeros(D),
        }
        dw = jax.random.normal(next(keys), (K, i_cv), jnp.float32) * (K ** -0.5)
        sv = jnp.zeros((n_rows, vmax), jnp.float32)
        for name, (row, w) in sv_rows.items():
            sv = sv.at[row, :w].set(vals[name])
        sv = sv.at[dw_row0:dw_row0 + K, :i_cv].set(dw)          # depthwise taps (f32)
        svecs.append(sv)

    params["stack"] = {name: jnp.stack(mats[name]) for name in MAT_ORDER}
    params["svec"] = jnp.stack(svecs)

    PD, VD, A = cfg["policy_dim"], cfg["value_dim"], cfg["action_size"]
    PA = _round_up(A, 128)
    PV = 128
    params["pol_w1"] = _init_w(next(keys), (D, PD), D ** -0.5)
    params["pol_b1"] = jnp.zeros((1, PD), jnp.float32)
    pw2 = jax.random.normal(next(keys), (PD, A), jnp.float32) * (PD ** -0.5)
    params["pol_w2"] = jnp.zeros((PD, PA), jnp.float32).at[:, :A].set(pw2).astype(jnp.bfloat16)
    params["pol_b2"] = jnp.zeros((1, PA), jnp.float32)
    params["val_w1"] = _init_w(next(keys), (D, VD), D ** -0.5)
    params["val_b1"] = jnp.zeros((1, VD), jnp.float32)
    vw2 = jax.random.normal(next(keys), (VD, 1), jnp.float32) * (VD ** -0.5)
    params["val_w2"] = jnp.zeros((VD, PV), jnp.float32).at[:, :1].set(vw2).astype(jnp.bfloat16)
    params["val_b2"] = jnp.zeros((1, PV), jnp.float32)
    return params


# TODO(synk): Dropout layers are identity (inference mode); BatchNorm1d uses
#             running statistics (eval mode).

if __name__ == "__main__":
    cfg = dict(
        batch=2, num_nodes=8, input_dim=2, embedding_dim=32, heads=4,
        num_layers=2, ff_expansion_factor=4, conv_expansion_factor=2,
        conv_kernel_size=7, policy_dim=32, value_dim=32, action_size=8,
    )
    key = jax.random.PRNGKey(0)
    kp, kx = jax.random.split(key)
    params = init_model_params(kp, cfg)
    node_features = jax.random.uniform(
        kx, (cfg["batch"], cfg["num_nodes"], cfg["input_dim"]), jnp.float32)

    fwd = jax.jit(functools.partial(conformer_nnet_forward, cfg=cfg))
    policy_logits, value = fwd(params, node_features)
    jax.block_until_ready((policy_logits, value))

    assert policy_logits.shape == (cfg["batch"], cfg["action_size"])
    assert value.shape == (cfg["batch"],)
    assert bool(jnp.all(jnp.isfinite(policy_logits))) and bool(jnp.all(jnp.isfinite(value)))
    print("KERNEL_OK")
</pallas_src>

<mosaic_0001>
module attributes {stable_mosaic.version = 11 : i64} {
  func.func @conformer_stack_kernel(%arg0: i32, %arg1: i32, %arg2: memref<2x8x2xf32, #tpu.memory_space<vmem>>, %arg3: memref<2x32xbf16, #tpu.memory_space<vmem>>, %arg4: memref<3x32xf32, #tpu.memory_space<vmem>>, %arg5: memref<1x32x128xf32, #tpu.memory_space<vmem>>, %arg6: memref<1x32x128xbf16, #tpu.memory_space<vmem>>, %arg7: memref<1x32x128xbf16, #tpu.memory_space<vmem>>, %arg8: memref<1x128x32xbf16, #tpu.memory_space<vmem>>, %arg9: memref<1x32x96xbf16, #tpu.memory_space<vmem>>, %arg10: memref<1x4x8x32xbf16, #tpu.memory_space<vmem>>, %arg11: memref<1x32x64xbf16, #tpu.memory_space<vmem>>, %arg12: memref<1x32x64xbf16, #tpu.memory_space<vmem>>, %arg13: memref<1x64x32xbf16, #tpu.memory_space<vmem>>, %arg14: memref<1x32x128xbf16, #tpu.memory_space<vmem>>, %arg15: memref<1x32x128xbf16, #tpu.memory_space<vmem>>, %arg16: memref<1x128x32xbf16, #tpu.memory_space<vmem>>, %arg17: memref<32x32xbf16, #tpu.memory_space<vmem>>, %arg18: memref<1x32xf32, #tpu.memory_space<vmem>>, %arg19: memref<32x128xbf16, #tpu.memory_space<vmem>>, %arg20: memref<1x128xf32, #tpu.memory_space<vmem>>, %arg21: memref<32x32xbf16, #tpu.memory_space<vmem>>, %arg22: memref<1x32xf32, #tpu.memory_space<vmem>>, %arg23: memref<32x128xbf16, #tpu.memory_space<vmem>>, %arg24: memref<1x128xf32, #tpu.memory_space<vmem>>, %arg25: memref<2x128xf32, #tpu.memory_space<vmem>>, %arg26: memref<2x128xf32, #tpu.memory_space<vmem>>, %arg27: memref<16x32xf32, #tpu.memory_space<vmem>>) attributes {dimension_semantics = [#tpu.dimension_semantics<arbitrary>, #tpu.dimension_semantics<arbitrary>], iteration_bounds = array<i64: 1, 2>, scalar_prefetch = 0 : i64, scratch_operands = 1 : i64, tpu.core_type = #tpu.core_type<tc>, window_params = [{transform_indices = @transform_0, window_bounds = array<i64: 2, 8, 2>}, {pipeline_mode = #tpu.pipeline_mode<synchronous>, transform_indices = @transform_1, window_bounds = array<i64: 2, 32>}, {pipeline_mode = #tpu.pipeline_mode<synchronous>, transform_indices = @transform_2, window_bounds = array<i64: 3, 32>}, {transform_indices = @transform_3, window_bounds = array<i64: 1, 32, 128>}, {transform_indices = @transform_4, window_bounds = array<i64: 1, 32, 128>}, {transform_indices = @transform_5, window_bounds = array<i64: 1, 32, 128>}, {transform_indices = @transform_6, window_bounds = array<i64: 1, 128, 32>}, {transform_indices = @transform_7, window_bounds = array<i64: 1, 32, 96>}, {transform_indices = @transform_8, window_bounds = array<i64: 1, 4, 8, 32>}, {transform_indices = @transform_9, window_bounds = array<i64: 1, 32, 64>}, {transform_indices = @transform_10, window_bounds = array<i64: 1, 32, 64>}, {transform_indices = @transform_11, window_bounds = array<i64: 1, 64, 32>}, {transform_indices = @transform_12, window_bounds = array<i64: 1, 32, 128>}, {transform_indices = @transform_13, window_bounds = array<i64: 1, 32, 128>}, {transform_indices = @transform_14, window_bounds = array<i64: 1, 128, 32>}, {pipeline_mode = #tpu.pipeline_mode<synchronous>, transform_indices = @transform_15, window_bounds = array<i64: 32, 32>}, {pipeline_mode = #tpu.pipeline_mode<synchronous>, transform_indices = @transform_16, window_bounds = array<i64: 1, 32>}, {pipeline_mode = #tpu.pipeline_mode<synchronous>, transform_indices = @transform_17, window_bounds = array<i64: 32, 128>}, {pipeline_mode = #tpu.pipeline_mode<synchronous>, transform_indices = @transform_18, window_bounds = array<i64: 1, 128>}, {pipeline_mode = #tpu.pipeline_mode<synchronous>, transform_indices = @transform_19, window_bounds = array<i64: 32, 32>}, {pipeline_mode = #tpu.pipeline_mode<synchronous>, transform_indices = @transform_20, window_bounds = array<i64: 1, 32>}, {pipeline_mode = #tpu.pipeline_mode<synchronous>, transform_indices = @transform_21, window_bounds = array<i64: 32, 128>}, {pipeline_mode = #tpu.pipeline_mode<synchronous>, transform_indices = @transform_22, window_bounds = array<i64: 1, 128>}, {transform_indices = @transform_23, window_bounds = array<i64: 2, 128>}, {transform_indices = @transform_24, window_bounds = array<i64: 2, 128>}]} {
    %c0 = arith.constant 0 : index
    %c0_0 = arith.constant 0 : index
    %c0_1 = arith.constant 0 : index
    %0 = vector.load %arg5[%c0, %c0_0, %c0_1] : memref<1x32x128xf32, #tpu.memory_space<vmem>>, vector<1x32x128xf32>
    %1 = vector.shape_cast %0 : vector<1x32x128xf32> to vector<32x128xf32>
    %c0_i32 = arith.constant 0 : i32
    %2 = arith.cmpi eq, %arg1, %c0_i32 : i32
    %3 = arith.extui %2 : i1 to i32
    %c0_i32_2 = arith.constant 0 : i32
    %4 = arith.cmpi ne, %3, %c0_i32_2 : i32
    scf.if %4 {
      %c0_147 = arith.constant 0 : index
      %c0_148 = arith.constant 0 : index
      %491 = vector.load %arg4[%c0_147, %c0_148] : memref<3x32xf32, #tpu.memory_space<vmem>>, vector<3x32xf32>
      %c0_149 = arith.constant 0 : index
      %c0_150 = arith.constant 0 : index
      %c0_151 = arith.constant 0 : index
      %492 = vector.load %arg2[%c0_149, %c0_150, %c0_151] : memref<2x8x2xf32, #tpu.memory_space<vmem>>, vector<2x8x2xf32>
      %493 = vector.shape_cast %492 : vector<2x8x2xf32> to vector<16x2xf32>
      %494 = arith.truncf %493 : vector<16x2xf32> to vector<16x2xbf16>
      %c0_152 = arith.constant 0 : index
      %c0_153 = arith.constant 0 : index
      %495 = vector.load %arg3[%c0_152, %c0_153] : memref<2x32xbf16, #tpu.memory_space<vmem>>, vector<2x32xbf16>
      %cst_154 = arith.constant dense<0.000000e+00> : vector<16x32xf32>
      %496 = tpu.matmul %494, %495, %cst_154 {dimension_numbers = #tpu.dot_dimension_numbers<[1], [0], [0], [1], [0, 0, 1, 1], [], []>} : vector<16x2xbf16>, vector<2x32xbf16>, vector<16x32xf32> -> vector<16x32xf32>
      %497 = vector.extract_strided_slice %491 {offsets = [0, 0], sizes = [1, 32], strides = [1, 1]} : vector<3x32xf32> to vector<1x32xf32>
      %498 = vector.broadcast %497 : vector<1x32xf32> to vector<16x32xf32>
      %499 = arith.addf %496, %498 : vector<16x32xf32>
      %500 = vector.extract_strided_slice %491 {offsets = [1, 0], sizes = [1, 32], strides = [1, 1]} : vector<3x32xf32> to vector<1x32xf32>
      %501 = vector.extract_strided_slice %491 {offsets = [2, 0], sizes = [1, 32], strides = [1, 1]} : vector<3x32xf32> to vector<1x32xf32>
      %cst_155 = arith.constant dense<0.000000e+00> : vector<16xf32>
      %502 = vector.multi_reduction <add>, %499, %cst_155 [1] : vector<16x32xf32> to vector<16xf32>
      %503 = vector.shape_cast %502 : vector<16xf32> to vector<16x1xf32>
      %cst_156 = arith.constant 3.200000e+01 : f32
      %504 = vector.broadcast %cst_156 : f32 to vector<16x1xf32>
      %505 = arith.divf %503, %504 : vector<16x1xf32>
      %506 = vector.broadcast %505 : vector<16x1xf32> to vector<16x32xf32>
      %507 = arith.subf %499, %506 : vector<16x32xf32>
      %508 = arith.mulf %507, %507 : vector<16x32xf32>
      %cst_157 = arith.constant dense<0.000000e+00> : vector<16xf32>
      %509 = vector.multi_reduction <add>, %508, %cst_157 [1] : vector<16x32xf32> to vector<16xf32>
      %510 = vector.shape_cast %509 : vector<16xf32> to vector<16x1xf32>
      %cst_158 = arith.constant 3.200000e+01 : f32
      %511 = vector.broadcast %cst_158 : f32 to vector<16x1xf32>
      %512 = arith.divf %510, %511 : vector<16x1xf32>
      %513 = vector.broadcast %505 : vector<16x1xf32> to vector<16x32xf32>
      %514 = arith.subf %499, %513 : vector<16x32xf32>
      %cst_159 = arith.constant 9.99999974E-6 : f32
      %515 = vector.broadcast %cst_159 : f32 to vector<16x1xf32>
      %516 = arith.addf %512, %515 : vector<16x1xf32>
      %517 = math.rsqrt %516 : vector<16x1xf32>
      %518 = vector.broadcast %517 : vector<16x1xf32> to vector<16x32xf32>
      %519 = arith.mulf %514, %518 : vector<16x32xf32>
      %520 = vector.broadcast %500 : vector<1x32xf32> to vector<16x32xf32>
      %521 = arith.mulf %519, %520 : vector<16x32xf32>
      %522 = vector.broadcast %501 : vector<1x32xf32> to vector<16x32xf32>
      %523 = arith.addf %521, %522 : vector<16x32xf32>
      %c0_160 = arith.constant 0 : index
      %c0_161 = arith.constant 0 : index
      %524 = vector.load %arg27[%c0_160, %c0_161] : memref<16x32xf32, #tpu.memory_space<vmem>>, vector<16x32xf32>
      tpu.vector_store %arg27[%c0_160, %c0_161], %523 {strides = array<i32>} : memref<16x32xf32, #tpu.memory_space<vmem>>, vector<16x32xf32>,
    } else {
    }
    %c0_3 = arith.constant 0 : index
    %c0_4 = arith.constant 0 : index
    %5 = vector.load %arg27[%c0_3, %c0_4] : memref<16x32xf32, #tpu.memory_space<vmem>>, vector<16x32xf32>
    %c0_5 = arith.constant 0 : index
    %c0_6 = arith.constant 0 : index
    %c0_7 = arith.constant 0 : index
    %6 = vector.load %arg6[%c0_5, %c0_6, %c0_7] : memref<1x32x128xbf16, #tpu.memory_space<vmem>>, vector<1x32x128xbf16>
    %7 = vector.shape_cast %6 : vector<1x32x128xbf16> to vector<32x128xbf16>
    %c0_8 = arith.constant 0 : index
    %c0_9 = arith.constant 0 : index
    %c0_10 = arith.constant 0 : index
    %8 = vector.load %arg7[%c0_8, %c0_9, %c0_10] : memref<1x32x128xbf16, #tpu.memory_space<vmem>>, vector<1x32x128xbf16>
    %9 = vector.shape_cast %8 : vector<1x32x128xbf16> to vector<32x128xbf16>
    %c0_11 = arith.constant 0 : index
    %c0_12 = arith.constant 0 : index
    %c0_13 = arith.constant 0 : index
    %10 = vector.load %arg8[%c0_11, %c0_12, %c0_13] : memref<1x128x32xbf16, #tpu.memory_space<vmem>>, vector<1x128x32xbf16>
    %11 = vector.shape_cast %10 : vector<1x128x32xbf16> to vector<128x32xbf16>
    %12 = vector.extract_strided_slice %1 {offsets = [0, 0], sizes = [1, 32], strides = [1, 1]} : vector<32x128xf32> to vector<1x32xf32>
    %13 = vector.extract_strided_slice %1 {offsets = [1, 0], sizes = [1, 32], strides = [1, 1]} : vector<32x128xf32> to vector<1x32xf32>
    %cst = arith.constant dense<0.000000e+00> : vector<16xf32>
    %14 = vector.multi_reduction <add>, %5, %cst [1] : vector<16x32xf32> to vector<16xf32>
    %15 = vector.shape_cast %14 : vector<16xf32> to vector<16x1xf32>
    %cst_14 = arith.constant 3.200000e+01 : f32
    %16 = vector.broadcast %cst_14 : f32 to vector<16x1xf32>
    %17 = arith.divf %15, %16 : vector<16x1xf32>
    %18 = vector.broadcast %17 : vector<16x1xf32> to vector<16x32xf32>
    %19 = arith.subf %5, %18 : vector<16x32xf32>
    %20 = arith.mulf %19, %19 : vector<16x32xf32>
    %cst_15 = arith.constant dense<0.000000e+00> : vector<16xf32>
    %21 = vector.multi_reduction <add>, %20, %cst_15 [1] : vector<16x32xf32> to vector<16xf32>
    %22 = vector.shape_cast %21 : vector<16xf32> to vector<16x1xf32>
    %cst_16 = arith.constant 3.200000e+01 : f32
    %23 = vector.broadcast %cst_16 : f32 to vector<16x1xf32>
    %24 = arith.divf %22, %23 : vector<16x1xf32>
    %25 = vector.broadcast %17 : vector<16x1xf32> to vector<16x32xf32>
    %26 = arith.subf %5, %25 : vector<16x32xf32>
    %cst_17 = arith.constant 9.99999974E-6 : f32
    %27 = vector.broadcast %cst_17 : f32 to vector<16x1xf32>
    %28 = arith.addf %24, %27 : vector<16x1xf32>
    %29 = math.rsqrt %28 : vector<16x1xf32>
    %30 = vector.broadcast %29 : vector<16x1xf32> to vector<16x32xf32>
    %31 = arith.mulf %26, %30 : vector<16x32xf32>
    %32 = vector.broadcast %12 : vector<1x32xf32> to vector<16x32xf32>
    %33 = arith.mulf %31, %32 : vector<16x32xf32>
    %34 = vector.broadcast %13 : vector<1x32xf32> to vector<16x32xf32>
    %35 = arith.addf %33, %34 : vector<16x32xf32>
    %36 = arith.truncf %35 : vector<16x32xf32> to vector<16x32xbf16>
    %cst_18 = arith.constant dense<0.000000e+00> : vector<16x128xf32>
    %37 = tpu.matmul %36, %7, %cst_18 {dimension_numbers = #tpu.dot_dimension_numbers<[1], [0], [0], [1], [0, 0, 1, 1], [], []>} : vector<16x32xbf16>, vector<32x128xbf16>, vector<16x128xf32> -> vector<16x128xf32>
    %38 = vector.extract_strided_slice %1 {offsets = [2, 0], sizes = [1, 128], strides = [1, 1]} : vector<32x128xf32> to vector<1x128xf32>
    %39 = vector.broadcast %38 : vector<1x128xf32> to vector<16x128xf32>
    %40 = arith.addf %37, %39 : vector<16x128xf32>
    %cst_19 = arith.constant dense<0.000000e+00> : vector<16x128xf32>
    %41 = tpu.matmul %36, %9, %cst_19 {dimension_numbers = #tpu.dot_dimension_numbers<[1], [0], [0], [1], [0, 0, 1, 1], [], []>} : vector<16x32xbf16>, vector<32x128xbf16>, vector<16x128xf32> -> vector<16x128xf32>
    %42 = vector.extract_strided_slice %1 {offsets = [3, 0], sizes = [1, 128], strides = [1, 1]} : vector<32x128xf32> to vector<1x128xf32>
    %43 = vector.broadcast %42 : vector<1x128xf32> to vector<16x128xf32>
    %44 = arith.addf %41, %43 : vector<16x128xf32>
    %45 = arith.negf %44 : vector<16x128xf32>
    %46 = math.exp %45 : vector<16x128xf32>
    %cst_20 = arith.constant 1.000000e+00 : f32
    %47 = vector.broadcast %cst_20 : f32 to vector<16x128xf32>
    %48 = arith.addf %47, %46 : vector<16x128xf32>
    %49 = arith.divf %47, %48 : vector<16x128xf32>
    %50 = arith.mulf %40, %49 : vector<16x128xf32>
    %51 = arith.truncf %50 : vector<16x128xf32> to vector<16x128xbf16>
    %cst_21 = arith.constant dense<0.000000e+00> : vector<16x32xf32>
    %52 = tpu.matmul %51, %11, %cst_21 {dimension_numbers = #tpu.dot_dimension_numbers<[1], [0], [0], [1], [0, 0, 1, 1], [], []>} : vector<16x128xbf16>, vector<128x32xbf16>, vector<16x32xf32> -> vector<16x32xf32>
    %53 = vector.extract_strided_slice %1 {offsets = [4, 0], sizes = [1, 32], strides = [1, 1]} : vector<32x128xf32> to vector<1x32xf32>
    %54 = vector.broadcast %53 : vector<1x32xf32> to vector<16x32xf32>
    %55 = arith.addf %52, %54 : vector<16x32xf32>
    %cst_22 = arith.constant 5.000000e-01 : f32
    %56 = vector.broadcast %cst_22 : f32 to vector<16x32xf32>
    %57 = arith.mulf %56, %55 : vector<16x32xf32>
    %58 = arith.addf %5, %57 : vector<16x32xf32>
    %c0_23 = arith.constant 0 : index
    %c0_24 = arith.constant 0 : index
    %c0_25 = arith.constant 0 : index
    %59 = vector.load %arg9[%c0_23, %c0_24, %c0_25] : memref<1x32x96xbf16, #tpu.memory_space<vmem>>, vector<1x32x96xbf16>
    %60 = vector.shape_cast %59 : vector<1x32x96xbf16> to vector<32x96xbf16>
    %c0_26 = arith.constant 0 : index
    %c0_27 = arith.constant 0 : index
    %c0_28 = arith.constant 0 : index
    %c0_29 = arith.constant 0 : index
    %61 = vector.load %arg10[%c0_26, %c0_27, %c0_28, %c0_29] : memref<1x4x8x32xbf16, #tpu.memory_space<vmem>>, vector<1x4x8x32xbf16>
    %62 = vector.shape_cast %61 : vector<1x4x8x32xbf16> to vector<4x8x32xbf16>
    %63 = vector.extract_strided_slice %1 {offsets = [5, 0], sizes = [1, 32], strides = [1, 1]} : vector<32x128xf32> to vector<1x32xf32>
    %64 = vector.extract_strided_slice %1 {offsets = [6, 0], sizes = [1, 32], strides = [1, 1]} : vector<32x128xf32> to vector<1x32xf32>
    %cst_30 = arith.constant dense<0.000000e+00> : vector<16xf32>
    %65 = vector.multi_reduction <add>, %58, %cst_30 [1] : vector<16x32xf32> to vector<16xf32>
    %66 = vector.shape_cast %65 : vector<16xf32> to vector<16x1xf32>
    %cst_31 = arith.constant 3.200000e+01 : f32
    %67 = vector.broadcast %cst_31 : f32 to vector<16x1xf32>
    %68 = arith.divf %66, %67 : vector<16x1xf32>
    %69 = vector.broadcast %68 : vector<16x1xf32> to vector<16x32xf32>
    %70 = arith.subf %58, %69 : vector<16x32xf32>
    %71 = arith.mulf %70, %70 : vector<16x32xf32>
    %cst_32 = arith.constant dense<0.000000e+00> : vector<16xf32>
    %72 = vector.multi_reduction <add>, %71, %cst_32 [1] : vector<16x32xf32> to vector<16xf32>
    %73 = vector.shape_cast %72 : vector<16xf32> to vector<16x1xf32>
    %cst_33 = arith.constant 3.200000e+01 : f32
    %74 = vector.broadcast %cst_33 : f32 to vector<16x1xf32>
    %75 = arith.divf %73, %74 : vector<16x1xf32>
    %76 = vector.broadcast %68 : vector<16x1xf32> to vector<16x32xf32>
    %77 = arith.subf %58, %76 : vector<16x32xf32>
    %cst_34 = arith.constant 9.99999974E-6 : f32
    %78 = vector.broadcast %cst_34 : f32 to vector<16x1xf32>
    %79 = arith.addf %75, %78 : vector<16x1xf32>
    %80 = math.rsqrt %79 : vector<16x1xf32>
    %81 = vector.broadcast %80 : vector<16x1xf32> to vector<16x32xf32>
    %82 = arith.mulf %77, %81 : vector<16x32xf32>
    %83 = vector.broadcast %63 : vector<1x32xf32> to vector<16x32xf32>
    %84 = arith.mulf %82, %83 : vector<16x32xf32>
    %85 = vector.broadcast %64 : vector<1x32xf32> to vector<16x32xf32>
    %86 = arith.addf %84, %85 : vector<16x32xf32>
    %87 = arith.truncf %86 : vector<16x32xf32> to vector<16x32xbf16>
    %cst_35 = arith.constant dense<0.000000e+00> : vector<16x96xf32>
    %88 = tpu.matmul %87, %60, %cst_35 {dimension_numbers = #tpu.dot_dimension_numbers<[1], [0], [0], [1], [0, 0, 1, 1], [], []>} : vector<16x32xbf16>, vector<32x96xbf16>, vector<16x96xf32> -> vector<16x96xf32>
    %89 = vector.extract_strided_slice %88 {offsets = [0, 0], sizes = [16, 32], strides = [1, 1]} : vector<16x96xf32> to vector<16x32xf32>
    %90 = vector.shape_cast %89 : vector<16x32xf32> to vector<2x8x32xf32>
    %91 = vector.extract_strided_slice %88 {offsets = [0, 32], sizes = [16, 32], strides = [1, 1]} : vector<16x96xf32> to vector<16x32xf32>
    %92 = vector.shape_cast %91 : vector<16x32xf32> to vector<2x8x32xf32>
    %93 = vector.extract_strided_slice %88 {offsets = [0, 64], sizes = [16, 32], strides = [1, 1]} : vector<16x96xf32> to vector<16x32xf32>
    %94 = vector.shape_cast %93 : vector<16x32xf32> to vector<2x8x32xf32>
    %cst_36 = arith.constant 0.000000e+00 : f32
    %95 = vector.broadcast %cst_36 : f32 to vector<16x32xf32>
    %96 = vector.extract_strided_slice %1 {offsets = [7, 0], sizes = [1, 32], strides = [1, 1]} : vector<32x128xf32> to vector<1x32xf32>
    %97 = vector.broadcast %96 : vector<1x32xf32> to vector<16x32xf32>
    %98 = arith.addf %95, %97 : vector<16x32xf32>
    %99 = vector.extract_strided_slice %90 {offsets = [0, 0, 0], sizes = [2, 8, 8], strides = [1, 1, 1]} : vector<2x8x32xf32> to vector<2x8x8xf32>
    %100 = vector.extract_strided_slice %92 {offsets = [0, 0, 0], sizes = [2, 8, 8], strides = [1, 1, 1]} : vector<2x8x32xf32> to vector<2x8x8xf32>
    %101 = vector.extract_strided_slice %94 {offsets = [0, 0, 0], sizes = [2, 8, 8], strides = [1, 1, 1]} : vector<2x8x32xf32> to vector<2x8x8xf32>
    "tpu.trace_start"() <{level = 10 : i32, message = "bnd,bmd->bnm"}> : () -> ()
    %cst_37 = arith.constant dense<0.000000e+00> : vector<2x8x8xf32>
    %102 = tpu.matmul %99, %100, %cst_37 {dimension_numbers = #tpu.dot_dimension_numbers<[2], [2], [1], [1], [0, 0, 0, 1, 1, 1], [0], [0]>} : vector<2x8x8xf32>, vector<2x8x8xf32>, vector<2x8x8xf32> -> vector<2x8x8xf32>
    "tpu.trace_stop"() : () -> ()
    %cst_38 = arith.constant 0.353553385 : f32
    %103 = vector.broadcast %cst_38 : f32 to vector<2x8x8xf32>
    %104 = arith.mulf %102, %103 : vector<2x8x8xf32>
    %cst_39 = arith.constant dense<0xFF800000> : vector<2x8xf32>
    %105 = vector.multi_reduction <maximumf>, %104, %cst_39 [2] : vector<2x8x8xf32> to vector<2x8xf32>
    %106 = vector.shape_cast %105 : vector<2x8xf32> to vector<2x8x1xf32>
    %107 = vector.broadcast %106 : vector<2x8x1xf32> to vector<2x8x8xf32>
    %108 = arith.subf %104, %107 : vector<2x8x8xf32>
    %109 = math.exp %108 : vector<2x8x8xf32>
    %cst_40 = arith.constant dense<0.000000e+00> : vector<2x8xf32>
    %110 = vector.multi_reduction <add>, %109, %cst_40 [2] : vector<2x8x8xf32> to vector<2x8xf32>
    %111 = vector.shape_cast %110 : vector<2x8xf32> to vector<2x8x1xf32>
    %112 = tpu.reciprocal %111 {approx = true} : vector<2x8x1xf32> -> vector<2x8x1xf32>
    %113 = vector.broadcast %112 : vector<2x8x1xf32> to vector<2x8x8xf32>
    %114 = arith.mulf %109, %113 : vector<2x8x8xf32>
    "tpu.trace_start"() <{level = 10 : i32, message = "bnm,bmd->bnd"}> : () -> ()
    %cst_41 = arith.constant dense<0.000000e+00> : vector<2x8x8xf32>
    %115 = tpu.matmul %114, %101, %cst_41 {dimension_numbers = #tpu.dot_dimension_numbers<[2], [1], [1], [2], [0, 0, 0, 1, 1, 2], [0], [0]>} : vector<2x8x8xf32>, vector<2x8x8xf32>, vector<2x8x8xf32> -> vector<2x8x8xf32>
    "tpu.trace_stop"() : () -> ()
    %116 = vector.shape_cast %115 : vector<2x8x8xf32> to vector<16x8xf32>
    %117 = arith.truncf %116 : vector<16x8xf32> to vector<16x8xbf16>
    %118 = vector.extract_strided_slice %62 {offsets = [0, 0, 0], sizes = [1, 8, 32], strides = [1, 1, 1]} : vector<4x8x32xbf16> to vector<1x8x32xbf16>
    %119 = vector.shape_cast %118 : vector<1x8x32xbf16> to vector<8x32xbf16>
    %cst_42 = arith.constant dense<0.000000e+00> : vector<16x32xf32>
    %120 = tpu.matmul %117, %119, %cst_42 {dimension_numbers = #tpu.dot_dimension_numbers<[1], [0], [0], [1], [0, 0, 1, 1], [], []>} : vector<16x8xbf16>, vector<8x32xbf16>, vector<16x32xf32> -> vector<16x32xf32>
    %121 = arith.addf %98, %120 : vector<16x32xf32>
    %122 = vector.extract_strided_slice %90 {offsets = [0, 0, 8], sizes = [2, 8, 8], strides = [1, 1, 1]} : vector<2x8x32xf32> to vector<2x8x8xf32>
    %123 = vector.extract_strided_slice %92 {offsets = [0, 0, 8], sizes = [2, 8, 8], strides = [1, 1, 1]} : vector<2x8x32xf32> to vector<2x8x8xf32>
    %124 = vector.extract_strided_slice %94 {offsets = [0, 0, 8], sizes = [2, 8, 8], strides = [1, 1, 1]} : vector<2x8x32xf32> to vector<2x8x8xf32>
    "tpu.trace_start"() <{level = 10 : i32, message = "bnd,bmd->bnm"}> : () -> ()
    %cst_43 = arith.constant dense<0.000000e+00> : vector<2x8x8xf32>
    %125 = tpu.matmul %122, %123, %cst_43 {dimension_numbers = #tpu.dot_dimension_numbers<[2], [2], [1], [1], [0, 0, 0, 1, 1, 1], [0], [0]>} : vector<2x8x8xf32>, vector<2x8x8xf32>, vector<2x8x8xf32> -> vector<2x8x8xf32>
    "tpu.trace_stop"() : () -> ()
    %cst_44 = arith.constant 0.353553385 : f32
    %126 = vector.broadcast %cst_44 : f32 to vector<2x8x8xf32>
    %127 = arith.mulf %125, %126 : vector<2x8x8xf32>
    %cst_45 = arith.constant dense<0xFF800000> : vector<2x8xf32>
    %128 = vector.multi_reduction <maximumf>, %127, %cst_45 [2] : vector<2x8x8xf32> to vector<2x8xf32>
    %129 = vector.shape_cast %128 : vector<2x8xf32> to vector<2x8x1xf32>
    %130 = vector.broadcast %129 : vector<2x8x1xf32> to vector<2x8x8xf32>
    %131 = arith.subf %127, %130 : vector<2x8x8xf32>
    %132 = math.exp %131 : vector<2x8x8xf32>
    %cst_46 = arith.constant dense<0.000000e+00> : vector<2x8xf32>
    %133 = vector.multi_reduction <add>, %132, %cst_46 [2] : vector<2x8x8xf32> to vector<2x8xf32>
    %134 = vector.shape_cast %133 : vector<2x8xf32> to vector<2x8x1xf32>
    %135 = tpu.reciprocal %134 {approx = true} : vector<2x8x1xf32> -> vector<2x8x1xf32>
    %136 = vector.broadcast %135 : vector<2x8x1xf32> to vector<2x8x8xf32>
    %137 = arith.mulf %132, %136 : vector<2x8x8xf32>
    "tpu.trace_start"() <{level = 10 : i32, message = "bnm,bmd->bnd"}> : () -> ()
    %cst_47 = arith.constant dense<0.000000e+00> : vector<2x8x8xf32>
    %138 = tpu.matmul %137, %124, %cst_47 {dimension_numbers = #tpu.dot_dimension_numbers<[2], [1], [1], [2], [0, 0, 0, 1, 1, 2], [0], [0]>} : vector<2x8x8xf32>, vector<2x8x8xf32>, vector<2x8x8xf32> -> vector<2x8x8xf32>
    "tpu.trace_stop"() : () -> ()
    %139 = vector.shape_cast %138 : vector<2x8x8xf32> to vector<16x8xf32>
    %140 = arith.truncf %139 : vector<16x8xf32> to vector<16x8xbf16>
    %141 = vector.extract_strided_slice %62 {offsets = [1, 0, 0], sizes = [1, 8, 32], strides = [1, 1, 1]} : vector<4x8x32xbf16> to vector<1x8x32xbf16>
    %142 = vector.shape_cast %141 : vector<1x8x32xbf16> to vector<8x32xbf16>
    %cst_48 = arith.constant dense<0.000000e+00> : vector<16x32xf32>
    %143 = tpu.matmul %140, %142, %cst_48 {dimension_numbers = #tpu.dot_dimension_numbers<[1], [0], [0], [1], [0, 0, 1, 1], [], []>} : vector<16x8xbf16>, vector<8x32xbf16>, vector<16x32xf32> -> vector<16x32xf32>
    %144 = arith.addf %121, %143 : vector<16x32xf32>
    %145 = vector.extract_strided_slice %90 {offsets = [0, 0, 16], sizes = [2, 8, 8], strides = [1, 1, 1]} : vector<2x8x32xf32> to vector<2x8x8xf32>
    %146 = vector.extract_strided_slice %92 {offsets = [0, 0, 16], sizes = [2, 8, 8], strides = [1, 1, 1]} : vector<2x8x32xf32> to vector<2x8x8xf32>
    %147 = vector.extract_strided_slice %94 {offsets = [0, 0, 16], sizes = [2, 8, 8], strides = [1, 1, 1]} : vector<2x8x32xf32> to vector<2x8x8xf32>
    "tpu.trace_start"() <{level = 10 : i32, message = "bnd,bmd->bnm"}> : () -> ()
    %cst_49 = arith.constant dense<0.000000e+00> : vector<2x8x8xf32>
    %148 = tpu.matmul %145, %146, %cst_49 {dimension_numbers = #tpu.dot_dimension_numbers<[2], [2], [1], [1], [0, 0, 0, 1, 1, 1], [0], [0]>} : vector<2x8x8xf32>, vector<2x8x8xf32>, vector<2x8x8xf32> -> vector<2x8x8xf32>
    "tpu.trace_stop"() : () -> ()
    %cst_50 = arith.constant 0.353553385 : f32
    %149 = vector.broadcast %cst_50 : f32 to vector<2x8x8xf32>
    %150 = arith.mulf %148, %149 : vector<2x8x8xf32>
    %cst_51 = arith.constant dense<0xFF800000> : vector<2x8xf32>
    %151 = vector.multi_reduction <maximumf>, %150, %cst_51 [2] : vector<2x8x8xf32> to vector<2x8xf32>
    %152 = vector.shape_cast %151 : vector<2x8xf32> to vector<2x8x1xf32>
    %153 = vector.broadcast %152 : vector<2x8x1xf32> to vector<2x8x8xf32>
    %154 = arith.subf %150, %153 : vector<2x8x8xf32>
    %155 = math.exp %154 : vector<2x8x8xf32>
    %cst_52 = arith.constant dense<0.000000e+00> : vector<2x8xf32>
    %156 = vector.multi_reduction <add>, %155, %cst_52 [2] : vector<2x8x8xf32> to vector<2x8xf32>
    %157 = vector.shape_cast %156 : vector<2x8xf32> to vector<2x8x1xf32>
    %158 = tpu.reciprocal %157 {approx = true} : vector<2x8x1xf32> -> vector<2x8x1xf32>
    %159 = vector.broadcast %158 : vector<2x8x1xf32> to vector<2x8x8xf32>
    %160 = arith.mulf %155, %159 : vector<2x8x8xf32>
    "tpu.trace_start"() <{level = 10 : i32, message = "bnm,bmd->bnd"}> : () -> ()
    %cst_53 = arith.constant dense<0.000000e+00> : vector<2x8x8xf32>
    %161 = tpu.matmul %160, %147, %cst_53 {dimension_numbers = #tpu.dot_dimension_numbers<[2], [1], [1], [2], [0, 0, 0, 1, 1, 2], [0], [0]>} : vector<2x8x8xf32>, vector<2x8x8xf32>, vector<2x8x8xf32> -> vector<2x8x8xf32>
    "tpu.trace_stop"() : () -> ()
    %162 = vector.shape_cast %161 : vector<2x8x8xf32> to vector<16x8xf32>
    %163 = arith.truncf %162 : vector<16x8xf32> to vector<16x8xbf16>
    %164 = vector.extract_strided_slice %62 {offsets = [2, 0, 0], sizes = [1, 8, 32], strides = [1, 1, 1]} : vector<4x8x32xbf16> to vector<1x8x32xbf16>
    %165 = vector.shape_cast %164 : vector<1x8x32xbf16> to vector<8x32xbf16>
    %cst_54 = arith.constant dense<0.000000e+00> : vector<16x32xf32>
    %166 = tpu.matmul %163, %165, %cst_54 {dimension_numbers = #tpu.dot_dimension_numbers<[1], [0], [0], [1], [0, 0, 1, 1], [], []>} : vector<16x8xbf16>, vector<8x32xbf16>, vector<16x32xf32> -> vector<16x32xf32>
    %167 = arith.addf %144, %166 : vector<16x32xf32>
    %168 = vector.extract_strided_slice %90 {offsets = [0, 0, 24], sizes = [2, 8, 8], strides = [1, 1, 1]} : vector<2x8x32xf32> to vector<2x8x8xf32>
    %169 = vector.extract_strided_slice %92 {offsets = [0, 0, 24], sizes = [2, 8, 8], strides = [1, 1, 1]} : vector<2x8x32xf32> to vector<2x8x8xf32>
    %170 = vector.extract_strided_slice %94 {offsets = [0, 0, 24], sizes = [2, 8, 8], strides = [1, 1, 1]} : vector<2x8x32xf32> to vector<2x8x8xf32>
    "tpu.trace_start"() <{level = 10 : i32, message = "bnd,bmd->bnm"}> : () -> ()
    %cst_55 = arith.constant dense<0.000000e+00> : vector<2x8x8xf32>
    %171 = tpu.matmul %168, %169, %cst_55 {dimension_numbers = #tpu.dot_dimension_numbers<[2], [2], [1], [1], [0, 0, 0, 1, 1, 1], [0], [0]>} : vector<2x8x8xf32>, vector<2x8x8xf32>, vector<2x8x8xf32> -> vector<2x8x8xf32>
    "tpu.trace_stop"() : () -> ()
    %cst_56 = arith.constant 0.353553385 : f32
    %172 = vector.broadcast %cst_56 : f32 to vector<2x8x8xf32>
    %173 = arith.mulf %171, %172 : vector<2x8x8xf32>
    %cst_57 = arith.constant dense<0xFF800000> : vector<2x8xf32>
    %174 = vector.multi_reduction <maximumf>, %173, %cst_57 [2] : vector<2x8x8xf32> to vector<2x8xf32>
    %175 = vector.shape_cast %174 : vector<2x8xf32> to vector<2x8x1xf32>
    %176 = vector.broadcast %175 : vector<2x8x1xf32> to vector<2x8x8xf32>
    %177 = arith.subf %173, %176 : vector<2x8x8xf32>
    %178 = math.exp %177 : vector<2x8x8xf32>
    %cst_58 = arith.constant dense<0.000000e+00> : vector<2x8xf32>
    %179 = vector.multi_reduction <add>, %178, %cst_58 [2] : vector<2x8x8xf32> to vector<2x8xf32>
    %180 = vector.shape_cast %179 : vector<2x8xf32> to vector<2x8x1xf32>
    %181 = tpu.reciprocal %180 {approx = true} : vector<2x8x1xf32> -> vector<2x8x1xf32>
    %182 = vector.broadcast %181 : vector<2x8x1xf32> to vector<2x8x8xf32>
    %183 = arith.mulf %178, %182 : vector<2x8x8xf32>
    "tpu.trace_start"() <{level = 10 : i32, message = "bnm,bmd->bnd"}> : () -> ()
    %cst_59 = arith.constant dense<0.000000e+00> : vector<2x8x8xf32>
    %184 = tpu.matmul %183, %170, %cst_59 {dimension_numbers = #tpu.dot_dimension_numbers<[2], [1], [1], [2], [0, 0, 0, 1, 1, 2], [0], [0]>} : vector<2x8x8xf32>, vector<2x8x8xf32>, vector<2x8x8xf32> -> vector<2x8x8xf32>
    "tpu.trace_stop"() : () -> ()
    %185 = vector.shape_cast %184 : vector<2x8x8xf32> to vector<16x8xf32>
    %186 = arith.truncf %185 : vector<16x8xf32> to vector<16x8xbf16>
    %187 = vector.extract_strided_slice %62 {offsets = [3, 0, 0], sizes = [1, 8, 32], strides = [1, 1, 1]} : vector<4x8x32xbf16> to vector<1x8x32xbf16>
    %188 = vector.shape_cast %187 : vector<1x8x32xbf16> to vector<8x32xbf16>
    %cst_60 = arith.constant dense<0.000000e+00> : vector<16x32xf32>
    %189 = tpu.matmul %186, %188, %cst_60 {dimension_numbers = #tpu.dot_dimension_numbers<[1], [0], [0], [1], [0, 0, 1, 1], [], []>} : vector<16x8xbf16>, vector<8x32xbf16>, vector<16x32xf32> -> vector<16x32xf32>
    %190 = arith.addf %167, %189 : vector<16x32xf32>
    %191 = arith.addf %58, %190 : vector<16x32xf32>
    %c0_61 = arith.constant 0 : index
    %c0_62 = arith.constant 0 : index
    %c0_63 = arith.constant 0 : index
    %192 = vector.load %arg11[%c0_61, %c0_62, %c0_63] : memref<1x32x64xbf16, #tpu.memory_space<vmem>>, vector<1x32x64xbf16>
    %193 = vector.shape_cast %192 : vector<1x32x64xbf16> to vector<32x64xbf16>
    %c0_64 = arith.constant 0 : index
    %c0_65 = arith.constant 0 : index
    %c0_66 = arith.constant 0 : index
    %194 = vector.load %arg12[%c0_64, %c0_65, %c0_66] : memref<1x32x64xbf16, #tpu.memory_space<vmem>>, vector<1x32x64xbf16>
    %195 = vector.shape_cast %194 : vector<1x32x64xbf16> to vector<32x64xbf16>
    %c0_67 = arith.constant 0 : index
    %c0_68 = arith.constant 0 : index
    %c0_69 = arith.constant 0 : index
    %196 = vector.load %arg13[%c0_67, %c0_68, %c0_69] : memref<1x64x32xbf16, #tpu.memory_space<vmem>>, vector<1x64x32xbf16>
    %197 = vector.shape_cast %196 : vector<1x64x32xbf16> to vector<64x32xbf16>
    %198 = vector.extract_strided_slice %1 {offsets = [8, 0], sizes = [1, 32], strides = [1, 1]} : vector<32x128xf32> to vector<1x32xf32>
    %199 = vector.extract_strided_slice %1 {offsets = [9, 0], sizes = [1, 32], strides = [1, 1]} : vector<32x128xf32> to vector<1x32xf32>
    %cst_70 = arith.constant dense<0.000000e+00> : vector<16xf32>
    %200 = vector.multi_reduction <add>, %191, %cst_70 [1] : vector<16x32xf32> to vector<16xf32>
    %201 = vector.shape_cast %200 : vector<16xf32> to vector<16x1xf32>
    %cst_71 = arith.constant 3.200000e+01 : f32
    %202 = vector.broadcast %cst_71 : f32 to vector<16x1xf32>
    %203 = arith.divf %201, %202 : vector<16x1xf32>
    %204 = vector.broadcast %203 : vector<16x1xf32> to vector<16x32xf32>
    %205 = arith.subf %191, %204 : vector<16x32xf32>
    %206 = arith.mulf %205, %205 : vector<16x32xf32>
    %cst_72 = arith.constant dense<0.000000e+00> : vector<16xf32>
    %207 = vector.multi_reduction <add>, %206, %cst_72 [1] : vector<16x32xf32> to vector<16xf32>
    %208 = vector.shape_cast %207 : vector<16xf32> to vector<16x1xf32>
    %cst_73 = arith.constant 3.200000e+01 : f32
    %209 = vector.broadcast %cst_73 : f32 to vector<16x1xf32>
    %210 = arith.divf %208, %209 : vector<16x1xf32>
    %211 = vector.broadcast %203 : vector<16x1xf32> to vector<16x32xf32>
    %212 = arith.subf %191, %211 : vector<16x32xf32>
    %cst_74 = arith.constant 9.99999974E-6 : f32
    %213 = vector.broadcast %cst_74 : f32 to vector<16x1xf32>
    %214 = arith.addf %210, %213 : vector<16x1xf32>
    %215 = math.rsqrt %214 : vector<16x1xf32>
    %216 = vector.broadcast %215 : vector<16x1xf32> to vector<16x32xf32>
    %217 = arith.mulf %212, %216 : vector<16x32xf32>
    %218 = vector.broadcast %198 : vector<1x32xf32> to vector<16x32xf32>
    %219 = arith.mulf %217, %218 : vector<16x32xf32>
    %220 = vector.broadcast %199 : vector<1x32xf32> to vector<16x32xf32>
    %221 = arith.addf %219, %220 : vector<16x32xf32>
    %222 = arith.truncf %221 : vector<16x32xf32> to vector<16x32xbf16>
    %cst_75 = arith.constant dense<0.000000e+00> : vector<16x64xf32>
    %223 = tpu.matmul %222, %193, %cst_75 {dimension_numbers = #tpu.dot_dimension_numbers<[1], [0], [0], [1], [0, 0, 1, 1], [], []>} : vector<16x32xbf16>, vector<32x64xbf16>, vector<16x64xf32> -> vector<16x64xf32>
    %224 = vector.extract_strided_slice %1 {offsets = [10, 0], sizes = [1, 64], strides = [1, 1]} : vector<32x128xf32> to vector<1x64xf32>
    %225 = vector.broadcast %224 : vector<1x64xf32> to vector<16x64xf32>
    %226 = arith.addf %223, %225 : vector<16x64xf32>
    %cst_76 = arith.constant dense<0.000000e+00> : vector<16x64xf32>
    %227 = tpu.matmul %222, %195, %cst_76 {dimension_numbers = #tpu.dot_dimension_numbers<[1], [0], [0], [1], [0, 0, 1, 1], [], []>} : vector<16x32xbf16>, vector<32x64xbf16>, vector<16x64xf32> -> vector<16x64xf32>
    %228 = vector.extract_strided_slice %1 {offsets = [11, 0], sizes = [1, 64], strides = [1, 1]} : vector<32x128xf32> to vector<1x64xf32>
    %229 = vector.broadcast %228 : vector<1x64xf32> to vector<16x64xf32>
    %230 = arith.addf %227, %229 : vector<16x64xf32>
    %231 = arith.negf %230 : vector<16x64xf32>
    %232 = math.exp %231 : vector<16x64xf32>
    %cst_77 = arith.constant 1.000000e+00 : f32
    %233 = vector.broadcast %cst_77 : f32 to vector<16x64xf32>
    %234 = arith.addf %233, %232 : vector<16x64xf32>
    %235 = arith.divf %233, %234 : vector<16x64xf32>
    %236 = arith.mulf %226, %235 : vector<16x64xf32>
    %237 = tpu.iota {dimensions = array<i32: 0>} : vector<16x1xi32>
    %c8_i32 = arith.constant 8 : i32
    %c0_i32_78 = arith.constant 0 : i32
    %238 = arith.cmpi eq, %c8_i32, %c0_i32_78 : i32
    %c1_i32 = arith.constant 1 : i32
    %239 = arith.select %238, %c1_i32, %c8_i32 : i32
    %240 = vector.broadcast %239 : i32 to vector<16x1xi32>
    %241 = arith.remsi %237, %240 : vector<16x1xi32>
    %c0_i32_79 = arith.constant 0 : i32
    %242 = vector.broadcast %c0_i32_79 : i32 to vector<16x1xi32>
    %243 = arith.cmpi ne, %241, %242 : vector<16x1xi32>
    %c0_i32_80 = arith.constant 0 : i32
    %244 = vector.broadcast %c0_i32_80 : i32 to vector<16x1xi32>
    %245 = arith.cmpi slt, %241, %244 : vector<16x1xi32>
    %c0_i32_81 = arith.constant 0 : i32
    %246 = arith.cmpi slt, %239, %c0_i32_81 : i32
    %247 = vector.broadcast %246 : i1 to vector<16x1xi1>
    %248 = vector.broadcast %247 : vector<16x1xi1> to vector<16x1xi1>
    %249 = arith.xori %245, %248 : vector<16x1xi1>
    %250 = arith.andi %249, %243 : vector<16x1xi1>
    %251 = vector.broadcast %239 : i32 to vector<16x1xi32>
    %252 = arith.addi %241, %251 : vector<16x1xi32>
    %253 = arith.select %250, %252, %241 : vector<16x1xi1>, vector<16x1xi32>
    %cst_82 = arith.constant 0.000000e+00 : f32
    %254 = vector.broadcast %cst_82 : f32 to vector<16x64xf32>
    %255 = vector.extract_strided_slice %1 {offsets = [12, 0], sizes = [1, 64], strides = [1, 1]} : vector<32x128xf32> to vector<1x64xf32>
    %256 = vector.broadcast %255 : vector<1x64xf32> to vector<16x64xf32>
    %257 = arith.addf %254, %256 : vector<16x64xf32>
    %c3_i32 = arith.constant 3 : i32
    %258 = tpu.dynamic_rotate %236 by %c3_i32 dim 0 : vector<16x64xf32>, i32 -> vector<16x64xf32>
    %c-3_i32 = arith.constant -3 : i32
    %259 = vector.broadcast %c-3_i32 : i32 to vector<16x1xi32>
    %260 = arith.addi %253, %259 : vector<16x1xi32>
    %c0_i32_83 = arith.constant 0 : i32
    %261 = vector.broadcast %c0_i32_83 : i32 to vector<16x1xi32>
    %262 = arith.cmpi sge, %260, %261 : vector<16x1xi32>
    %c-3_i32_84 = arith.constant -3 : i32
    %263 = vector.broadcast %c-3_i32_84 : i32 to vector<16x1xi32>
    %264 = arith.addi %253, %263 : vector<16x1xi32>
    %c8_i32_85 = arith.constant 8 : i32
    %265 = vector.broadcast %c8_i32_85 : i32 to vector<16x1xi32>
    %266 = arith.cmpi slt, %264, %265 : vector<16x1xi32>
    %267 = arith.andi %262, %266 : vector<16x1xi1>
    %cst_86 = arith.constant 0.000000e+00 : f32
    %268 = vector.shape_cast %267 : vector<16x1xi1> to vector<16x1xi1>
    %269 = vector.broadcast %268 : vector<16x1xi1> to vector<16x64xi1>
    %270 = vector.broadcast %cst_86 : f32 to vector<16x64xf32>
    %271 = arith.select %269, %258, %270 : vector<16x64xi1>, vector<16x64xf32>
    %272 = vector.extract_strided_slice %1 {offsets = [25, 0], sizes = [1, 64], strides = [1, 1]} : vector<32x128xf32> to vector<1x64xf32>
    %273 = vector.broadcast %272 : vector<1x64xf32> to vector<16x64xf32>
    %274 = arith.mulf %271, %273 : vector<16x64xf32>
    %275 = arith.addf %257, %274 : vector<16x64xf32>
    %c2_i32 = arith.constant 2 : i32
    %276 = tpu.dynamic_rotate %236 by %c2_i32 dim 0 : vector<16x64xf32>, i32 -> vector<16x64xf32>
    %c-2_i32 = arith.constant -2 : i32
    %277 = vector.broadcast %c-2_i32 : i32 to vector<16x1xi32>
    %278 = arith.addi %253, %277 : vector<16x1xi32>
    %c0_i32_87 = arith.constant 0 : i32
    %279 = vector.broadcast %c0_i32_87 : i32 to vector<16x1xi32>
    %280 = arith.cmpi sge, %278, %279 : vector<16x1xi32>
    %c-2_i32_88 = arith.constant -2 : i32
    %281 = vector.broadcast %c-2_i32_88 : i32 to vector<16x1xi32>
    %282 = arith.addi %253, %281 : vector<16x1xi32>
    %c8_i32_89 = arith.constant 8 : i32
    %283 = vector.broadcast %c8_i32_89 : i32 to vector<16x1xi32>
    %284 = arith.cmpi slt, %282, %283 : vector<16x1xi32>
    %285 = arith.andi %280, %284 : vector<16x1xi1>
    %cst_90 = arith.constant 0.000000e+00 : f32
    %286 = vector.shape_cast %285 : vector<16x1xi1> to vector<16x1xi1>
    %287 = vector.broadcast %286 : vector<16x1xi1> to vector<16x64xi1>
    %288 = vector.broadcast %cst_90 : f32 to vector<16x64xf32>
    %289 = arith.select %287, %276, %288 : vector<16x64xi1>, vector<16x64xf32>
    %290 = vector.extract_strided_slice %1 {offsets = [26, 0], sizes = [1, 64], strides = [1, 1]} : vector<32x128xf32> to vector<1x64xf32>
    %291 = vector.broadcast %290 : vector<1x64xf32> to vector<16x64xf32>
    %292 = arith.mulf %289, %291 : vector<16x64xf32>
    %293 = arith.addf %275, %292 : vector<16x64xf32>
    %c1_i32_91 = arith.constant 1 : i32
    %294 = tpu.dynamic_rotate %236 by %c1_i32_91 dim 0 : vector<16x64xf32>, i32 -> vector<16x64xf32>
    %c-1_i32 = arith.constant -1 : i32
    %295 = vector.broadcast %c-1_i32 : i32 to vector<16x1xi32>
    %296 = arith.addi %253, %295 : vector<16x1xi32>
    %c0_i32_92 = arith.constant 0 : i32
    %297 = vector.broadcast %c0_i32_92 : i32 to vector<16x1xi32>
    %298 = arith.cmpi sge, %296, %297 : vector<16x1xi32>
    %c-1_i32_93 = arith.constant -1 : i32
    %299 = vector.broadcast %c-1_i32_93 : i32 to vector<16x1xi32>
    %300 = arith.addi %253, %299 : vector<16x1xi32>
    %c8_i32_94 = arith.constant 8 : i32
    %301 = vector.broadcast %c8_i32_94 : i32 to vector<16x1xi32>
    %302 = arith.cmpi slt, %300, %301 : vector<16x1xi32>
    %303 = arith.andi %298, %302 : vector<16x1xi1>
    %cst_95 = arith.constant 0.000000e+00 : f32
    %304 = vector.shape_cast %303 : vector<16x1xi1> to vector<16x1xi1>
    %305 = vector.broadcast %304 : vector<16x1xi1> to vector<16x64xi1>
    %306 = vector.broadcast %cst_95 : f32 to vector<16x64xf32>
    %307 = arith.select %305, %294, %306 : vector<16x64xi1>, vector<16x64xf32>
    %308 = vector.extract_strided_slice %1 {offsets = [27, 0], sizes = [1, 64], strides = [1, 1]} : vector<32x128xf32> to vector<1x64xf32>
    %309 = vector.broadcast %308 : vector<1x64xf32> to vector<16x64xf32>
    %310 = arith.mulf %307, %309 : vector<16x64xf32>
    %311 = arith.addf %293, %310 : vector<16x64xf32>
    %c0_i32_96 = arith.constant 0 : i32
    %312 = vector.broadcast %c0_i32_96 : i32 to vector<16x1xi32>
    %313 = arith.addi %253, %312 : vector<16x1xi32>
    %c0_i32_97 = arith.constant 0 : i32
    %314 = vector.broadcast %c0_i32_97 : i32 to vector<16x1xi32>
    %315 = arith.cmpi sge, %313, %314 : vector<16x1xi32>
    %c0_i32_98 = arith.constant 0 : i32
    %316 = vector.broadcast %c0_i32_98 : i32 to vector<16x1xi32>
    %317 = arith.addi %253, %316 : vector<16x1xi32>
    %c8_i32_99 = arith.constant 8 : i32
    %318 = vector.broadcast %c8_i32_99 : i32 to vector<16x1xi32>
    %319 = arith.cmpi slt, %317, %318 : vector<16x1xi32>
    %320 = arith.andi %315, %319 : vector<16x1xi1>
    %cst_100 = arith.constant 0.000000e+00 : f32
    %321 = vector.shape_cast %320 : vector<16x1xi1> to vector<16x1xi1>
    %322 = vector.broadcast %321 : vector<16x1xi1> to vector<16x64xi1>
    %323 = vector.broadcast %cst_100 : f32 to vector<16x64xf32>
    %324 = arith.select %322, %236, %323 : vector<16x64xi1>, vector<16x64xf32>
    %325 = vector.extract_strided_slice %1 {offsets = [28, 0], sizes = [1, 64], strides = [1, 1]} : vector<32x128xf32> to vector<1x64xf32>
    %326 = vector.broadcast %325 : vector<1x64xf32> to vector<16x64xf32>
    %327 = arith.mulf %324, %326 : vector<16x64xf32>
    %328 = arith.addf %311, %327 : vector<16x64xf32>
    %c15_i32 = arith.constant 15 : i32
    %329 = tpu.dynamic_rotate %236 by %c15_i32 dim 0 : vector<16x64xf32>, i32 -> vector<16x64xf32>
    %c1_i32_101 = arith.constant 1 : i32
    %330 = vector.broadcast %c1_i32_101 : i32 to vector<16x1xi32>
    %331 = arith.addi %253, %330 : vector<16x1xi32>
    %c0_i32_102 = arith.constant 0 : i32
    %332 = vector.broadcast %c0_i32_102 : i32 to vector<16x1xi32>
    %333 = arith.cmpi sge, %331, %332 : vector<16x1xi32>
    %c1_i32_103 = arith.constant 1 : i32
    %334 = vector.broadcast %c1_i32_103 : i32 to vector<16x1xi32>
    %335 = arith.addi %253, %334 : vector<16x1xi32>
    %c8_i32_104 = arith.constant 8 : i32
    %336 = vector.broadcast %c8_i32_104 : i32 to vector<16x1xi32>
    %337 = arith.cmpi slt, %335, %336 : vector<16x1xi32>
    %338 = arith.andi %333, %337 : vector<16x1xi1>
    %cst_105 = arith.constant 0.000000e+00 : f32
    %339 = vector.shape_cast %338 : vector<16x1xi1> to vector<16x1xi1>
    %340 = vector.broadcast %339 : vector<16x1xi1> to vector<16x64xi1>
    %341 = vector.broadcast %cst_105 : f32 to vector<16x64xf32>
    %342 = arith.select %340, %329, %341 : vector<16x64xi1>, vector<16x64xf32>
    %343 = vector.extract_strided_slice %1 {offsets = [29, 0], sizes = [1, 64], strides = [1, 1]} : vector<32x128xf32> to vector<1x64xf32>
    %344 = vector.broadcast %343 : vector<1x64xf32> to vector<16x64xf32>
    %345 = arith.mulf %342, %344 : vector<16x64xf32>
    %346 = arith.addf %328, %345 : vector<16x64xf32>
    %c14_i32 = arith.constant 14 : i32
    %347 = tpu.dynamic_rotate %236 by %c14_i32 dim 0 : vector<16x64xf32>, i32 -> vector<16x64xf32>
    %c2_i32_106 = arith.constant 2 : i32
    %348 = vector.broadcast %c2_i32_106 : i32 to vector<16x1xi32>
    %349 = arith.addi %253, %348 : vector<16x1xi32>
    %c0_i32_107 = arith.constant 0 : i32
    %350 = vector.broadcast %c0_i32_107 : i32 to vector<16x1xi32>
    %351 = arith.cmpi sge, %349, %350 : vector<16x1xi32>
    %c2_i32_108 = arith.constant 2 : i32
    %352 = vector.broadcast %c2_i32_108 : i32 to vector<16x1xi32>
    %353 = arith.addi %253, %352 : vector<16x1xi32>
    %c8_i32_109 = arith.constant 8 : i32
    %354 = vector.broadcast %c8_i32_109 : i32 to vector<16x1xi32>
    %355 = arith.cmpi slt, %353, %354 : vector<16x1xi32>
    %356 = arith.andi %351, %355 : vector<16x1xi1>
    %cst_110 = arith.constant 0.000000e+00 : f32
    %357 = vector.shape_cast %356 : vector<16x1xi1> to vector<16x1xi1>
    %358 = vector.broadcast %357 : vector<16x1xi1> to vector<16x64xi1>
    %359 = vector.broadcast %cst_110 : f32 to vector<16x64xf32>
    %360 = arith.select %358, %347, %359 : vector<16x64xi1>, vector<16x64xf32>
    %361 = vector.extract_strided_slice %1 {offsets = [30, 0], sizes = [1, 64], strides = [1, 1]} : vector<32x128xf32> to vector<1x64xf32>
    %362 = vector.broadcast %361 : vector<1x64xf32> to vector<16x64xf32>
    %363 = arith.mulf %360, %362 : vector<16x64xf32>
    %364 = arith.addf %346, %363 : vector<16x64xf32>
    %c13_i32 = arith.constant 13 : i32
    %365 = tpu.dynamic_rotate %236 by %c13_i32 dim 0 : vector<16x64xf32>, i32 -> vector<16x64xf32>
    %c3_i32_111 = arith.constant 3 : i32
    %366 = vector.broadcast %c3_i32_111 : i32 to vector<16x1xi32>
    %367 = arith.addi %253, %366 : vector<16x1xi32>
    %c0_i32_112 = arith.constant 0 : i32
    %368 = vector.broadcast %c0_i32_112 : i32 to vector<16x1xi32>
    %369 = arith.cmpi sge, %367, %368 : vector<16x1xi32>
    %c3_i32_113 = arith.constant 3 : i32
    %370 = vector.broadcast %c3_i32_113 : i32 to vector<16x1xi32>
    %371 = arith.addi %253, %370 : vector<16x1xi32>
    %c8_i32_114 = arith.constant 8 : i32
    %372 = vector.broadcast %c8_i32_114 : i32 to vector<16x1xi32>
    %373 = arith.cmpi slt, %371, %372 : vector<16x1xi32>
    %374 = arith.andi %369, %373 : vector<16x1xi1>
    %cst_115 = arith.constant 0.000000e+00 : f32
    %375 = vector.shape_cast %374 : vector<16x1xi1> to vector<16x1xi1>
    %376 = vector.broadcast %375 : vector<16x1xi1> to vector<16x64xi1>
    %377 = vector.broadcast %cst_115 : f32 to vector<16x64xf32>
    %378 = arith.select %376, %365, %377 : vector<16x64xi1>, vector<16x64xf32>
    %379 = vector.extract_strided_slice %1 {offsets = [31, 0], sizes = [1, 64], strides = [1, 1]} : vector<32x128xf32> to vector<1x64xf32>
    %380 = vector.broadcast %379 : vector<1x64xf32> to vector<16x64xf32>
    %381 = arith.mulf %378, %380 : vector<16x64xf32>
    %382 = arith.addf %364, %381 : vector<16x64xf32>
    %383 = vector.extract_strided_slice %1 {offsets = [15, 0], sizes = [1, 64], strides = [1, 1]} : vector<32x128xf32> to vector<1x64xf32>
    %384 = vector.broadcast %383 : vector<1x64xf32> to vector<16x64xf32>
    %385 = arith.subf %382, %384 : vector<16x64xf32>
    %386 = vector.extract_strided_slice %1 {offsets = [16, 0], sizes = [1, 64], strides = [1, 1]} : vector<32x128xf32> to vector<1x64xf32>
    %cst_116 = arith.constant 9.99999974E-6 : f32
    %387 = vector.broadcast %cst_116 : f32 to vector<1x64xf32>
    %388 = arith.addf %386, %387 : vector<1x64xf32>
    %389 = math.rsqrt %388 : vector<1x64xf32>
    %390 = vector.broadcast %389 : vector<1x64xf32> to vector<16x64xf32>
    %391 = arith.mulf %385, %390 : vector<16x64xf32>
    %392 = vector.extract_strided_slice %1 {offsets = [13, 0], sizes = [1, 64], strides = [1, 1]} : vector<32x128xf32> to vector<1x64xf32>
    %393 = vector.broadcast %392 : vector<1x64xf32> to vector<16x64xf32>
    %394 = arith.mulf %391, %393 : vector<16x64xf32>
    %395 = vector.extract_strided_slice %1 {offsets = [14, 0], sizes = [1, 64], strides = [1, 1]} : vector<32x128xf32> to vector<1x64xf32>
    %396 = vector.broadcast %395 : vector<1x64xf32> to vector<16x64xf32>
    %397 = arith.addf %394, %396 : vector<16x64xf32>
    %398 = arith.negf %397 : vector<16x64xf32>
    %399 = math.exp %398 : vector<16x64xf32>
    %cst_117 = arith.constant 1.000000e+00 : f32
    %400 = vector.broadcast %cst_117 : f32 to vector<16x64xf32>
    %401 = arith.addf %400, %399 : vector<16x64xf32>
    %402 = arith.divf %400, %401 : vector<16x64xf32>
    %403 = arith.mulf %397, %402 : vector<16x64xf32>
    %404 = arith.truncf %403 : vector<16x64xf32> to vector<16x64xbf16>
    %cst_118 = arith.constant dense<0.000000e+00> : vector<16x32xf32>
    %405 = tpu.matmul %404, %197, %cst_118 {dimension_numbers = #tpu.dot_dimension_numbers<[1], [0], [0], [1], [0, 0, 1, 1], [], []>} : vector<16x64xbf16>, vector<64x32xbf16>, vector<16x32xf32> -> vector<16x32xf32>
    %406 = vector.extract_strided_slice %1 {offsets = [17, 0], sizes = [1, 32], strides = [1, 1]} : vector<32x128xf32> to vector<1x32xf32>
    %407 = vector.broadcast %406 : vector<1x32xf32> to vector<16x32xf32>
    %408 = arith.addf %405, %407 : vector<16x32xf32>
    %409 = arith.addf %191, %408 : vector<16x32xf32>
    %c0_119 = arith.constant 0 : index
    %c0_120 = arith.constant 0 : index
    %c0_121 = arith.constant 0 : index
    %410 = vector.load %arg14[%c0_119, %c0_120, %c0_121] : memref<1x32x128xbf16, #tpu.memory_space<vmem>>, vector<1x32x128xbf16>
    %411 = vector.shape_cast %410 : vector<1x32x128xbf16> to vector<32x128xbf16>
    %c0_122 = arith.constant 0 : index
    %c0_123 = arith.constant 0 : index
    %c0_124 = arith.constant 0 : index
    %412 = vector.load %arg15[%c0_122, %c0_123, %c0_124] : memref<1x32x128xbf16, #tpu.memory_space<vmem>>, vector<1x32x128xbf16>
    %413 = vector.shape_cast %412 : vector<1x32x128xbf16> to vector<32x128xbf16>
    %c0_125 = arith.constant 0 : index
    %c0_126 = arith.constant 0 : index
    %c0_127 = arith.constant 0 : index
    %414 = vector.load %arg16[%c0_125, %c0_126, %c0_127] : memref<1x128x32xbf16, #tpu.memory_space<vmem>>, vector<1x128x32xbf16>
    %415 = vector.shape_cast %414 : vector<1x128x32xbf16> to vector<128x32xbf16>
    %416 = vector.extract_strided_slice %1 {offsets = [18, 0], sizes = [1, 32], strides = [1, 1]} : vector<32x128xf32> to vector<1x32xf32>
    %417 = vector.extract_strided_slice %1 {offsets = [19, 0], sizes = [1, 32], strides = [1, 1]} : vector<32x128xf32> to vector<1x32xf32>
    %cst_128 = arith.constant dense<0.000000e+00> : vector<16xf32>
    %418 = vector.multi_reduction <add>, %409, %cst_128 [1] : vector<16x32xf32> to vector<16xf32>
    %419 = vector.shape_cast %418 : vector<16xf32> to vector<16x1xf32>
    %cst_129 = arith.constant 3.200000e+01 : f32
    %420 = vector.broadcast %cst_129 : f32 to vector<16x1xf32>
    %421 = arith.divf %419, %420 : vector<16x1xf32>
    %422 = vector.broadcast %421 : vector<16x1xf32> to vector<16x32xf32>
    %423 = arith.subf %409, %422 : vector<16x32xf32>
    %424 = arith.mulf %423, %423 : vector<16x32xf32>
    %cst_130 = arith.constant dense<0.000000e+00> : vector<16xf32>
    %425 = vector.multi_reduction <add>, %424, %cst_130 [1] : vector<16x32xf32> to vector<16xf32>
    %426 = vector.shape_cast %425 : vector<16xf32> to vector<16x1xf32>
    %cst_131 = arith.constant 3.200000e+01 : f32
    %427 = vector.broadcast %cst_131 : f32 to vector<16x1xf32>
    %428 = arith.divf %426, %427 : vector<16x1xf32>
    %429 = vector.broadcast %421 : vector<16x1xf32> to vector<16x32xf32>
    %430 = arith.subf %409, %429 : vector<16x32xf32>
    %cst_132 = arith.constant 9.99999974E-6 : f32
    %431 = vector.broadcast %cst_132 : f32 to vector<16x1xf32>
    %432 = arith.addf %428, %431 : vector<16x1xf32>
    %433 = math.rsqrt %432 : vector<16x1xf32>
    %434 = vector.broadcast %433 : vector<16x1xf32> to vector<16x32xf32>
    %435 = arith.mulf %430, %434 : vector<16x32xf32>
    %436 = vector.broadcast %416 : vector<1x32xf32> to vector<16x32xf32>
    %437 = arith.mulf %435, %436 : vector<16x32xf32>
    %438 = vector.broadcast %417 : vector<1x32xf32> to vector<16x32xf32>
    %439 = arith.addf %437, %438 : vector<16x32xf32>
    %440 = arith.truncf %439 : vector<16x32xf32> to vector<16x32xbf16>
    %cst_133 = arith.constant dense<0.000000e+00> : vector<16x128xf32>
    %441 = tpu.matmul %440, %411, %cst_133 {dimension_numbers = #tpu.dot_dimension_numbers<[1], [0], [0], [1], [0, 0, 1, 1], [], []>} : vector<16x32xbf16>, vector<32x128xbf16>, vector<16x128xf32> -> vector<16x128xf32>
    %442 = vector.extract_strided_slice %1 {offsets = [20, 0], sizes = [1, 128], strides = [1, 1]} : vector<32x128xf32> to vector<1x128xf32>
    %443 = vector.broadcast %442 : vector<1x128xf32> to vector<16x128xf32>
    %444 = arith.addf %441, %443 : vector<16x128xf32>
    %cst_134 = arith.constant dense<0.000000e+00> : vector<16x128xf32>
    %445 = tpu.matmul %440, %413, %cst_134 {dimension_numbers = #tpu.dot_dimension_numbers<[1], [0], [0], [1], [0, 0, 1, 1], [], []>} : vector<16x32xbf16>, vector<32x128xbf16>, vector<16x128xf32> -> vector<16x128xf32>
    %446 = vector.extract_strided_slice %1 {offsets = [21, 0], sizes = [1, 128], strides = [1, 1]} : vector<32x128xf32> to vector<1x128xf32>
    %447 = vector.broadcast %446 : vector<1x128xf32> to vector<16x128xf32>
    %448 = arith.addf %445, %447 : vector<16x128xf32>
    %449 = arith.negf %448 : vector<16x128xf32>
    %450 = math.exp %449 : vector<16x128xf32>
    %cst_135 = arith.constant 1.000000e+00 : f32
    %451 = vector.broadcast %cst_135 : f32 to vector<16x128xf32>
    %452 = arith.addf %451, %450 : vector<16x128xf32>
    %453 = arith.divf %451, %452 : vector<16x128xf32>
    %454 = arith.mulf %444, %453 : vector<16x128xf32>
    %455 = arith.truncf %454 : vector<16x128xf32> to vector<16x128xbf16>
    %cst_136 = arith.constant dense<0.000000e+00> : vector<16x32xf32>
    %456 = tpu.matmul %455, %415, %cst_136 {dimension_numbers = #tpu.dot_dimension_numbers<[1], [0], [0], [1], [0, 0, 1, 1], [], []>} : vector<16x128xbf16>, vector<128x32xbf16>, vector<16x32xf32> -> vector<16x32xf32>
    %457 = vector.extract_strided_slice %1 {offsets = [22, 0], sizes = [1, 32], strides = [1, 1]} : vector<32x128xf32> to vector<1x32xf32>
    %458 = vector.broadcast %457 : vector<1x32xf32> to vector<16x32xf32>
    %459 = arith.addf %456, %458 : vector<16x32xf32>
    %cst_137 = arith.constant 5.000000e-01 : f32
    %460 = vector.broadcast %cst_137 : f32 to vector<16x32xf32>
    %461 = arith.mulf %460, %459 : vector<16x32xf32>
    %462 = arith.addf %409, %461 : vector<16x32xf32>
    %463 = vector.extract_strided_slice %1 {offsets = [23, 0], sizes = [1, 32], strides = [1, 1]} : vector<32x128xf32> to vector<1x32xf32>
    %464 = vector.extract_strided_slice %1 {offsets = [24, 0], sizes = [1, 32], strides = [1, 1]} : vector<32x128xf32> to vector<1x32xf32>
    %cst_138 = arith.constant dense<0.000000e+00> : vector<16xf32>
    %465 = vector.multi_reduction <add>, %462, %cst_138 [1] : vector<16x32xf32> to vector<16xf32>
    %466 = vector.shape_cast %465 : vector<16xf32> to vector<16x1xf32>
    %cst_139 = arith.constant 3.200000e+01 : f32
    %467 = vector.broadcast %cst_139 : f32 to vector<16x1xf32>
    %468 = arith.divf %466, %467 : vector<16x1xf32>
    %469 = vector.broadcast %468 : vector<16x1xf32> to vector<16x32xf32>
    %470 = arith.subf %462, %469 : vector<16x32xf32>
    %471 = arith.mulf %470, %470 : vector<16x32xf32>
    %cst_140 = arith.constant dense<0.000000e+00> : vector<16xf32>
    %472 = vector.multi_reduction <add>, %471, %cst_140 [1] : vector<16x32xf32> to vector<16xf32>
    %473 = vector.shape_cast %472 : vector<16xf32> to vector<16x1xf32>
    %cst_141 = arith.constant 3.200000e+01 : f32
    %474 = vector.broadcast %cst_141 : f32 to vector<16x1xf32>
    %475 = arith.divf %473, %474 : vector<16x1xf32>
    %476 = vector.broadcast %468 : vector<16x1xf32> to vector<16x32xf32>
    %477 = arith.subf %462, %476 : vector<16x32xf32>
    %cst_142 = arith.constant 9.99999974E-6 : f32
    %478 = vector.broadcast %cst_142 : f32 to vector<16x1xf32>
    %479 = arith.addf %475, %478 : vector<16x1xf32>
    %480 = math.rsqrt %479 : vector<16x1xf32>
    %481 = vector.broadcast %480 : vector<16x1xf32> to vector<16x32xf32>
    %482 = arith.mulf %477, %481 : vector<16x32xf32>
    %483 = vector.broadcast %463 : vector<1x32xf32> to vector<16x32xf32>
    %484 = arith.mulf %482, %483 : vector<16x32xf32>
    %485 = vector.broadcast %464 : vector<1x32xf32> to vector<16x32xf32>
    %486 = arith.addf %484, %485 : vector<16x32xf32>
    %c0_143 = arith.constant 0 : index
    %c0_144 = arith.constant 0 : index
    %487 = vector.load %arg27[%c0_143, %c0_144] : memref<16x32xf32, #tpu.memory_space<vmem>>, vector<16x32xf32>
    tpu.vector_store %arg27[%c0_143, %c0_144], %486 {strides = array<i32>} : memref<16x32xf32, #tpu.memory_space<vmem>>, vector<16x32xf32>,
    %c1_i32_145 = arith.constant 1 : i32
    %488 = arith.cmpi eq, %arg1, %c1_i32_145 : i32
    %489 = arith.extui %488 : i1 to i32
    %c0_i32_146 = arith.constant 0 : i32
    %490 = arith.cmpi ne, %489, %c0_i32_146 : i32
    scf.if %490 {
      %491 = vector.shape_cast %486 : vector<16x32xf32> to vector<2x8x32xf32>
      %cst_147 = arith.constant dense<0.000000e+00> : vector<2x32xf32>
      %492 = vector.multi_reduction <add>, %491, %cst_147 [1] : vector<2x8x32xf32> to vector<2x32xf32>
      %cst_148 = arith.constant 8.000000e+00 : f32
      %493 = vector.broadcast %cst_148 : f32 to vector<2x32xf32>
      %494 = arith.divf %492, %493 : vector<2x32xf32>
      %495 = arith.truncf %494 : vector<2x32xf32> to vector<2x32xbf16>
      %c0_149 = arith.constant 0 : index
      %c0_150 = arith.constant 0 : index
      %496 = vector.load %arg17[%c0_149, %c0_150] : memref<32x32xbf16, #tpu.memory_space<vmem>>, vector<32x32xbf16>
      %cst_151 = arith.constant dense<0.000000e+00> : vector<2x32xf32>
      %497 = tpu.matmul %495, %496, %cst_151 {dimension_numbers = #tpu.dot_dimension_numbers<[1], [0], [0], [1], [0, 0, 1, 1], [], []>} : vector<2x32xbf16>, vector<32x32xbf16>, vector<2x32xf32> -> vector<2x32xf32>
      %c0_152 = arith.constant 0 : index
      %c0_153 = arith.constant 0 : index
      %498 = vector.load %arg18[%c0_152, %c0_153] : memref<1x32xf32, #tpu.memory_space<vmem>>, vector<1x32xf32>
      %499 = vector.broadcast %498 : vector<1x32xf32> to vector<2x32xf32>
      %500 = arith.addf %497, %499 : vector<2x32xf32>
      %cst_154 = arith.constant 0.000000e+00 : f32
      %501 = vector.broadcast %cst_154 : f32 to vector<2x32xf32>
      %502 = arith.maximumf %500, %501 : vector<2x32xf32>
      %503 = arith.truncf %502 : vector<2x32xf32> to vector<2x32xbf16>
      %c0_155 = arith.constant 0 : index
      %c0_156 = arith.constant 0 : index
      %504 = vector.load %arg19[%c0_155, %c0_156] : memref<32x128xbf16, #tpu.memory_space<vmem>>, vector<32x128xbf16>
      %cst_157 = arith.constant dense<0.000000e+00> : vector<2x128xf32>
      %505 = tpu.matmul %503, %504, %cst_157 {dimension_numbers = #tpu.dot_dimension_numbers<[1], [0], [0], [1], [0, 0, 1, 1], [], []>} : vector<2x32xbf16>, vector<32x128xbf16>, vector<2x128xf32> -> vector<2x128xf32>
      %c0_158 = arith.constant 0 : index
      %c0_159 = arith.constant 0 : index
      %506 = vector.load %arg20[%c0_158, %c0_159] : memref<1x128xf32, #tpu.memory_space<vmem>>, vector<1x128xf32>
      %507 = vector.broadcast %506 : vector<1x128xf32> to vector<2x128xf32>
      %508 = arith.addf %505, %507 : vector<2x128xf32>
      %c0_160 = arith.constant 0 : index
      %c0_161 = arith.constant 0 : index
      %509 = vector.load %arg25[%c0_160, %c0_161] : memref<2x128xf32, #tpu.memory_space<vmem>>, vector<2x128xf32>
      tpu.vector_store %arg25[%c0_160, %c0_161], %508 {strides = array<i32>} : memref<2x128xf32, #tpu.memory_space<vmem>>, vector<2x128xf32>,
      %c0_162 = arith.constant 0 : index
      %c0_163 = arith.constant 0 : index
      %510 = vector.load %arg21[%c0_162, %c0_163] : memref<32x32xbf16, #tpu.memory_space<vmem>>, vector<32x32xbf16>
      %cst_164 = arith.constant dense<0.000000e+00> : vector<2x32xf32>
      %511 = tpu.matmul %495, %510, %cst_164 {dimension_numbers = #tpu.dot_dimension_numbers<[1], [0], [0], [1], [0, 0, 1, 1], [], []>} : vector<2x32xbf16>, vector<32x32xbf16>, vector<2x32xf32> -> vector<2x32xf32>
      %c0_165 = arith.constant 0 : index
      %c0_166 = arith.constant 0 : index
      %512 = vector.load %arg22[%c0_165, %c0_166] : memref<1x32xf32, #tpu.memory_space<vmem>>, vector<1x32xf32>
      %513 = vector.broadcast %512 : vector<1x32xf32> to vector<2x32xf32>
      %514 = arith.addf %511, %513 : vector<2x32xf32>
      %cst_167 = arith.constant 0.000000e+00 : f32
      %515 = vector.broadcast %cst_167 : f32 to vector<2x32xf32>
      %516 = arith.maximumf %514, %515 : vector<2x32xf32>
      %517 = arith.truncf %516 : vector<2x32xf32> to vector<2x32xbf16>
      %c0_168 = arith.constant 0 : index
      %c0_169 = arith.constant 0 : index
      %518 = vector.load %arg23[%c0_168, %c0_169] : memref<32x128xbf16, #tpu.memory_space<vmem>>, vector<32x128xbf16>
      %cst_170 = arith.constant dense<0.000000e+00> : vector<2x128xf32>
      %519 = tpu.matmul %517, %518, %cst_170 {dimension_numbers = #tpu.dot_dimension_numbers<[1], [0], [0], [1], [0, 0, 1, 1], [], []>} : vector<2x32xbf16>, vector<32x128xbf16>, vector<2x128xf32> -> vector<2x128xf32>
      %c0_171 = arith.constant 0 : index
      %c0_172 = arith.constant 0 : index
      %520 = vector.load %arg24[%c0_171, %c0_172] : memref<1x128xf32, #tpu.memory_space<vmem>>, vector<1x128xf32>
      %521 = vector.broadcast %520 : vector<1x128xf32> to vector<2x128xf32>
      %522 = arith.addf %519, %521 : vector<2x128xf32>
      %c0_173 = arith.constant 0 : index
      %c0_174 = arith.constant 0 : index
      %523 = vector.load %arg26[%c0_173, %c0_174] : memref<2x128xf32, #tpu.memory_space<vmem>>, vector<2x128xf32>
      tpu.vector_store %arg26[%c0_173, %c0_174], %522 {strides = array<i32>} : memref<2x128xf32, #tpu.memory_space<vmem>>, vector<2x128xf32>,
    } else {
    }
    return
  }
  func.func @transform_0(%arg0: i32, %arg1: i32) -> (i32, i32, i32) {
    %c0_i32 = arith.constant 0 : i32
    %c0_i32_0 = arith.constant 0 : i32
    %c0_i32_1 = arith.constant 0 : i32
    return %arg0, %c0_i32, %c0_i32_0 : i32, i32, i32
  }
  func.func @transform_1(%arg0: i32, %arg1: i32) -> (i32, i32) {
    %c0_i32 = arith.constant 0 : i32
    %c0_i32_0 = arith.constant 0 : i32
    %c0_i32_1 = arith.constant 0 : i32
    return %c0_i32, %c0_i32_0 : i32, i32
  }
  func.func @transform_2(%arg0: i32, %arg1: i32) -> (i32, i32) {
    %c0_i32 = arith.constant 0 : i32
    %c0_i32_0 = arith.constant 0 : i32
    %c0_i32_1 = arith.constant 0 : i32
    return %c0_i32, %c0_i32_0 : i32, i32
  }
  func.func @transform_3(%arg0: i32, %arg1: i32) -> (i32, i32, i32) {
    %c0_i32 = arith.constant 0 : i32
    %c0_i32_0 = arith.constant 0 : i32
    %c0_i32_1 = arith.constant 0 : i32
    return %arg1, %c0_i32, %c0_i32_0 : i32, i32, i32
  }
  func.func @transform_4(%arg0: i32, %arg1: i32) -> (i32, i32, i32) {
    %c0_i32 = arith.constant 0 : i32
    %c0_i32_0 = arith.constant 0 : i32
    %c0_i32_1 = arith.constant 0 : i32
    return %arg1, %c0_i32, %c0_i32_0 : i32, i32, i32
  }
  func.func @transform_5(%arg0: i32, %arg1: i32) -> (i32, i32, i32) {
    %c0_i32 = arith.constant 0 : i32
    %c0_i32_0 = arith.constant 0 : i32
    %c0_i32_1 = arith.constant 0 : i32
    return %arg1, %c0_i32, %c0_i32_0 : i32, i32, i32
  }
  func.func @transform_6(%arg0: i32, %arg1: i32) -> (i32, i32, i32) {
    %c0_i32 = arith.constant 0 : i32
    %c0_i32_0 = arith.constant 0 : i32
    %c0_i32_1 = arith.constant 0 : i32
    return %arg1, %c0_i32, %c0_i32_0 : i32, i32, i32
  }
  func.func @transform_7(%arg0: i32, %arg1: i32) -> (i32, i32, i32) {
    %c0_i32 = arith.constant 0 : i32
    %c0_i32_0 = arith.constant 0 : i32
    %c0_i32_1 = arith.constant 0 : i32
    return %arg1, %c0_i32, %c0_i32_0 : i32, i32, i32
  }
  func.func @transform_8(%arg0: i32, %arg1: i32) -> (i32, i32, i32, i32) {
    %c0_i32 = arith.constant 0 : i32
    %c0_i32_0 = arith.constant 0 : i32
    %c0_i32_1 = arith.constant 0 : i32
    %c0_i32_2 = arith.constant 0 : i32
    return %arg1, %c0_i32, %c0_i32_0, %c0_i32_1 : i32, i32, i32, i32
  }
  func.func @transform_9(%arg0: i32, %arg1: i32) -> (i32, i32, i32) {
    %c0_i32 = arith.constant 0 : i32
    %c0_i32_0 = arith.constant 0 : i32
    %c0_i32_1 = arith.constant 0 : i32
    return %arg1, %c0_i32, %c0_i32_0 : i32, i32, i32
  }
  func.func @transform_10(%arg0: i32, %arg1: i32) -> (i32, i32, i32) {
    %c0_i32 = arith.constant 0 : i32
    %c0_i32_0 = arith.constant 0 : i32
    %c0_i32_1 = arith.constant 0 : i32
    return %arg1, %c0_i32, %c0_i32_0 : i32, i32, i32
  }
  func.func @transform_11(%arg0: i32, %arg1: i32) -> (i32, i32, i32) {
    %c0_i32 = arith.constant 0 : i32
    %c0_i32_0 = arith.constant 0 : i32
    %c0_i32_1 = arith.constant 0 : i32
    return %arg1, %c0_i32, %c0_i32_0 : i32, i32, i32
  }
  func.func @transform_12(%arg0: i32, %arg1: i32) -> (i32, i32, i32) {
    %c0_i32 = arith.constant 0 : i32
    %c0_i32_0 = arith.constant 0 : i32
    %c0_i32_1 = arith.constant 0 : i32
    return %arg1, %c0_i32, %c0_i32_0 : i32, i32, i32
  }
  func.func @transform_13(%arg0: i32, %arg1: i32) -> (i32, i32, i32) {
    %c0_i32 = arith.constant 0 : i32
    %c0_i32_0 = arith.constant 0 : i32
    %c0_i32_1 = arith.constant 0 : i32
    return %arg1, %c0_i32, %c0_i32_0 : i32, i32, i32
  }
  func.func @transform_14(%arg0: i32, %arg1: i32) -> (i32, i32, i32) {
    %c0_i32 = arith.constant 0 : i32
    %c0_i32_0 = arith.constant 0 : i32
    %c0_i32_1 = arith.constant 0 : i32
    return %arg1, %c0_i32, %c0_i32_0 : i32, i32, i32
  }
  func.func @transform_15(%arg0: i32, %arg1: i32) -> (i32, i32) {
    %c0_i32 = arith.constant 0 : i32
    %c0_i32_0 = arith.constant 0 : i32
    %c0_i32_1 = arith.constant 0 : i32
    return %c0_i32, %c0_i32_0 : i32, i32
  }
  func.func @transform_16(%arg0: i32, %arg1: i32) -> (i32, i32) {
    %c0_i32 = arith.constant 0 : i32
    %c0_i32_0 = arith.constant 0 : i32
    %c0_i32_1 = arith.constant 0 : i32
    return %c0_i32, %c0_i32_0 : i32, i32
  }
  func.func @transform_17(%arg0: i32, %arg1: i32) -> (i32, i32) {
    %c0_i32 = arith.constant 0 : i32
    %c0_i32_0 = arith.constant 0 : i32
    %c0_i32_1 = arith.constant 0 : i32
    return %c0_i32, %c0_i32_0 : i32, i32
  }
  func.func @transform_18(%arg0: i32, %arg1: i32) -> (i32, i32) {
    %c0_i32 = arith.constant 0 : i32
    %c0_i32_0 = arith.constant 0 : i32
    %c0_i32_1 = arith.constant 0 : i32
    return %c0_i32, %c0_i32_0 : i32, i32
  }
  func.func @transform_19(%arg0: i32, %arg1: i32) -> (i32, i32) {
    %c0_i32 = arith.constant 0 : i32
    %c0_i32_0 = arith.constant 0 : i32
    %c0_i32_1 = arith.constant 0 : i32
    return %c0_i32, %c0_i32_0 : i32, i32
  }
  func.func @transform_20(%arg0: i32, %arg1: i32) -> (i32, i32) {
    %c0_i32 = arith.constant 0 : i32
    %c0_i32_0 = arith.constant 0 : i32
    %c0_i32_1 = arith.constant 0 : i32
    return %c0_i32, %c0_i32_0 : i32, i32
  }
  func.func @transform_21(%arg0: i32, %arg1: i32) -> (i32, i32) {
    %c0_i32 = arith.constant 0 : i32
    %c0_i32_0 = arith.constant 0 : i32
    %c0_i32_1 = arith.constant 0 : i32
    return %c0_i32, %c0_i32_0 : i32, i32
  }
  func.func @transform_22(%arg0: i32, %arg1: i32) -> (i32, i32) {
    %c0_i32 = arith.constant 0 : i32
    %c0_i32_0 = arith.constant 0 : i32
    %c0_i32_1 = arith.constant 0 : i32
    return %c0_i32, %c0_i32_0 : i32, i32
  }
  func.func @transform_23(%arg0: i32, %arg1: i32) -> (i32, i32) {
    %c0_i32 = arith.constant 0 : i32
    %c0_i32_0 = arith.constant 0 : i32
    return %arg0, %c0_i32 : i32, i32
  }
  func.func @transform_24(%arg0: i32, %arg1: i32) -> (i32, i32) {
    %c0_i32 = arith.constant 0 : i32
    %c0_i32_0 = arith.constant 0 : i32
    return %arg0, %c0_i32 : i32, i32
  }
}

</mosaic_0001>

<bundles_post_ra>
// kernel: conformer_nnet_forward.1
= control target key start
LH: loop header
LB: loop body
LE: loop exit
PB: predicated region body
PF: predicated region fallthrough
CT: control target
= control target key end

     0   :  { %s6518_s0 = inlined_call_operand.vmem [shape: f32[2,8,2], index: 0, kind: input, shape index: {}]   ;;  %s6519_s1 = inlined_call_operand.hbm [shape: bf16[2,32], index: 1, kind: input, shape index: {}]   ;;  %s6520_s2 = inlined_call_operand.hbm [shape: f32[3,32], index: 2, kind: input, shape index: {}]   ;;  %s6521_s3 = inlined_call_operand.vmem [shape: f32[2,32,128], index: 3, kind: input, shape index: {}]   ;;  %s6522_s4 = inlined_call_operand.vmem [shape: bf16[2,32,128], index: 4, kind: input, shape index: {}]   ;;  %s6523_s5 = inlined_call_operand.vmem [shape: bf16[2,32,128], index: 5, kind: input, shape index: {}]   ;;  %s6524_s6 = inlined_call_operand.vmem [shape: bf16[2,128,32], index: 6, kind: input, shape index: {}]   ;;  %s6525_s7 = inlined_call_operand.vmem [shape: bf16[2,32,96], index: 7, kind: input, shape index: {}]   ;;  %s6526_s8 = inlined_call_operand.vmem [shape: bf16[2,4,8,32], index: 8, kind: input, shape index: {}]   ;;  %s6527_s9 = inlined_call_operand.vmem [shape: bf16[2,32,64], index: 9, kind: input, shape index: {}]   ;;  %s6528_s10 = inlined_call_operand.vmem [shape: bf16[2,32,64], index: 10, kind: input, shape index: {}]   ;;  %s6529_s11 = inlined_call_operand.vmem [shape: bf16[2,64,32], index: 11, kind: input, shape index: {}]   ;;  %s6530_s12 = inlined_call_operand.vmem [shape: bf16[2,32,128], index: 12, kind: input, shape index: {}]   ;;  %s6531_s13 = inlined_call_operand.vmem [shape: bf16[2,32,128], index: 13, kind: input, shape index: {}]   ;;  %s6532_s14 = inlined_call_operand.vmem [shape: bf16[2,128,32], index: 14, kind: input, shape index: {}]   ;;  %s6533_s15 = inlined_call_operand.vmem [shape: bf16[32,32], index: 15, kind: input, shape index: {}]   ;;  %s6534_s16 = inlined_call_operand.hbm [shape: f32[1,32], index: 16, kind: input, shape index: {}]   ;;  %s6535_s17 = inlined_call_operand.vmem [shape: bf16[32,128], index: 17, kind: input, shape index: {}]   ;;  %s6536_s18 = inlined_call_operand.hbm [shape: f32[1,128], index: 18, kind: input, shape index: {}]   ;;  %s6537_s19 = inlined_call_operand.vmem [shape: bf16[32,32], index: 19, kind: input, shape index: {}]   ;;  %s6538_s20 = inlined_call_operand.hbm [shape: f32[1,32], index: 20, kind: input, shape index: {}]   ;;  %s6539_s21 = inlined_call_operand.hbm [shape: bf16[32,128], index: 21, kind: input, shape index: {}]   ;;  %s6540_s22 = inlined_call_operand.hbm [shape: f32[1,128], index: 22, kind: input, shape index: {}]   ;;  %s6541_s23 = inlined_call_operand.hbm [shape: f32[2,128], index: 23, kind: output, shape index: {0}]   ;;  %s6542_s24 = inlined_call_operand.vmem [shape: f32[2,128], index: 24, kind: output, shape index: {1}]  }
   0x1   :  { %6554 = sst [smem:[#allocation24_spill]] %s6518_s0 }
   0x2   :  { %6555 = sst [smem:[#allocation25_spill]] %s6519_s1 }
   0x3   :  { %6556 = sst [smem:[#allocation26_spill]] %s6520_s2 }
   0x4   :  { %6557 = sst [smem:[#allocation27_spill]] %s6521_s3 }
   0x5   :  { %6558 = sst [smem:[#allocation28_spill]] %s6522_s4 }
   0x6   :  { %6559 = sst [smem:[#allocation29_spill]] %s6523_s5 }
   0x7   :  { %6560 = sst [smem:[#allocation30_spill]] %s6524_s6 }
   0x8   :  { %6561 = sst [smem:[#allocation31_spill]] %s6525_s7 }
   0x9   :  { %6562 = sst [smem:[#allocation32_spill]] %s6526_s8 }
   0xa   :  { %6563 = sst [smem:[#allocation33_spill]] %s6527_s9 }
   0xb   :  { %6564 = sst [smem:[#allocation34_spill]] %s6534_s16 }
   0xc   :  { %6565 = sst [smem:[#allocation35_spill]] %s6536_s18 }
   0xd   :  { %6566 = sst [smem:[#allocation36_spill]] %s6537_s19 }
   0xe   :  { %6567 = sst [smem:[#allocation37_spill]] %s6538_s20 }
   0xf   :  { %6568 = sst [smem:[#allocation38_spill]] %s6539_s21 }
  0x10   :  { %6569 = sst [smem:[#allocation39_spill]] %s6540_s22 }
  0x11   :  { %6570 = sst [smem:[#allocation40_spill]] %s6541_s23 }
  0x12   :  { %6571 = sst [smem:[#allocation41_spill]] %s6542_s24 }
  0x13   :  { %30 = vsyncpa [#allocation4], 0 }
  0x14   :  { %31 = vsyncpa [#allocation7], 0 }
  0x15   :  { %32 = vsyncpa [#allocation10], 0 }
  0x16   :  { %33 = vsyncpa [#allocation13], 0 }
  0x17   :  { %34 = vsyncpa [#allocation5], 0  ;;  %s5735_s5 = smov 0   ;;  %s5737_s26 = smov 0  }
  0x18   :  { %s5739_s27 = smov 0  }
  0x19 LB: > { %6572 = sst [smem:[#allocation21_spill]] %s5577_s26  ;;  %s5583_s28 = smov [#allocation6]   ;;  %s5581_s27 = sphi %s5739_s27, %s40_s27   ;;  %s5577_s26 = sphi %s5737_s26, %s6625_s26   ;;  %s5573_s5 = sphi %s5735_s5, %s6624_s5  }
  0x1a   : > { %6573 = sst [smem:[#allocation22_spill]] %s5581_s27  ;;  %s690_s6 = sshll.u32 %s5583_s28, 4  ;;  %s691_s6 = int_to_ptr.vmem [resolvable:$true] %s690_s6 }
  0x1b   : > { %s6544_s2 = sadd.s32 4294967295, %s5581_s27   ;;  %p4576_p0 = scmp.ge.s32.totalorder %s5581_s27, 1 }
  0x1c   : > { %p657_p1 = scmp.lt.s32.totalorder %s5581_s27, 3  ;;  %p5755_p2 = scmp.eq.s32.totalorder %s6544_s2, 0 }
  0x1d   : > { %s5584_s7 = smov [#allocation9]   ;;  %s5585_s3 = smov [#allocation12]  }
  0x1e   : > { %s6574_s29 = scalar_select %p5755_p2, 1, 0 }
  0x1f   : > { %p5759_p3 = pnand %p4576_p0, %p657_p1  ;;  %s718_s30 = sshll.u32 %s5584_s7, 4  ;;  %s719_s30 = int_to_ptr.vmem [resolvable:$true] %s718_s30 }
  0x20   : > { %s742_s25 = sshll.u32 %s5585_s3, 4  ;;  %s5344_s1 = scalar_lea.vmem %s691_s6, 64  ;;  %s5771_s25 = int_to_ptr.vmem [resolvable:$true] %s742_s25 }
  0x21   : > { %s6575_s0 = scalar_select %p5759_p3, 1, 0 }
  0x22   : > { %p5112_p4 = pneg %p5759_p3  ;;  %p5345_p7 = scmp.ne.s32.totalorder %s691_s6, %s5344_s1 }
  0x23   : > { %p5352_p10 = scmp.lt.s32.totalorder %s691_s6, %s691_s6  ;;  %p5353_p11 = scmp.lt.s32.totalorder %s5344_s1, %s5344_s1 }
  0x24   : > { %p5767_p5 = pnand %p5755_p2, %p5112_p4 }
  0x25   : > { %p5354_p12 = por %p5353_p11, %p5352_p10 }
  0x26   : > { %p5775_p6 = pneg %p5767_p5 }
  0x28   : > { %p5347_p8 = pnand %p5345_p7, %p5775_p6 }
  0x2a   : > { %p5348_p9 = pneg %p5347_p8 }
  0x2c   : > { %p5355_p13 = pnand %p5354_p12, %p5348_p9 }
  0x2e   : > { %5358 = shalt.err (!%p5355_p13)
}
  0x2f   : > { %s6578_s3 = sld [smem:[#allocation26_spill]]  ;;  %s5370_s2 = scalar_lea.vmem %s719_s30, 16 }
  0x30   : > { %p5371_p0 = scmp.ne.s32.totalorder %s719_s30, %s5370_s2  ;;  %s5377_s23 = scalar_lea.vmem %s719_s30, 32 }
  0x31   : > { %p5378_p7 = scmp.lt.s32.totalorder %s719_s30, %s719_s30  ;;  %p5379_p8 = scmp.lt.s32.totalorder %s5377_s23, %s5370_s2 }
  0x32   : > { %p5373_p1 = pnand %p5371_p0, %p5775_p6 }
  0x33   : > { %p5380_p2 = por %p5379_p8, %p5378_p7 }
  0x34   : > { %p5374_p4 = pneg %p5373_p1 }
  0x35   : > { %5118 = dma.hbm_to_vmem [thread:$0]  (!%p5767_p5), %s6578_s3, 64, %s691_s6, [#allocation7]  }
  0x36   : > { %p5381_p3 = pnand %p5380_p2, %p5374_p4 }
  0x38   : > { %5384 = shalt.err (!%p5381_p3)
}
  0x39   : > { %s6579_s18 = sld [smem:[#allocation35_spill]]  ;;  %s5396_s6 = scalar_lea.vmem %s5771_s25, 256 }
  0x3a   : > { %p5397_p9 = scmp.ne.s32.totalorder %s5771_s25, %s5396_s6  ;;  %p5404_p12 = scmp.lt.s32.totalorder %s5771_s25, %s5771_s25 }
  0x3b   : > { %p5405_p13 = scmp.lt.s32.totalorder %s5396_s6, %s5396_s6 }
  0x3c   : > { %p5399_p10 = pnand %p5397_p9, %p5775_p6 }
  0x3d   : > { %p5406_p2 = por %p5405_p13, %p5404_p12 }
  0x3e   : > { %p5400_p11 = pneg %p5399_p10 }
  0x3f   : > { %5124 = dma.hbm_to_vmem [thread:$0]  (!%p5767_p5), %s6579_s18, 16, %s719_s30, [#allocation10]  }
  0x40   : > { %p5407_p3 = pnand %p5406_p2, %p5400_p11 }
  0x42   : > { %5410 = shalt.err (!%p5407_p3)
}
  0x43   : > { %s5586_s23 = smov 64   ;;  %s5587_s27 = smov 4  }
  0x44   : > { %s6580_s21 = sld [smem:[#allocation38_spill]]  ;;  %s49_s28 = sadd.s32 1, %s5577_s26 }
  0x45   : > { %p50_p0 = scmp.ge.s32.totalorder %s49_s28, 2  ;;  %s5588_s7 = smov [#allocation3]  }
  0x46   : > { %s679_s3 = sshll.u32 %s5588_s7, 4  ;;  %s680_s3 = int_to_ptr.vmem [resolvable:$true] %s679_s3 }
  0x47   : > { %s6627_s28 = smov (%p50_p0, %s49_s28), 0  ;;  %s5422_s1 = scalar_lea.vmem %s680_s3, 16 }
  0x48   : > { %6581 = sst [smem:[#allocation23_spill]] %s6627_s28  ;;  %p5423_p1 = scmp.ne.s32.totalorder %s680_s3, %s5422_s1 }
  0x49   : > { %s5429_s6 = scalar_lea.vmem %s680_s3, 32  ;;  %p5430_p8 = scmp.lt.s32.totalorder %s680_s3, %s680_s3 }
  0x4a   : > { %5130 = dma.hbm_to_vmem [thread:$0]  (!%p5767_p5), %s6580_s21, 256, %s5771_s25, [#allocation13], %s5586_s23, %s5586_s23, %s5587_s27  }
  0x4b   : > { %p5425_p4 = pnand %p5423_p1, %p5775_p6  ;;  %p5431_p9 = scmp.lt.s32.totalorder %s5429_s6, %s5422_s1 }
  0x4d   : > { %p5426_p7 = pneg %p5425_p4  ;;  %p5432_p10 = por %p5431_p9, %p5430_p8 }
  0x4f   : > { %p5433_p11 = pnand %p5432_p10, %p5426_p7 }
  0x51   : > { %5436 = shalt.err (!%p5433_p11)
}
  0x52   : > { %s6582_s27 = sld [smem:[#allocation25_spill]]  ;;  %s5589_s2 = smov [#allocation8]  }
  0x53   : > { %s704_s30 = sshll.u32 %s5589_s2, 4  ;;  %s5590_s7 = smov [#allocation11]   ;;  %s705_s30 = int_to_ptr.vmem [resolvable:$true] %s704_s30 }
  0x54   : > { %s732_s18 = sshll.u32 %s5590_s7, 4  ;;  %s5448_s21 = scalar_lea.vmem %s705_s30, 16  ;;  %s733_s18 = int_to_ptr.vmem [resolvable:$true] %s732_s18 }
  0x55   : > { %p5449_p12 = scmp.ne.s32.totalorder %s705_s30, %s5448_s21  ;;  %s5455_s1 = scalar_lea.vmem %s705_s30, 32 }
  0x56   : > { %p5456_p3 = scmp.lt.s32.totalorder %s705_s30, %s705_s30  ;;  %p5457_p0 = scmp.lt.s32.totalorder %s5455_s1, %s5448_s21 }
  0x57   : > { %p5451_p13 = pnand %p5449_p12, %p5775_p6 }
  0x58   : > { %5115 = dma.hbm_to_vmem [thread:$0]  (!%p5767_p5), %s6582_s27, 16, %s680_s3, [#allocation4]  }
  0x59   : > { %p5452_p2 = pneg %p5451_p13  ;;  %p5458_p1 = por %p5457_p0, %p5456_p3 }
  0x5b   : > { %p5459_p4 = pnand %p5458_p1, %p5452_p2 }
  0x5d   : > { %5462 = shalt.err (!%p5459_p4)
}
  0x5e   : > { %s6583_s16 = sld [smem:[#allocation34_spill]]  ;;  %s5474_s25 = scalar_lea.vmem %s733_s18, 16 }
  0x5f   : > { %p5475_p7 = scmp.ne.s32.totalorder %s733_s18, %s5474_s25  ;;  %s5481_s23 = scalar_lea.vmem %s733_s18, 32 }
  0x60   : > { %p5482_p10 = scmp.lt.s32.totalorder %s733_s18, %s733_s18  ;;  %p5483_p11 = scmp.lt.s32.totalorder %s5481_s23, %s5474_s25 }
  0x61   : > { %p5477_p8 = pnand %p5475_p7, %p5775_p6 }
  0x62   : > { %p5484_p12 = por %p5483_p11, %p5482_p10 }
  0x63   : > { %p5478_p9 = pneg %p5477_p8 }
  0x64   : > { %5121 = dma.hbm_to_vmem [thread:$0]  (!%p5767_p5), %s6583_s16, 16, %s705_s30, [#allocation7]  }
  0x65   : > { %p5485_p13 = pnand %p5484_p12, %p5478_p9 }
  0x67   : > { %5488 = shalt.err (!%p5485_p13)
}
  0x68   : > { %s6584_s20 = sld [smem:[#allocation37_spill]]  ;;  %s5591_s2 = smov [#allocation14]  }
  0x69   : > { %s756_s30 = sshll.u32 %s5591_s2, 4  ;;  %s757_s30 = int_to_ptr.vmem [resolvable:$true] %s756_s30 }
  0x6a   : > { %s5500_s7 = scalar_lea.vmem %s757_s30, 16  ;;  %s5507_s1 = scalar_lea.vmem %s757_s30, 32 }
  0x6b   : > { %p5501_p2 = scmp.ne.s32.totalorder %s757_s30, %s5500_s7  ;;  %p5508_p1 = scmp.lt.s32.totalorder %s757_s30, %s757_s30 }
  0x6c   : > { %p5509_p4 = scmp.lt.s32.totalorder %s5507_s1, %s5500_s7 }
  0x6d   : > { %p5503_p3 = pnand %p5501_p2, %p5775_p6 }
  0x6e   : > { %5127 = dma.hbm_to_vmem [thread:$0]  (!%p5767_p5), %s6584_s20, 16, %s733_s18, [#allocation10]  }
  0x6f   : > { %p5504_p0 = pneg %p5503_p3  ;;  %p5510_p7 = por %p5509_p4, %p5508_p1 }
  0x71   : > { %p5511_p8 = pnand %p5510_p7, %p5504_p0 }
  0x73   : > { %5514 = shalt.err (!%p5511_p8)
}
  0x74   : > { %s6585_s22 = sld [smem:[#allocation39_spill]]  ;;  %p6586_p9 = scmp.ne.s32.totalorder %s6575_s0, 0 }
  0x75   : > { %p6587_p10 = scmp.ne.s32.totalorder (!%p6586_p9), %s6574_s29, 0 }
  0x76   : > { %865 = sbr.rel (%p6586_p9) target bundleno = 7012 (0x1b64), region = 112 }
  0x7a   : > { %5133 = dma.hbm_to_vmem [thread:$0]  (!%p5767_p5), %s6585_s22, 16, %s757_s30, [#allocation13]  }
  0x7b   : > { %5552 = dma.done.wait (%p6587_p10), [#allocation4], 16  }
  0x7c   : > { %5554 = vsyncadd (%p6587_p10), [#allocation4], 4294967280 }
  0x7d   : > { %5556 = dma.done.wait (%p6587_p10), [#allocation7], 80  }
  0x7e   : > { %5558 = vsyncadd (%p6587_p10), [#allocation7], 4294967216 }
  0x7f   : > { %5560 = dma.done.wait (%p6587_p10), [#allocation10], 32  }
  0x80   : > { %5562 = vsyncadd (%p6587_p10), [#allocation10], 4294967264 }
  0x81   : > { %5564 = dma.done.wait (%p6587_p10), [#allocation13], 272  }
  0x82   : > { %5566 = vsyncadd (%p6587_p10), [#allocation13], 4294967024  ;;  %p1020_p5 = scmp.lt.s32.totalorder %s5573_s5, 1  ;;  %s6588_s23 = sld [smem:[#allocation27_spill]] }
  0x83   : > { %s6589_s30 = sld [smem:[#allocation28_spill]]  ;;  %p4618_p6 = scmp.ne.s32.totalorder %s5573_s5, 0 }
  0x84   : > { %s1021_s18 = scalar_select %p1020_p5, %s5573_s5, 1 }
  0x85   : > { %s6590_s3 = sld [smem:[#allocation29_spill]] }
  0x86   : > { %s4720_s0 = sshll.u32 %s1021_s18, 5  ;;  %s4721_s8 = sshll.u32 %s1021_s18, 4 }
  0x87   : > { %s4723_s16 = sshll.u32 %s1021_s18, 6  ;;  %s6591_s28 = sld [smem:[#allocation30_spill]] }
  0x88   : > { %s1024_s21 = scalar_lea.vmem %s6588_s23, %s4720_s0  ;;  %s6592_s4 = sld [smem:[#allocation31_spill]] }
  0x89   : > { %s5862_s7 = scalar_lea.vmem %s6589_s30, %s4721_s8  ;;  %v5879_v0 = vld [vmem:[%s1024_s21] sm:$0xff]  ;;  %v5881_v1 = vld [vmem:[%s1024_s21 + $0x8] sm:$0xff]  ;;  %v5883_v2 = vld [vmem:[%s1024_s21 + $0x10] sm:$0xff]  ;;  %s6593_s2 = sld [smem:[#allocation32_spill]] }
  0x8a   : > { %s6594_s9 = sld [smem:[#allocation33_spill]]  ;;  %v5895_v3 = vld [vmem:[%s1024_s21 + $0x18] sm:$0xff]  ;;  %s5910_s27 = scalar_lea.vmem %s6530_s12, %s4721_s8 }
  0x8b   : > { %s5867_s29 = scalar_lea.vmem %s6590_s3, %s4721_s8  ;;  %s5905_s3 = scalar_lea.vmem %s6529_s11, %s4720_s0 }
  0x8c   : > { %s5915_s21 = scalar_lea.vmem %s6531_s13, %s4721_s8  ;;  %s5920_s19 = scalar_lea.vmem %s6532_s14, %s4723_s16 }
  0x8d   : > { %s5872_s26 = scalar_lea.vmem %s6591_s28, %s4723_s16  ;;  %s5900_s28 = scalar_lea.vmem %s6528_s10, %s4721_s8 }
  0x8e   : > { %s5877_s25 = scalar_lea.vmem %s6592_s4, %s4721_s8  ;;  %1092 = sbr.rel (%p4618_p6) target bundleno = 660 (0x294), region = 144 }
  0x8f   : > { %s5888_s18 = scalar_lea.vmem %s6593_s2, %s4721_s8  ;;  %s6595_s1 = sld [smem:[#allocation24_spill]] (!%p4618_p6) }
  0x90   : > { %s5893_s22 = scalar_lea.vmem %s6594_s9, %s4721_s8 }
  0x93   : > { %v1097_v4 = vld [vmem:[#allocation3] sm:$0x1]  ;;  %vm1106_vm0 = vcmask 1040384   ;;  %v5592_v6 = vmov 0.0   ;;  %vm5593_vm1 = vmmov 0   ;;  %vm1102_vm2 = vcmask 15360  }
  0x94   : > { %4830 = vmatprep.subr.bf16.mxu0 %v5592_v6  ;;  %v1108_v7 = vsel %vm1106_vm0, %v1097_v4, 0  ;;  %4832 = vmatprep.mubr.msk.bf16.mxu0 %vm5593_vm1, %v5592_v6  ;;  %v1098_v10 = vlaneseq  ;;  %v1093_v13 = vld [vmem:[#allocation6] sm:$0x7]  ;;  %vm1151_vm3 = vcmask 261120  }
  0x95   : > { %v1094_v5 = vld [vmem:[%s6595_s1] sm:$0xff]  ;;  %v1095_v8 = vld [vmem:[%s6595_s1 + $0x8] sm:$0xff]  ;;  %4831 = vmatpush3.bf16.msra.mxu0 %v1108_v7 }
  0x96   : > { %v1096_v9 = vpack.c.bf16 %v1095_v8, %v1094_v5  ;;  %v1099_v11 = vshrl.u32 %v1098_v10, 7 }
  0x98   : > { %4833 = vmatmul.mubr.msk.bf16.vlgmr.msra.gmra.mxu0 %vm1102_vm2, %v1096_v9  ;;  %v1100_v12 = vsub.s32 0, %v1099_v11  ;;  %v1181_v39 = vsub.s32 1, %v1099_v11  ;;  %v1187_v40 = vsub.s32 2, %v1099_v11 }
  0x9a   : > { %v1101_v14 = vrot.slane %v1093_v13, %v1100_v12  ;;  %v1182_v41 = vrot.slane %v1093_v13, %v1181_v39  ;;  %v1188_v43 = vrot.slane %v1093_v13, %v1187_v40 }
 0x158   : > { %v1144_v15 = vpop.f32.mrf.mxu0 }
 0x159   : > { %v1145_v16 = vadd.f32 %v1144_v15, %v1101_v14 }
 0x15a   : > { %v4834_v17 = vpop.f32.mrf.mxu0 }
 0x15b   : > { %v1152_v18 = vsel %vm1151_vm3, %v1145_v16, 0.0 }
 0x15c   : > { %v1147_v19 = vpop.f32.mrf.mxu0  ;;  %1153 = vadd.xlane.f32.xlu0 %v1152_v18 }
 0x15d   : > { %v1148_v20 = vadd.f32 %v1147_v19, %v1101_v14 }
 0x15e   : > { %v4835_v21 = vpop.f32.mrf.mxu0 }
 0x15f   : > { %v1155_v22 = vsel %vm1151_vm3, %v1148_v20, 0.0 }
 0x160   : > { %1156 = vadd.xlane.f32.xlu0 %v1155_v22 }
 0x1e5   : > { %v1154_v23 = vpop.xlane.xlu0 %1153 }
 0x1e6   : > { %v1159_v24 = vmul.f32 0.03125, %v1154_v23 }
 0x1e8   : > { %v1161_v25 = vsub.f32 %v1145_v16, %v1159_v24 }
 0x1e9   : > { %v1157_v26 = vpop.xlane.xlu0 %1156 }
 0x1ea   : > { %v1160_v27 = vmul.f32 0.03125, %v1157_v26  ;;  %v1163_v28 = vmul.f32 %v1161_v25, %v1161_v25 }
 0x1ec   : > { %v1162_v29 = vsub.f32 %v1148_v20, %v1160_v27  ;;  %v1165_v30 = vsel %vm1151_vm3, %v1163_v28, 0.0 }
 0x1ed   : > { %1166 = vadd.xlane.f32.xlu1 %v1165_v30 }
 0x1ee   : > { %v1164_v31 = vmul.f32 %v1162_v29, %v1162_v29 }
 0x1f0   : > { %v1168_v32 = vsel %vm1151_vm3, %v1164_v31, 0.0 }
 0x1f1   : > { %1169 = vadd.xlane.f32.xlu1 %v1168_v32 }
 0x276   : > { %v1167_v33 = vpop.xlane.xlu1 %1166 }
 0x277   : > { %v1171_v34 = vmul.f32 0.03125, %v1167_v33 }
 0x279   : > { %v1173_v35 = vadd.f32 1e-05, %v1171_v34 }
 0x27a   : > { %v1170_v36 = vpop.xlane.xlu1 %1169 }
 0x27b   : > { %5201 = vrsqrt.f32 %v1173_v35  ;;  %v1172_v37 = vmul.f32 0.03125, %v1170_v36 }
 0x27d   : > { %v1174_v38 = vadd.f32 1e-05, %v1172_v37 }
 0x27f   : > { %5203 = vrsqrt.f32 %v1174_v38 }
 0x288   : > { %v5202_v42 = vpop.eup %5201 }
 0x289   : > { %v1177_v44 = vmul.f32 %v5202_v42, %v1161_v25 }
 0x28b   : > { %v1183_v45 = vmul.f32 %v1182_v41, %v1177_v44 }
 0x28c   : > { %v5204_v46 = vpop.eup %5203 }
 0x28d   : > { %v1189_v47 = vadd.f32 %v1188_v43, %v1183_v45  ;;  %v1178_v48 = vmul.f32 %v5204_v46, %v1162_v29 }
 0x28f   : > { %1191 = vst.msk [vmem:[#allocation2] sm:$0xff] %vm1151_vm3, %v1189_v47  ;;  %v1184_v49 = vmul.f32 %v1182_v41, %v1178_v48 }
 0x291   : > { %v1190_v50 = vadd.f32 %v1188_v43, %v1184_v49 }
 0x293   : > { %1192 = vst.msk [vmem:[#allocation2 + $0x8] sm:$0xff] %vm1151_vm3, %v1190_v50 }
 0x294 PF: > { %vm6551_vm4 = vcmask 261120   ;;  %v5205_v5 = vld [vmem:[%s5862_s7 + $0x8] sm:$0xff]   ;;  %v5594_v7 = vmov 0.0   ;;  %v5207_v8 = vld [vmem:[%s5862_s7] sm:$0xff]   ;;  %vm6552_vm5 = vmmov 0   ;;  %v1247_v16 = vlaneseq  ;;  %v5209_v31 = vld [vmem:[%s5872_s26 + $0x38] sm:$0xff]  }
 0x295   : > { %v5206_v6 = vld [vmem:[%s5867_s29 + $0x8] sm:$0xff]   ;;  %4836 = vmatprep.subr.bf16.mxu0 %v5594_v7  ;;  %4844 = vmatprep.subr.bf16.mxu1 %v5594_v7  ;;  %v5208_v9 = vld [vmem:[%s5867_s29] sm:$0xff]   ;;  %v5210_v32 = vld [vmem:[%s5872_s26 + $0x30] sm:$0xff]   ;;  %s5596_s9 = smov 96   ;;  %vm1600_vm6 = vcmask 64512   ;;  %s5597_s16 = smov 64  }
 0x296   : > { %v5935_v51 = vld [vmem:[#allocation2] sm:$0xff]  ;;  %4837 = vmatpush3.bf16.msra.mxu0 %v5205_v5  ;;  %4845 = vmatpush3.bf16.msra.mxu1 %v5206_v6  ;;  %v5961_v17 = vshrl.u32 %v1247_v16, 7  ;;  %v5211_v33 = vld [vmem:[%s5872_s26 + $0x28] sm:$0xff]   ;;  %v5213_v35 = vld [vmem:[%s5872_s26 + $0x18] sm:$0xff]   ;;  %s5599_s7 = smov 120   ;;  %s5600_s29 = smov 80  }
 0x297   : > { %v1220_v53 = vsel %vm6551_vm4, %v5935_v51, 0.0  ;;  %4838 = vmatprep.subr.bf16.mxu0 %v5594_v7  ;;  %4846 = vmatprep.subr.bf16.mxu1 %v5594_v7  ;;  %v5212_v34 = vld [vmem:[%s5872_s26 + $0x20] sm:$0xff]   ;;  %v5214_v36 = vld [vmem:[%s5872_s26 + $0x10] sm:$0xff]   ;;  %v5215_v37 = vld [vmem:[%s5872_s26 + $0x8] sm:$0xff]   ;;  %vm1932_vm7 = vcmask 1043456   ;;  %s5602_s4 = smov 112  }
 0x298   : > { %1221 = vadd.xlane.f32.xlu0 %v1220_v53  ;;  %4840 = vmatprep.mubr.msk.bf16.mxu0 %vm6552_vm5, %v5594_v7  ;;  %v5964_v18 = vsub.s32 0, %v5961_v17  ;;  %v5969_v22 = vsub.s32 1, %v5961_v17  ;;  %v5216_v38 = vld [vmem:[%s5872_s26] sm:$0xff]   ;;  %v5996_v39 = vsub.s32 3, %v5961_v17  ;;  %s5598_s26 = smov 88   ;;  %s5603_s23 = smov 48  }
 0x299   : > { %4848 = vmatprep.mubr.msk.bf16.mxu1 %vm6552_vm5, %v5594_v7  ;;  %s5604_s2 = smov 72   ;;  %s5605_s30 = smov 104   ;;  %vm3347_vm8 = vcmp.lt.s32.totalorder %v5961_v17, 3  ;;  %vm3374_vm9 = vcmp.lt.s32.totalorder %v5961_v17, 2  ;;  %vm3401_vm11 = vcmp.lt.s32.totalorder %v5961_v17, 1  ;;  %vm3448_vm1 = vcmp.lt.s32.totalorder %v5961_v17, 7 }
 0x29a   : > { %v5937_v52 = vld [vmem:[#allocation2 + $0x8] sm:$0xff]  ;;  %4839 = vmatpush3.bf16.msra.mxu0 %v5207_v8  ;;  %4847 = vmatpush3.bf16.msra.mxu1 %v5208_v9  ;;  %v1250_v21 = vrot.slane %v5879_v0, %v5964_v18  ;;  %v1256_v26 = vrot.slane %v5879_v0, %v5969_v22  ;;  %v1323_v40 = vrot.slane %v5879_v0, %v5996_v39  ;;  %v6008_v9 = vsub.s32 4, %v5961_v17  ;;  %s5606_s20 = smov 40   ;;  %p4698_p11 = scmp.ne.s32.totalorder %s5573_s5, 1 }
 0x29b   : > { %v1223_v54 = vsel %vm6551_vm4, %v5937_v52, 0.0  ;;  %4852 = vmatprep.subr.bf16.mxu0 %v5594_v7  ;;  %4872 = vmatprep.subr.bf16.mxu1 %v5594_v7  ;;  %s6613_s0 = sld [smem:[#allocation36_spill]] (!%p4698_p11) }
 0x29c   : > { %1224 = vadd.xlane.f32.xlu0 %v1223_v54 }
 0x321   : > { %v1222_v55 = vpop.xlane.xlu0 %1221 }
 0x322   : > { %v1227_v56 = vmul.f32 0.03125, %v1222_v55 }
 0x324   : > { %v1229_v57 = vsub.f32 %v5935_v51, %v1227_v56 }
 0x325   : > { %v1225_v58 = vpop.xlane.xlu0 %1224 }
 0x326   : > { %v1228_v59 = vmul.f32 0.03125, %v1225_v58  ;;  %v1231_v60 = vmul.f32 %v1229_v57, %v1229_v57 }
 0x328   : > { %v1230_v61 = vsub.f32 %v5937_v52, %v1228_v59  ;;  %v1233_v62 = vsel %vm6551_vm4, %v1231_v60, 0.0  ;;  %v6001_v59 = vsub.s32 2, %v5961_v17 }
 0x329   : > { %1234 = vadd.xlane.f32.xlu1 %v1233_v62 }
 0x32a   : > { %v1232_v63 = vmul.f32 %v1230_v61, %v1230_v61  ;;  %v1263_v60 = vrot.slane %v5879_v0, %v6001_v59 }
 0x32c   : > { %v1236_v4 = vsel %vm6551_vm4, %v1232_v63, 0.0 }
 0x32d   : > { %1237 = vadd.xlane.f32.xlu1 %v1236_v4 }
 0x3b2   : > { %v1235_v10 = vpop.xlane.xlu1 %1234 }
 0x3b3   : > { %v1239_v11 = vmul.f32 0.03125, %v1235_v10  ;;  %v1395_v10 = vrot.slane %v5879_v0, %v6008_v9 }
 0x3b5   : > { %v1241_v12 = vadd.f32 1e-05, %v1239_v11 }
 0x3b6   : > { %v1238_v13 = vpop.xlane.xlu1 %1237 }
 0x3b7   : > { %5239 = vrsqrt.f32 %v1241_v12  ;;  %v1240_v14 = vmul.f32 0.03125, %v1238_v13 }
 0x3b9   : > { %v1242_v15 = vadd.f32 1e-05, %v1240_v14 }
 0x3bb   : > { %5241 = vrsqrt.f32 %v1242_v15 }
 0x3c4   : > { %v5240_v19 = vpop.eup %5239 }
 0x3c5   : > { %v1245_v20 = vmul.f32 %v5240_v19, %v1229_v57 }
 0x3c7   : > { %v1251_v25 = vmul.f32 %v1250_v21, %v1245_v20 }
 0x3c8   : > { %v5242_v23 = vpop.eup %5241 }
 0x3c9   : > { %v1246_v24 = vmul.f32 %v5242_v23, %v1230_v61  ;;  %v1257_v28 = vadd.f32 %v1256_v26, %v1251_v25 }
 0x3cb   : > { %v1252_v27 = vmul.f32 %v1250_v21, %v1246_v24 }
 0x3cd   : > { %v1258_v29 = vadd.f32 %v1256_v26, %v1252_v27 }
 0x3cf   : > { %v1259_v30 = vpack.c.bf16 %v1258_v29, %v1257_v28 }
 0x3d1   : > { %4841 = vmatmul.mubr.msk.bf16.vlgmr.msra.gmra.mxu0 %vm6551_vm4, %v1259_v30  ;;  %4849 = vmatmul.mubr.msk.bf16.vlgmr.msra.gmra.mxu1 %vm6551_vm4, %v1259_v30 }
 0x3d2   : > { %4868 = vmatprep.mubr.msk.bf16.mxu0 %vm6552_vm5, %v5594_v7  ;;  %4876 = vmatprep.mubr.msk.bf16.mxu1 %vm6552_vm5, %v5594_v7 }
 0x3d3   : > { %4853 = vmatpush3.bf16.msra.mxu0 %v5209_v31 }
 0x3d4   : > { %4854 = vmatprep.subr.bf16.mxu0 %v5594_v7 }
 0x3d7   : > { %4855 = vmatpush3.bf16.msra.mxu0 %v5210_v32 }
 0x3d8   : > { %4856 = vmatprep.subr.bf16.mxu0 %v5594_v7 }
 0x3db   : > { %4857 = vmatpush3.bf16.msra.mxu0 %v5211_v33 }
 0x3dc   : > { %4858 = vmatprep.subr.bf16.mxu0 %v5594_v7 }
 0x3df   : > { %4859 = vmatpush3.bf16.msra.mxu0 %v5212_v34  ;;  %v5217_v34 = vld [vmem:[%s5877_s25 + $0x8] sm:$0xff]  }
 0x3e0   : > { %4860 = vmatprep.subr.bf16.mxu0 %v5594_v7  ;;  %4873 = vmatpush3.bf16.msra.mxu1 %v5217_v34 }
 0x3e1   : > { %4874 = vmatprep.subr.bf16.mxu1 %v5594_v7 }
 0x3e3   : > { %4861 = vmatpush3.bf16.msra.mxu0 %v5213_v35  ;;  %v5218_v35 = vld [vmem:[%s5877_s25] sm:$0xff]   ;;  %s5601_s25 = smov 56  }
 0x3e4   : > { %4862 = vmatprep.subr.bf16.mxu0 %v5594_v7  ;;  %4875 = vmatpush3.bf16.msra.mxu1 %v5218_v35 }
 0x3e5   : > { %4880 = vmatprep.subr.mxu1 %v5594_v7 }
 0x3e7   : > { %4863 = vmatpush3.bf16.msra.mxu0 %v5214_v36 }
 0x3e8   : > { %4864 = vmatprep.subr.bf16.mxu0 %v5594_v7 }
 0x3eb   : > { %4865 = vmatpush3.bf16.msra.mxu0 %v5215_v37 }
 0x3ec   : > { %4866 = vmatprep.subr.bf16.mxu0 %v5594_v7 }
 0x3ef   : > { %4867 = vmatpush3.bf16.msra.mxu0 %v5216_v38 }
 0x3f0   : > { %4906 = vmatprep.subr.mxu0 %v5594_v7 }
 0x491   : > { %v1313_v41 = vpop.f32.mrf.mxu0  ;;  %v1370_v42 = vpop.f32.mrf.mxu1 }
 0x492   : > { %v1371_v43 = vadd.f32 %v1370_v42, %v1323_v40  ;;  %v1314_v62 = vadd.f32 %v1313_v41, %v1263_v60 }
 0x493   : > { %v4842_v44 = vpop.f32.mrf.mxu0  ;;  %v4850_v45 = vpop.f32.mrf.mxu1 }
 0x494   : > { %v4626_v46 = vmul.f32 -1.442695, %v1371_v43  ;;  %v6031_v43 = vsub.s32 5, %v5961_v17 }
 0x495   : > { %v1316_v47 = vpop.f32.mrf.mxu0  ;;  %v1373_v48 = vpop.f32.mrf.mxu1 }
 0x496   : > { %5243 = vpow2.f32 %v4626_v46  ;;  %v1374_v49 = vadd.f32 %v1373_v48, %v1323_v40  ;;  %v1317_v63 = vadd.f32 %v1316_v47, %v1263_v60  ;;  %v1526_v46 = vrot.slane %v5879_v0, %v6031_v43 }
 0x497   : > { %v4843_v50 = vpop.f32.mrf.mxu0  ;;  %v4851_v53 = vpop.f32.mrf.mxu1  ;;  %v6036_v47 = vsub.s32 6, %v5961_v17 }
 0x498   : > { %v4627_v54 = vmul.f32 -1.442695, %v1374_v49 }
 0x499   : > { %v1532_v53 = vrot.slane %v5879_v0, %v6036_v47 }
 0x49a   : > { %5245 = vpow2.f32 %v4627_v54 }
 0x4a3   : > { %v5244_v55 = vpop.eup %5243 }
 0x4a4   : > { %v1383_v56 = vadd.f32 1.0, %v5244_v55 }
 0x4a6   : > { %5247 = vrcp.f32 %v1383_v56 }
 0x4a7   : > { %v5246_v57 = vpop.eup %5245 }
 0x4a8   : > { %v1384_v58 = vadd.f32 1.0, %v5246_v57 }
 0x4aa   : > { %5249 = vrcp.f32 %v1384_v58 }
 0x4b3   : > { %v5248_v61 = vpop.eup %5247 }
 0x4b4   : > { %v1389_v5 = vmul.f32 %v5248_v61, %v1314_v62 }
 0x4b7   : > { %v5250_v4 = vpop.eup %5249 }
 0x4b8   : > { %v1390_v6 = vmul.f32 %v5250_v4, %v1317_v63 }
 0x4ba   : > { %v1391_v8 = vpack.c.bf16 %v1390_v6, %v1389_v5 }
 0x4bc   : > { %4869 = vmatmul.mubr.bf16.vlgmr.msra.gmra.mxu0 %v1391_v8 }
 0x4bd   : > { %4908 = vmatprep.mubr.msk.f32.mxu0 %vm6552_vm5, %v5594_v7 }
 0x57c   : > { %v1478_v11 = vpop.f32.mrf.mxu0 }
 0x57d   : > { %v1479_v12 = vadd.f32 %v1478_v11, %v1395_v10 }
 0x57e   : > { %v4870_v13 = vpop.f32.mrf.mxu0 }
 0x57f   : > { %v1485_v14 = vmul.f32 0.5, %v1479_v12 }
 0x580   : > { %v1481_v15 = vpop.f32.mrf.mxu0 }
 0x581   : > { %v6013_v16 = vadd.f32 %v1485_v14, %v5935_v51  ;;  %v1482_v19 = vadd.f32 %v1481_v15, %v1395_v10 }
 0x582   : > { %v4871_v20 = vpop.f32.mrf.mxu0 }
 0x583   : > { %v1486_v21 = vmul.f32 0.5, %v1482_v19  ;;  %v1497_v23 = vsel %vm6551_vm4, %v6013_v16, 0.0 }
 0x584   : > { %1498 = vadd.xlane.f32.xlu0 %v1497_v23 }
 0x585   : > { %v6018_v24 = vadd.f32 %v1486_v21, %v5937_v52 }
 0x587   : > { %v1500_v25 = vsel %vm6551_vm4, %v6018_v24, 0.0 }
 0x588   : > { %1501 = vadd.xlane.f32.xlu1 %v1500_v25 }
 0x60d   : > { %v1499_v26 = vpop.xlane.xlu0 %1498 }
 0x60e   : > { %v1503_v27 = vmul.f32 0.03125, %v1499_v26 }
 0x610   : > { %v1505_v51 = vsub.f32 %v6013_v16, %v1503_v27 }
 0x611   : > { %v1502_v28 = vpop.xlane.xlu1 %1501 }
 0x612   : > { %v1504_v29 = vmul.f32 0.03125, %v1502_v28  ;;  %v1507_v30 = vmul.f32 %v1505_v51, %v1505_v51 }
 0x614   : > { %v1506_v31 = vsub.f32 %v6018_v24, %v1504_v29  ;;  %v1509_v32 = vsel %vm6551_vm4, %v1507_v30, 0.0 }
 0x615   : > { %1510 = vadd.xlane.f32.xlu0 %v1509_v32 }
 0x616   : > { %v1508_v33 = vmul.f32 %v1506_v31, %v1506_v31 }
 0x618   : > { %v1512_v52 = vsel %vm6551_vm4, %v1508_v33, 0.0 }
 0x619   : > { %1513 = vadd.xlane.f32.xlu1 %v1512_v52 }
 0x69e   : > { %v1511_v36 = vpop.xlane.xlu0 %1510 }
 0x69f   : > { %v1515_v37 = vmul.f32 0.03125, %v1511_v36  ;;  %v1493_v36 = vld [vmem:[%s5888_s18] sm:$0xf] }
 0x6a1   : > { %v1517_v38 = vadd.f32 1e-05, %v1515_v37  ;;  %v1934_v37 = vsel %vm1932_vm7, %v1493_v36, 0 }
 0x6a2   : > { %v1514_v40 = vpop.xlane.xlu1 %1513 }
 0x6a3   : > { %5251 = vrsqrt.f32 %v1517_v38  ;;  %v1516_v41 = vmul.f32 0.03125, %v1514_v40 }
 0x6a5   : > { %v1518_v42 = vadd.f32 1e-05, %v1516_v41 }
 0x6a7   : > { %5253 = vrsqrt.f32 %v1518_v42 }
 0x6b0   : > { %v5252_v44 = vpop.eup %5251 }
 0x6b1   : > { %v1521_v45 = vmul.f32 %v5252_v44, %v1505_v51 }
 0x6b3   : > { %v1527_v50 = vmul.f32 %v1526_v46, %v1521_v45 }
 0x6b4   : > { %v5254_v48 = vpop.eup %5253 }
 0x6b5   : > { %v1522_v49 = vmul.f32 %v5254_v48, %v1506_v31  ;;  %v1533_v55 = vadd.f32 %v1532_v53, %v1527_v50 }
 0x6b7   : > { %v1528_v54 = vmul.f32 %v1526_v46, %v1522_v49 }
 0x6b9   : > { %v1534_v56 = vadd.f32 %v1532_v53, %v1528_v54 }
 0x6bb   : > { %v1535_v57 = vpack.c.bf16 %v1534_v56, %v1533_v55 }
 0x6bd   : > { %4877 = vmatmul.mubr.msk.bf16.vlgmr.msra.gmra.mxu1 %vm6551_vm4, %v1535_v57 }
 0x6be   : > { %4882 = vmatprep.mubr.msk.f32.mxu1 %vm6552_vm5, %v5594_v7 }
 0x77d   : > { %v6043_v58 = vpop.f32.mrf.mxu1 }
 0x77e   : > { %1598 = vrot.lane.b32.xlu0 %v6043_v58, %s5596_s9 }
 0x77f   : > { %v4878_v60 = vpop.f32.mrf.mxu1 }
 0x781   : > { %v6046_v61 = vpop.f32.mrf.mxu1 }
 0x782   : > { %1676 = vrot.lane.b32.xlu1 %v6046_v61, %s5596_s9 }
 0x783   : > { %v4879_v62 = vpop.f32.mrf.mxu1 }
 0x7f0   : > { %v1599_v63 = vpop.permute.xlu0 %1598 }
 0x7f1   : > { %4881 = vmatpush3.xpose.msk.msra.mxu1 %vm1600_vm6, %v1599_v63 }
 0x7f2   : > { %4885 = vmatprep.subr.mxu1 %v5594_v7 }
 0x7f4   : > { %4883 = vmatmul.mubr.msk.f32.vlgmr.msra.gmra.mxu1 %vm1600_vm6, %v6043_v58  ;;  %v1677_v4 = vpop.permute.xlu1 %1676 }
 0x7f5   : > { %4886 = vmatpush3.xpose.msk.msra.mxu1 %vm1600_vm6, %v1677_v4  ;;  %4887 = vmatprep.mubr.msk.f32.mxu1 %vm6552_vm5, %v5594_v7 }
 0x7f6   : > { %4890 = vmatprep.subr.mxu1 %v5594_v7 }
 0x7f8   : > { %4888 = vmatmul.mubr.msk.f32.vlgmr.msra.gmra.mxu1 %vm1600_vm6, %v6046_v61 }
 0x7f9   : > { %4892 = vmatprep.mubr.msk.f32.mxu1 %vm6552_vm5, %v5594_v7 }
 0x8b4   : > { %v1671_v5 = vpop.f32.mrf.mxu1 }
 0x8b5   : > { %v1752_v6 = vmul.f32 0.35355338, %v1671_v5 }
 0x8b6   : > { %v4884_v8 = vpop.f32.mrf.mxu1 }
 0x8b7   : > { %v1754_v10 = vsel %vm1600_vm6, %v1752_v6, -inf }
 0x8b8   : > { %1755 = vmax.xlane.f32.xlu1 %v1754_v10  ;;  %v1748_v11 = vpop.f32.mrf.mxu1 }
 0x8b9   : > { %v1753_v12 = vmul.f32 0.35355338, %v1748_v11 }
 0x8ba   : > { %v4889_v13 = vpop.f32.mrf.mxu1 }
 0x8bb   : > { %v1757_v14 = vsel %vm1600_vm6, %v1753_v12, -inf }
 0x8bc   : > { %1758 = vmax.xlane.f32.xlu0 %v1757_v14 }
 0x941   : > { %v1756_v15 = vpop.xlane.xlu1 %1755 }
 0x942   : > { %v1760_v19 = vsub.f32 %v1752_v6, %v1756_v15 }
 0x944   : > { %v1762_v20 = vmul.f32 1.442695, %v1760_v19 }
 0x945   : > { %v1759_v21 = vpop.xlane.xlu0 %1758 }
 0x946   : > { %5255 = vpow2.f32 %v1762_v20  ;;  %v1761_v23 = vsub.f32 %v1753_v12, %v1759_v21 }
 0x948   : > { %v1764_v25 = vmul.f32 1.442695, %v1761_v23 }
 0x94a   : > { %5257 = vpow2.f32 %v1764_v25 }
 0x953   : > { %v5256_v26 = vpop.eup %5255 }
 0x954   : > { %v1766_v27 = vsel %vm1600_vm6, %v5256_v26, 0.0 }
 0x955   : > { %1767 = vadd.xlane.f32.xlu0 %v1766_v27 }
 0x957   : > { %v5258_v51 = vpop.eup %5257 }
 0x958   : > { %v1769_v28 = vsel %vm1600_vm6, %v5258_v51, 0.0 }
 0x959   : > { %1770 = vadd.xlane.f32.xlu1 %v1769_v28 }
 0x96a   : > { %1852 = vrot.lane.b32.xlu1 %v6046_v61, %s5597_s16 }
 0x96b   : > { %1776 = vrot.lane.b32.xlu0 %v6043_v58, %s5597_s16 }
 0x96e   : > { %2059 = vrot.lane.b32.xlu1 %v6046_v61, %s5598_s26 }
 0x972   : > { %2057 = vrot.lane.b32.xlu1 %v6046_v61, %s5599_s7 }
 0x976   : > { %1979 = vrot.lane.b32.xlu1 %v6043_v58, %s5599_s7  ;;  %s6618_s7 = sld [smem:[#allocation41_spill]] (!%p4698_p11) }
 0x97a   : > { %2363 = vrot.lane.b32.xlu1 %v6043_v58, %s5600_s29 }
 0x9de   : > { %v1768_v29 = vpop.xlane.xlu0 %1767 }
 0x9df   : > { %5259 = vrcp.f32 %v1768_v29 }
 0x9e2   : > { %v1771_v30 = vpop.xlane.xlu1 %1770  ;;  %v1777_v31 = vpop.permute.xlu0 %1776 }
 0x9e3   : > { %5261 = vrcp.f32 %v1771_v30  ;;  %4891 = vmatpush3.msra.mxu1 %v1777_v31 }
 0x9e4   : > { %4895 = vmatprep.subr.mxu1 %v5594_v7 }
 0x9e6   : > { %v1853_v52 = vpop.permute.xlu1 %1852 }
 0x9ea   : > { %v2060_v45 = vpop.permute.xlu1 %2059 }
 0x9ec   : > { %v5260_v32 = vpop.eup %5259 }
 0x9ed   : > { %v1774_v33 = vmul.f32 %v5260_v32, %v5256_v26 }
 0x9ee   : > { %v2058_v46 = vpop.permute.xlu1 %2057 }
 0x9ef   : > { %4893 = vmatmul.mubr.msk.f32.vlgmr.msra.gmra.mxu1 %vm1600_vm6, %v1774_v33 }
 0x9f0   : > { %v5262_v34 = vpop.eup %5261  ;;  %4896 = vmatpush3.msra.mxu1 %v1853_v52  ;;  %4897 = vmatprep.mubr.msk.f32.mxu1 %vm6552_vm5, %v5594_v7 }
 0x9f1   : > { %v1775_v35 = vmul.f32 %v5262_v34, %v5258_v51  ;;  %4900 = vmatprep.subr.bf16.mxu1 %v5594_v7 }
 0x9f2   : > { %v1980_v5 = vpop.permute.xlu1 %1979 }
 0x9f3   : > { %4898 = vmatmul.mubr.msk.f32.vlgmr.msra.gmra.mxu1 %vm1600_vm6, %v1775_v35 }
 0x9f4   : > { %4902 = vmatprep.mubr.msk.bf16.mxu1 %vm6552_vm5, %v5594_v7  ;;  %4901 = vmatpush3.bf16.msra.mxu1 %v1934_v37 }
 0x9f5   : > { %4911 = vmatprep.subr.mxu1 %v5594_v7 }
 0x9f6   : > { %v2364_v11 = vpop.permute.xlu1 %2363 }
 0xaaf   : > { %v1848_v38 = vpop.f32.mrf.mxu1 }
 0xab1   : > { %v4894_v40 = vpop.f32.mrf.mxu1 }
 0xab3   : > { %v1924_v41 = vpop.f32.mrf.mxu1 }
 0xab4   : > { %v1928_v42 = vpack.c.bf16 %v1924_v41, %v1848_v38 }
 0xab5   : > { %v4899_v44 = vpop.f32.mrf.mxu1 }
 0xab6   : > { %4903 = vmatmul.mubr.msk.bf16.vlgmr.msra.gmra.mxu1 %vm1600_vm6, %v1928_v42 }
 0xab7   : > { %4912 = vmatpush3.xpose.msk.msra.mxu1 %vm1600_vm6, %v2060_v45  ;;  %4913 = vmatprep.mubr.msk.f32.mxu1 %vm6552_vm5, %v5594_v7 }
 0xab8   : > { %4921 = vmatprep.subr.mxu1 %v5594_v7 }
 0xabe   : > { %4914 = vmatmul.mubr.msk.f32.vlgmr.msra.gmra.mxu1 %vm1600_vm6, %v2058_v46 }
 0xabf   : > { %4923 = vmatprep.mubr.msk.f32.mxu1 %vm6552_vm5, %v5594_v7 }
 0xb76   : > { %v6092_v48 = vpop.f32.mrf.mxu1 }
 0xb78   : > { %v4904_v49 = vpop.f32.mrf.mxu1 }
 0xb7a   : > { %v6094_v50 = vpop.f32.mrf.mxu1 }
 0xb7c   : > { %v4905_v53 = vpop.f32.mrf.mxu1 }
 0xb7e   : > { %v2131_v54 = vpop.f32.mrf.mxu1 }
 0xb7f   : > { %v2136_v55 = vmul.f32 0.35355338, %v2131_v54 }
 0xb80   : > { %v4915_v56 = vpop.f32.mrf.mxu1 }
 0xb81   : > { %v2140_v57 = vsel %vm1600_vm6, %v2136_v55, -inf }
 0xb82   : > { %2141 = vmax.xlane.f32.xlu0 %v2140_v57  ;;  %v1494_v57 = vld [vmem:[%s5888_s18 + $0x4] sm:$0xf] }
 0xb98   : > { %1981 = vrot.lane.b32.xlu0 %v6043_v58, %s5598_s26 }
 0xb9c   : > { %2235 = vrot.lane.b32.xlu0 %v6046_v61, %s5601_s25 }
 0xba0   : > { %2361 = vrot.lane.b32.xlu0 %v6043_v58, %s5602_s4 }
 0xba4   : > { %2439 = vrot.lane.b32.xlu0 %v6046_v61, %s5602_s4 }
 0xc0b   : > { %v2142_v60 = vpop.xlane.xlu0 %2141 }
 0xc0c   : > { %v2144_v62 = vsub.f32 %v2136_v55, %v2142_v60  ;;  %v2316_v60 = vsel %vm1932_vm7, %v1494_v57, 0 }
 0xc0e   : > { %v2147_v63 = vmul.f32 1.442695, %v2144_v62 }
 0xc0f   : > { %v1982_v4 = vpop.permute.xlu0 %1981 }
 0xc10   : > { %5263 = vpow2.f32 %v2147_v63  ;;  %4907 = vmatpush3.xpose.msk.msra.mxu0 %vm1600_vm6, %v1982_v4 }
 0xc11   : > { %4916 = vmatprep.subr.mxu0 %v5594_v7 }
 0xc13   : > { %4909 = vmatmul.mubr.msk.f32.vlgmr.msra.gmra.mxu0 %vm1600_vm6, %v1980_v5  ;;  %v2236_v6 = vpop.permute.xlu0 %2235 }
 0xc14   : > { %4922 = vmatpush3.msra.mxu1 %v2236_v6  ;;  %4918 = vmatprep.mubr.msk.f32.mxu0 %vm6552_vm5, %v5594_v7 }
 0xc15   : > { %4932 = vmatprep.subr.mxu1 %v5594_v7 }
 0xc17   : > { %v2362_v15 = vpop.permute.xlu0 %2361 }
 0xc1b   : > { %v2440_v20 = vpop.permute.xlu0 %2439 }
 0xc1d   : > { %v5264_v8 = vpop.eup %5263 }
 0xc1e   : > { %v2152_v10 = vsel %vm1600_vm6, %v5264_v8, 0.0 }
 0xc1f   : > { %2153 = vadd.xlane.f32.xlu1 %v2152_v10 }
 0xc30   : > { %2441 = vrot.lane.b32.xlu1 %v6046_v61, %s5600_s29 }
 0xca8   : > { %v2154_v12 = vpop.xlane.xlu1 %2153 }
 0xca9   : > { %5265 = vrcp.f32 %v2154_v12 }
 0xcac   : > { %v2442_v19 = vpop.permute.xlu1 %2441 }
 0xcb6   : > { %v5266_v13 = vpop.eup %5265 }
 0xcb7   : > { %v2158_v14 = vmul.f32 %v5266_v13, %v5264_v8 }
 0xcb9   : > { %4924 = vmatmul.mubr.msk.f32.vlgmr.msra.gmra.mxu1 %vm1600_vm6, %v2158_v14 }
 0xcba   : > { %4933 = vmatpush3.xpose.msk.msra.mxu1 %vm1600_vm6, %v2364_v11  ;;  %4934 = vmatprep.mubr.msk.f32.mxu1 %vm6552_vm5, %v5594_v7 }
 0xcbb   : > { %4937 = vmatprep.subr.mxu1 %v5594_v7 }
 0xcbd   : > { %4935 = vmatmul.mubr.msk.f32.vlgmr.msra.gmra.mxu1 %vm1600_vm6, %v2362_v15 }
 0xcbe   : > { %4938 = vmatpush3.xpose.msk.msra.mxu1 %vm1600_vm6, %v2442_v19  ;;  %4939 = vmatprep.mubr.msk.f32.mxu1 %vm6552_vm5, %v5594_v7 }
 0xcbf   : > { %4947 = vmatprep.subr.mxu1 %v5594_v7 }
 0xcc1   : > { %4940 = vmatmul.mubr.msk.f32.vlgmr.msra.gmra.mxu1 %vm1600_vm6, %v2440_v20 }
 0xcc2   : > { %4949 = vmatprep.mubr.msk.f32.mxu1 %vm6552_vm5, %v5594_v7 }
 0xcd3   : > { %v2053_v21 = vpop.f32.mrf.mxu0 }
 0xcd4   : > { %v2135_v23 = vmul.f32 0.35355338, %v2053_v21 }
 0xcd5   : > { %v4910_v25 = vpop.f32.mrf.mxu0 }
 0xcd6   : > { %v2137_v26 = vsel %vm1600_vm6, %v2135_v23, -inf }
 0xcd7   : > { %2138 = vmax.xlane.f32.xlu1 %v2137_v26 }
 0xce8   : > { %2617 = vrot.lane.b32.xlu1 %v6046_v61, %s5603_s23 }
 0xcec   : > { %2745 = vrot.lane.b32.xlu1 %v6043_v58, %s5604_s2 }
 0xd60   : > { %v2139_v27 = vpop.xlane.xlu1 %2138 }
 0xd61   : > { %v2143_v28 = vsub.f32 %v2135_v23, %v2139_v27 }
 0xd63   : > { %v2145_v29 = vmul.f32 1.442695, %v2143_v28 }
 0xd64   : > { %v2618_v51 = vpop.permute.xlu1 %2617 }
 0xd65   : > { %4948 = vmatpush3.msra.mxu1 %v2618_v51  ;;  %5267 = vpow2.f32 %v2145_v29 }
 0xd66   : > { %4958 = vmatprep.subr.mxu1 %v5594_v7 }
 0xd68   : > { %v2746_v62 = vpop.permute.xlu1 %2745 }
 0xd72   : > { %v5268_v37 = vpop.eup %5267 }
 0xd73   : > { %v2149_v38 = vsel %vm1600_vm6, %v5268_v37, 0.0 }
 0xd79   : > { %v6131_v30 = vpop.f32.mrf.mxu1 }
 0xd7b   : > { %v4925_v31 = vpop.f32.mrf.mxu1 }
 0xd7d   : > { %v2435_v32 = vpop.f32.mrf.mxu1 }
 0xd7e   : > { %v2517_v55 = vmul.f32 0.35355338, %v2435_v32 }
 0xd7f   : > { %v4936_v33 = vpop.f32.mrf.mxu1 }
 0xd80   : > { %v2519_v56 = vsel %vm1600_vm6, %v2517_v55, -inf }
 0xd81   : > { %v2513_v52 = vpop.f32.mrf.mxu1 }
 0xd82   : > { %v2518_v34 = vmul.f32 0.35355338, %v2513_v52 }
 0xd83   : > { %v4941_v35 = vpop.f32.mrf.mxu1 }
 0xd84   : > { %v2522_v36 = vsel %vm1600_vm6, %v2518_v34, -inf }
 0xd85   : > { %2523 = vmax.xlane.f32.xlu0 %v2522_v36  ;;  %v6180_v36 = vsub.s32 7, %v5961_v17 }
 0xd89   : > { %2150 = vadd.xlane.f32.xlu0 %v2149_v38 }
 0xd9f   : > { %2159 = vrot.lane.b32.xlu0 %v6043_v58, %s5601_s25 }
 0xda3   : > { %2743 = vrot.lane.b32.xlu0 %v6043_v58, %s5605_s30 }
 0xda7   : > { %2821 = vrot.lane.b32.xlu0 %v6046_v61, %s5605_s30 }
 0xe0e   : > { %v2524_v40 = vpop.xlane.xlu0 %2523 }
 0xe0f   : > { %v2526_v41 = vsub.f32 %v2518_v34, %v2524_v40 }
 0xe11   : > { %v2529_v42 = vmul.f32 1.442695, %v2526_v41 }
 0xe12   : > { %v2151_v44 = vpop.xlane.xlu0 %2150 }
 0xe13   : > { %5269 = vpow2.f32 %v2529_v42 }
 0xe14   : > { %5271 = vrcp.f32 %v2151_v44 }
 0xe16   : > { %v2160_v45 = vpop.permute.xlu0 %2159 }
 0xe17   : > { %4917 = vmatpush3.msra.mxu0 %v2160_v45 }
 0xe18   : > { %4926 = vmatprep.subr.bf16.mxu0 %v5594_v7 }
 0xe1a   : > { %v2744_v6 = vpop.permute.xlu0 %2743 }
 0xe1e   : > { %v2822_v10 = vpop.permute.xlu0 %2821 }
 0xe20   : > { %v5270_v46 = vpop.eup %5269 }
 0xe21   : > { %v5272_v49 = vpop.eup %5271  ;;  %v2534_v53 = vsel %vm1600_vm6, %v5270_v46, 0.0 }
 0xe22   : > { %2535 = vadd.xlane.f32.xlu1 %v2534_v53  ;;  %v2157_v54 = vmul.f32 %v5272_v49, %v5268_v37  ;;  %v1595_v37 = vrot.slane %v5879_v0, %v6180_v36  ;;  %v1495_v53 = vld [vmem:[%s5888_s18 + $0x8] sm:$0xf] }
 0xe24   : > { %4919 = vmatmul.mubr.msk.f32.vlgmr.msra.gmra.mxu0 %vm1600_vm6, %v2157_v54  ;;  %v1977_v38 = vadd.f32 %v6092_v48, %v1595_v37  ;;  %v1978_v44 = vadd.f32 %v6094_v50, %v1595_v37  ;;  %v2698_v54 = vsel %vm1932_vm7, %v1495_v53, 0 }
 0xe25   : > { %4928 = vmatprep.mubr.msk.bf16.mxu0 %vm6552_vm5, %v5594_v7  ;;  %4927 = vmatpush3.bf16.msra.mxu0 %v2316_v60 }
 0xe26   : > { %4942 = vmatprep.subr.mxu0 %v5594_v7 }
 0xe33   : > { %2823 = vrot.lane.b32.xlu1 %v6046_v61, %s5604_s2 }
 0xe57   : > { %2520 = vmax.xlane.f32.xlu1 %v2519_v56 }
 0xeab   : > { %v2536_v63 = vpop.xlane.xlu1 %2535 }
 0xeac   : > { %5273 = vrcp.f32 %v2536_v63 }
 0xeaf   : > { %v2824_v8 = vpop.permute.xlu1 %2823 }
 0xeb9   : > { %v5274_v4 = vpop.eup %5273 }
 0xeba   : > { %v2540_v5 = vmul.f32 %v5274_v4, %v5270_v46 }
 0xebc   : > { %4950 = vmatmul.mubr.msk.f32.vlgmr.msra.gmra.mxu1 %vm1600_vm6, %v2540_v5 }
 0xebd   : > { %4959 = vmatpush3.xpose.msk.msra.mxu1 %vm1600_vm6, %v2746_v62  ;;  %4960 = vmatprep.mubr.msk.f32.mxu1 %vm6552_vm5, %v5594_v7 }
 0xebe   : > { %4963 = vmatprep.subr.mxu1 %v5594_v7 }
 0xec0   : > { %4961 = vmatmul.mubr.msk.f32.vlgmr.msra.gmra.mxu1 %vm1600_vm6, %v2744_v6 }
 0xec1   : > { %4964 = vmatpush3.xpose.msk.msra.mxu1 %vm1600_vm6, %v2824_v8  ;;  %4965 = vmatprep.mubr.msk.f32.mxu1 %vm6552_vm5, %v5594_v7 }
 0xec2   : > { %4973 = vmatprep.subr.mxu1 %v5594_v7 }
 0xec4   : > { %4966 = vmatmul.mubr.msk.f32.vlgmr.msra.gmra.mxu1 %vm1600_vm6, %v2822_v10 }
 0xec5   : > { %4975 = vmatprep.mubr.msk.f32.mxu1 %vm6552_vm5, %v5594_v7 }
 0xee0   : > { %v2521_v11 = vpop.xlane.xlu1 %2520 }
 0xee1   : > { %v2525_v12 = vsub.f32 %v2517_v55, %v2521_v11 }
 0xee3   : > { %v2527_v13 = vmul.f32 1.442695, %v2525_v12 }
 0xee4   : > { %v2231_v14 = vpop.f32.mrf.mxu0 }
 0xee5   : > { %5275 = vpow2.f32 %v2527_v13  ;;  %v2311_v15 = vpack.c.bf16 %v6131_v30, %v2231_v14 }
 0xee6   : > { %v4920_v19 = vpop.f32.mrf.mxu0 }
 0xee7   : > { %4929 = vmatmul.mubr.msk.bf16.vlgmr.msra.gmra.mxu0 %vm1600_vm6, %v2311_v15  ;;  %v1496_v19 = vld [vmem:[%s5888_s18 + $0xc] sm:$0xf] }
 0xee8   : > { %4944 = vmatprep.mubr.msk.f32.mxu0 %vm6552_vm5, %v5594_v7 }
 0xef2   : > { %v5276_v20 = vpop.eup %5275 }
 0xef3   : > { %v2531_v21 = vsel %vm1600_vm6, %v5276_v20, 0.0 }
 0xef4   : > { %2532 = vadd.xlane.f32.xlu0 %v2531_v21 }
 0xf0a   : > { %2541 = vrot.lane.b32.xlu0 %v6043_v58, %s5603_s23 }
 0xf0e   : > { %2999 = vrot.lane.b32.xlu0 %v6046_v61, %s5606_s20 }
 0xf7c   : > { %v2689_v23 = vpop.f32.mrf.mxu1 }
 0xf7d   : > { %v2533_v25 = vpop.xlane.xlu0 %2532 }
 0xf7e   : > { %5277 = vrcp.f32 %v2533_v25  ;;  %v4951_v26 = vpop.f32.mrf.mxu1 }
 0xf80   : > { %v2817_v27 = vpop.f32.mrf.mxu1 }
 0xf81   : > { %v2899_v51 = vmul.f32 0.35355338, %v2817_v27  ;;  %v2542_v28 = vpop.permute.xlu0 %2541 }
 0xf82   : > { %4943 = vmatpush3.msra.mxu0 %v2542_v28  ;;  %v4962_v29 = vpop.f32.mrf.mxu1 }
 0xf83   : > { %v2901_v30 = vsel %vm1600_vm6, %v2899_v51, -inf  ;;  %4952 = vmatprep.subr.bf16.mxu0 %v5594_v7 }
 0xf84   : > { %2902 = vmax.xlane.f32.xlu1 %v2901_v30  ;;  %v2895_v31 = vpop.f32.mrf.mxu1 }
 0xf85   : > { %v2900_v32 = vmul.f32 0.35355338, %v2895_v31  ;;  %v3000_v33 = vpop.permute.xlu0 %2999 }
 0xf86   : > { %v4967_v52 = vpop.f32.mrf.mxu1  ;;  %4974 = vmatpush3.msra.mxu1 %v3000_v33 }
 0xf87   : > { %v2904_v61 = vsel %vm1600_vm6, %v2900_v32, -inf  ;;  %4984 = vmatprep.subr.bf16.mxu1 %v5594_v7 }
 0xf88   : > { %2905 = vmax.xlane.f32.xlu1 %v2904_v61 }
 0xf8b   : > { %v5278_v34 = vpop.eup %5277 }
 0xf8c   : > { %v2539_v35 = vmul.f32 %v5278_v34, %v5276_v20  ;;  %v3080_v20 = vsel %vm1932_vm7, %v1496_v19, 0  ;;  %vm3502_vm7 = vcmp.lt.s32.totalorder %v5961_v17, 5 }
 0xf8e   : > { %4945 = vmatmul.mubr.msk.f32.vlgmr.msra.gmra.mxu0 %vm1600_vm6, %v2539_v35 }
 0xf8f   : > { %4954 = vmatprep.mubr.msk.bf16.mxu0 %vm6552_vm5, %v5594_v7  ;;  %4953 = vmatpush3.bf16.msra.mxu0 %v2698_v54 }
 0xf90   : > { %4968 = vmatprep.subr.mxu0 %v5594_v7 }
 0xfa7   : > { %v2352_v40 = vpop.f32.mrf.mxu0 }
 0xfa8   : > { %v2359_v41 = vadd.f32 %v2352_v40, %v1977_v38 }
 0xfa9   : > { %v4930_v42 = vpop.f32.mrf.mxu0 }
 0xfab   : > { %v2355_v45 = vpop.f32.mrf.mxu0 }
 0xfac   : > { %v2360_v46 = vadd.f32 %v2355_v45, %v1978_v44 }
 0xfad   : > { %v4931_v49 = vpop.f32.mrf.mxu0 }
0x100d   : > { %v2903_v55 = vpop.xlane.xlu1 %2902 }
0x100e   : > { %v2907_v56 = vsub.f32 %v2899_v51, %v2903_v55 }
0x1010   : > { %v2909_v57 = vmul.f32 1.442695, %v2907_v56 }
0x1011   : > { %v2906_v0 = vpop.xlane.xlu1 %2905 }
0x1012   : > { %5279 = vpow2.f32 %v2909_v57  ;;  %v2908_v48 = vsub.f32 %v2900_v32, %v2906_v0  ;;  %v5219_v57 = vld [vmem:[%s5893_s22 + $0x8] sm:$0xff]  }
0x1013   : > { %v5220_v0 = vld [vmem:[%s5900_s28 + $0x8] sm:$0xff]  }
0x1014   : > { %v2911_v60 = vmul.f32 1.442695, %v2908_v48  ;;  %v5221_v48 = vld [vmem:[%s5893_s22] sm:$0xff]  }
0x1016   : > { %5281 = vpow2.f32 %v2911_v60  ;;  %v5222_v60 = vld [vmem:[%s5900_s28] sm:$0xff]  }
0x101f   : > { %v5280_v62 = vpop.eup %5279 }
0x1020   : > { %v2913_v50 = vsel %vm1600_vm6, %v5280_v62, 0.0 }
0x1021   : > { %2914 = vadd.xlane.f32.xlu1 %v2913_v50 }
0x1023   : > { %v5282_v63 = vpop.eup %5281 }
0x1024   : > { %v2916_v4 = vsel %vm1600_vm6, %v5282_v63, 0.0 }
0x1025   : > { %2917 = vadd.xlane.f32.xlu1 %v2916_v4 }
0x1036   : > { %2923 = vrot.lane.b32.xlu1 %v6043_v58, %s5606_s20 }
0x104e   : > { %v2613_v5 = vpop.f32.mrf.mxu0 }
0x104f   : > { %v2693_v6 = vpack.c.bf16 %v2689_v23, %v2613_v5 }
0x1050   : > { %v4946_v8 = vpop.f32.mrf.mxu0 }
0x1051   : > { %4955 = vmatmul.mubr.msk.bf16.vlgmr.msra.gmra.mxu0 %vm1600_vm6, %v2693_v6 }
0x1052   : > { %4970 = vmatprep.mubr.msk.f32.mxu0 %vm6552_vm5, %v5594_v7 }
0x10aa   : > { %v2915_v10 = vpop.xlane.xlu1 %2914 }
0x10ab   : > { %5283 = vrcp.f32 %v2915_v10 }
0x10ae   : > { %v2918_v11 = vpop.xlane.xlu1 %2917 }
0x10af   : > { %5285 = vrcp.f32 %v2918_v11  ;;  %v3172_v11 = vrot.slane %v5881_v1, %v5964_v18 }
0x10b2   : > { %v2924_v12 = vpop.permute.xlu1 %2923 }
0x10b3   : > { %4969 = vmatpush3.msra.mxu0 %v2924_v12 }
0x10b4   : > { %4978 = vmatprep.subr.bf16.mxu0 %v5594_v7 }
0x10b8   : > { %v5284_v13 = vpop.eup %5283 }
0x10b9   : > { %v2921_v14 = vmul.f32 %v5284_v13, %v5280_v62 }
0x10bb   : > { %4971 = vmatmul.mubr.msk.f32.vlgmr.msra.gmra.mxu0 %vm1600_vm6, %v2921_v14 }
0x10bc   : > { %v5286_v58 = vpop.eup %5285  ;;  %4980 = vmatprep.mubr.msk.bf16.mxu0 %vm6552_vm5, %v5594_v7  ;;  %4979 = vmatpush3.bf16.msra.mxu0 %v3080_v20 }
0x10bd   : > { %v2922_v15 = vmul.f32 %v5286_v58, %v5282_v63  ;;  %4992 = vmatprep.subr.bf16.mxu0 %v5594_v7  ;;  %v3178_v58 = vrot.slane %v5881_v1, %v5969_v22 }
0x10bf   : > { %4976 = vmatmul.mubr.msk.f32.vlgmr.msra.gmra.mxu1 %vm1600_vm6, %v2922_v15 }
0x10c0   : > { %4988 = vmatprep.mubr.msk.bf16.mxu1 %vm6552_vm5, %v5594_v7  ;;  %4985 = vmatpush3.bf16.msra.mxu1 %v5219_v57  ;;  %v6265_v57 = vrot.slane %v5895_v3, %v5996_v39 }
0x10c1   : > { %4986 = vmatprep.subr.bf16.mxu1 %v5594_v7 }
0x10c4   : > { %4987 = vmatpush3.bf16.msra.mxu1 %v5221_v48 }
0x10c5   : > { %5028 = vmatprep.subr.bf16.mxu1 %v5594_v7 }
0x1111   : > { %v2734_v21 = vpop.f32.mrf.mxu0 }
0x1112   : > { %v2741_v23 = vadd.f32 %v2734_v21, %v2359_v41 }
0x1113   : > { %v4956_v25 = vpop.f32.mrf.mxu0 }
0x1114   : > { %v5224_v25 = vld [vmem:[%s5905_s3 + $0x10] sm:$0xff]  }
0x1115   : > { %v2737_v26 = vpop.f32.mrf.mxu0 }
0x1116   : > { %v2742_v27 = vadd.f32 %v2737_v26, %v2360_v46  ;;  %v5225_v26 = vld [vmem:[%s5905_s3 + $0x8] sm:$0xff]  }
0x1117   : > { %v4957_v51 = vpop.f32.mrf.mxu0 }
0x1118   : > { %v3245_v51 = vrot.slane %v5881_v1, %v5996_v39 }
0x117b   : > { %v2995_v28 = vpop.f32.mrf.mxu0 }
0x117d   : > { %v4972_v29 = vpop.f32.mrf.mxu0 }
0x117f   : > { %v3071_v30 = vpop.f32.mrf.mxu1 }
0x1180   : > { %v3075_v31 = vpack.c.bf16 %v3071_v30, %v2995_v28 }
0x1181   : > { %v4977_v32 = vpop.f32.mrf.mxu1 }
0x1182   : > { %4981 = vmatmul.mubr.msk.bf16.vlgmr.msra.gmra.mxu0 %vm1600_vm6, %v3075_v31  ;;  %vm3475_vm6 = vcmp.lt.s32.totalorder %v5961_v17, 6 }
0x1183   : > { %4996 = vmatprep.mubr.msk.bf16.mxu0 %vm6552_vm5, %v5594_v7  ;;  %4993 = vmatpush3.bf16.msra.mxu0 %v5220_v0 }
0x1184   : > { %4994 = vmatprep.subr.bf16.mxu0 %v5594_v7 }
0x1187   : > { %4995 = vmatpush3.bf16.msra.mxu0 %v5222_v60  ;;  %v6269_v60 = vrot.slane %v5881_v1, %v6008_v9 }
0x1188   : > { %5000 = vmatprep.subr.bf16.mxu0 %v5594_v7 }
0x1242   : > { %v3116_v33 = vpop.f32.mrf.mxu0 }
0x1243   : > { %v3123_v52 = vadd.f32 %v3116_v33, %v2741_v23  ;;  %v5223_v23 = vld [vmem:[%s5905_s3 + $0x18] sm:$0xff]  }
0x1244   : > { %v4982_v61 = vpop.f32.mrf.mxu0 }
0x1245   : > { %v6210_v34 = vadd.f32 %v3123_v52, %v6013_v16 }
0x1246   : > { %v3119_v35 = vpop.f32.mrf.mxu0 }
0x1247   : > { %v3124_v37 = vadd.f32 %v3119_v35, %v2742_v27  ;;  %v3143_v38 = vsel %vm6551_vm4, %v6210_v34, 0.0  ;;  %v5226_v27 = vld [vmem:[%s5905_s3] sm:$0xff]  }
0x1248   : > { %3144 = vadd.xlane.f32.xlu0 %v3143_v38  ;;  %v4983_v40 = vpop.f32.mrf.mxu0 }
0x1249   : > { %v6215_v41 = vadd.f32 %v3124_v37, %v6018_v24 }
0x124b   : > { %v3146_v42 = vsel %vm6551_vm4, %v6215_v41, 0.0 }
0x124c   : > { %3147 = vadd.xlane.f32.xlu1 %v3146_v42 }
0x12d1   : > { %v3145_v44 = vpop.xlane.xlu0 %3144 }
0x12d2   : > { %v3149_v16 = vmul.f32 0.03125, %v3145_v44 }
0x12d4   : > { %v3151_v45 = vsub.f32 %v6210_v34, %v3149_v16 }
0x12d5   : > { %v3148_v46 = vpop.xlane.xlu1 %3147 }
0x12d6   : > { %v3150_v49 = vmul.f32 0.03125, %v3148_v46  ;;  %v3153_v53 = vmul.f32 %v3151_v45, %v3151_v45  ;;  %v3315_v46 = vadd.s32 8, %v5961_v17 }
0x12d8   : > { %v3152_v54 = vsub.f32 %v6215_v41, %v3150_v49  ;;  %v3155_v55 = vsel %vm6551_vm4, %v3153_v53, 0.0  ;;  %v3320_v49 = vand.u32 7, %v5961_v17  ;;  %v3327_v53 = vand.u32 7, %v3315_v46 }
0x12d9   : > { %3156 = vadd.xlane.f32.xlu0 %v3155_v55  ;;  %v6257_v55 = vrot.slane %v5895_v3, %v5969_v22 }
0x12da   : > { %v3154_v24 = vmul.f32 %v3152_v54, %v3152_v54  ;;  %v3351_v0 = vadd.s32 4294967293, %v3327_v53  ;;  %v3377_v48 = vadd.s32 4294967294, %v3320_v49 }
0x12dc   : > { %v3158_v56 = vsel %vm6551_vm4, %v3154_v24, 0.0  ;;  %v3350_v24 = vadd.s32 4294967293, %v3320_v49  ;;  %vm3353_vm12 = vcmp.ge.s32.totalorder %v3351_v0, 0  ;;  %vm3379_vm13 = vcmp.ge.s32.totalorder %v3377_v48, 0 }
0x12dd   : > { %3159 = vadd.xlane.f32.xlu0 %v3158_v56  ;;  %v6261_v56 = vrot.slane %v5895_v3, %v6001_v59 }
0x12de   : > { %vm3352_vm10 = vcmp.ge.s32.totalorder %v3350_v24, 0 }
0x1362   : > { %v3157_v62 = vpop.xlane.xlu0 %3156 }
0x1363   : > { %v3161_v50 = vmul.f32 0.03125, %v3157_v62  ;;  %v6273_v62 = vrot.slane %v5895_v3, %v6008_v9 }
0x1365   : > { %v3163_v63 = vadd.f32 1e-05, %v3161_v50  ;;  %v3378_v50 = vadd.s32 4294967294, %v3327_v53 }
0x1366   : > { %v3160_v4 = vpop.xlane.xlu0 %3159 }
0x1367   : > { %5287 = vrsqrt.f32 %v3163_v63  ;;  %v3162_v5 = vmul.f32 0.03125, %v3160_v4  ;;  %vm3380_vm14 = vcmp.ge.s32.totalorder %v3378_v50, 0 }
0x1369   : > { %v3164_v6 = vadd.f32 1e-05, %v3162_v5  ;;  %v3404_v5 = vadd.s32 4294967295, %v3320_v49 }
0x136b   : > { %5289 = vrsqrt.f32 %v3164_v6  ;;  %v3405_v6 = vadd.s32 4294967295, %v3327_v53  ;;  %vm3406_vm15 = vcmp.ge.s32.totalorder %v3404_v5, 0 }
0x136d   : > { %vm3407_vm0 = vcmp.ge.s32.totalorder %v3405_v6, 0 }
0x1374   : > { %v5288_v8 = vpop.eup %5287 }
0x1375   : > { %v3167_v10 = vmul.f32 %v5288_v8, %v3151_v45  ;;  %v6278_v8 = vadd.s32 1, %v3320_v49 }
0x1377   : > { %v3173_v14 = vmul.f32 %v3172_v11, %v3167_v10  ;;  %v6280_v10 = vadd.s32 1, %v3327_v53  ;;  %vm3455_vm2 = vcmp.lt.s32.totalorder %v6278_v8, 8  ;;  %v3522_v8 = vrot.slane %v5895_v3, %v6180_v36 }
0x1378   : > { %v5290_v12 = vpop.eup %5289 }
0x1379   : > { %v3168_v13 = vmul.f32 %v5290_v12, %v3152_v54  ;;  %v3179_v19 = vadd.f32 %v3178_v58, %v3173_v14  ;;  %v3185_v54 = vrot.slane %v5881_v1, %v6001_v59  ;;  %v3533_v12 = vadd.f32 1e-05, %v5883_v2 }
0x137a   : > { %v6285_v14 = vadd.s32 2, %v3320_v49  ;;  %vm3456_vm3 = vcmp.lt.s32.totalorder %v6280_v10, 8 }
0x137b   : > { %v3174_v15 = vmul.f32 %v3172_v11, %v3168_v13 }
0x137d   : > { %v3180_v20 = vadd.f32 %v3178_v58, %v3174_v15  ;;  %v6287_v58 = vadd.s32 2, %v3327_v53 }
0x137f   : > { %v3181_v21 = vpack.c.bf16 %v3180_v20, %v3179_v19  ;;  %v6292_v19 = vrot.slane %v5895_v3, %v6031_v43 }
0x1381   : > { %4989 = vmatmul.mubr.msk.bf16.vlgmr.msra.gmra.mxu1 %vm6551_vm4, %v3181_v21  ;;  %4997 = vmatmul.mubr.msk.bf16.vlgmr.msra.gmra.mxu0 %vm6551_vm4, %v3181_v21  ;;  %v6297_v21 = vadd.s32 3, %v3320_v49 }
0x1382   : > { %5008 = vmatprep.mubr.msk.bf16.mxu0 %vm6552_vm5, %v5594_v7  ;;  %5044 = vmatprep.mubr.msk.bf16.mxu1 %vm6552_vm5, %v5594_v7 }
0x1383   : > { %5001 = vmatpush3.bf16.msra.mxu0 %v5223_v23  ;;  %v6299_v23 = vadd.s32 3, %v3327_v53  ;;  %vm3509_vm4 = vcmp.lt.s32.totalorder %v6297_v21, 8 }
0x1384   : > { %5002 = vmatprep.subr.bf16.mxu0 %v5594_v7 }
0x1385   : > { %vm3510_vm5 = vcmp.lt.s32.totalorder %v6299_v23, 8 }
0x1387   : > { %5003 = vmatpush3.bf16.msra.mxu0 %v5224_v25 }
0x1388   : > { %5004 = vmatprep.subr.bf16.mxu0 %v5594_v7 }
0x138b   : > { %5005 = vmatpush3.bf16.msra.mxu0 %v5225_v26 }
0x138c   : > { %5006 = vmatprep.subr.bf16.mxu0 %v5594_v7 }
0x138f   : > { %5007 = vmatpush3.bf16.msra.mxu0 %v5226_v27  ;;  %v6305_v27 = vrot.slane %v5895_v3, %v6036_v47 }
0x1390   : > { %5012 = vmatprep.subr.bf16.mxu0 %v5594_v7 }
0x1441   : > { %v3235_v28 = vpop.f32.mrf.mxu1  ;;  %v3292_v29 = vpop.f32.mrf.mxu0 }
0x1442   : > { %v3293_v30 = vadd.f32 %v3292_v29, %v3245_v51  ;;  %v3236_v4 = vadd.f32 %v3235_v28, %v3185_v54 }
0x1443   : > { %v4990_v31 = vpop.f32.mrf.mxu1  ;;  %v4998_v32 = vpop.f32.mrf.mxu0 }
0x1444   : > { %v4673_v33 = vmul.f32 -1.442695, %v3293_v30 }
0x1445   : > { %v3238_v52 = vpop.f32.mrf.mxu1  ;;  %v3295_v61 = vpop.f32.mrf.mxu0 }
0x1446   : > { %5291 = vpow2.f32 %v4673_v33  ;;  %v3296_v35 = vadd.f32 %v3295_v61, %v3245_v51  ;;  %v3239_v13 = vadd.f32 %v3238_v52, %v3185_v54 }
0x1447   : > { %v4991_v37 = vpop.f32.mrf.mxu1  ;;  %v4999_v38 = vpop.f32.mrf.mxu0 }
0x1448   : > { %v4674_v40 = vmul.f32 -1.442695, %v3296_v35 }
0x144a   : > { %5293 = vpow2.f32 %v4674_v40 }
0x1453   : > { %v5292_v42 = vpop.eup %5291 }
0x1454   : > { %v3305_v44 = vadd.f32 1.0, %v5292_v42 }
0x1456   : > { %5295 = vrcp.f32 %v3305_v44 }
0x1457   : > { %v5294_v16 = vpop.eup %5293 }
0x1458   : > { %v3306_v45 = vadd.f32 1.0, %v5294_v16 }
0x145a   : > { %5297 = vrcp.f32 %v3306_v45 }
0x145b   : > { %5299 = vrsqrt.f32 %v3533_v12 }
0x1463   : > { %v5296_v63 = vpop.eup %5295 }
0x1464   : > { %v6282_v11 = vmul.f32 %v5296_v63, %v3236_v4 }
0x1466   : > { %v3345_v25 = vrot.slane %v6282_v11, 5  ;;  %v3372_v26 = vrot.slane %v6282_v11, 6  ;;  %v3399_v29 = vrot.slane %v6282_v11, 7  ;;  %v3446_v30 = vrot.slane %v6282_v11, 1 }
0x1467   : > { %v5298_v15 = vpop.eup %5297  ;;  %v3442_v4 = vmul.f32 %v6273_v62, %v6282_v11 }
0x1468   : > { %v3312_v20 = vmul.f32 %v5298_v15, %v3239_v13  ;;  %v3473_v13 = vrot.slane %v6282_v11, 2  ;;  %v3500_v15 = vrot.slane %v6282_v11, 3 }
0x146a   : > { %v3346_v51 = vrot.slane %v3312_v20, 5  ;;  %v3373_v28 = vrot.slane %v3312_v20, 6  ;;  %v3400_v31 = vrot.slane %v3312_v20, 7  ;;  %v3447_v32 = vrot.slane %v3312_v20, 1 }
0x146b   : > { %v3474_v33 = vrot.slane %v3312_v20, 2  ;;  %v3501_v52 = vrot.slane %v3312_v20, 3  ;;  %v3443_v12 = vmul.f32 %v6273_v62, %v3312_v20 }
0x146c   : > { %v3348_v61 = vsel %vm3347_vm8, %v3345_v25, %v3346_v51  ;;  %v3349_v35 = vsel %vm3347_vm8, %v3346_v51, %v3345_v25  ;;  %v3375_v37 = vsel %vm3374_vm9, %v3372_v26, %v3373_v28  ;;  %v3376_v38 = vsel %vm3374_vm9, %v3373_v28, %v3372_v26 }
0x146d   : > { %v3362_v40 = vsel %vm3352_vm10, %v3349_v35, 0.0  ;;  %v3363_v42 = vsel %vm3353_vm12, %v3348_v61, 0.0  ;;  %v3389_v44 = vsel %vm3379_vm13, %v3376_v38, 0.0  ;;  %v3390_v16 = vsel %vm3380_vm14, %v3375_v37, 0.0 }
0x146e   : > { %v3368_v45 = vmul.f32 %v6257_v55, %v3362_v40  ;;  %v3369_v46 = vmul.f32 %v6257_v55, %v3363_v42  ;;  %v3395_v49 = vmul.f32 %v6261_v56, %v3389_v44  ;;  %v3396_v53 = vmul.f32 %v6261_v56, %v3390_v16 }
0x146f   : > { %v3402_v54 = vsel %vm3401_vm11, %v3399_v29, %v3400_v31  ;;  %v3403_v24 = vsel %vm3401_vm11, %v3400_v31, %v3399_v29  ;;  %v3449_v0 = vsel %vm3448_vm1, %v3446_v30, %v3447_v32  ;;  %v3450_v48 = vsel %vm3448_vm1, %v3447_v32, %v3446_v30  ;;  %v5300_v31 = vpop.eup %5299 }
0x1470   : > { %v3370_v50 = vadd.f32 %v3368_v45, %v6269_v60  ;;  %v3371_v55 = vadd.f32 %v3369_v46, %v6269_v60  ;;  %v3416_v63 = vsel %vm3406_vm15, %v3403_v24, 0.0  ;;  %v3417_v56 = vsel %vm3407_vm0, %v3402_v54, 0.0 }
0x1471   : > { %v3422_v51 = vmul.f32 %v6265_v57, %v3416_v63  ;;  %v3423_v28 = vmul.f32 %v6265_v57, %v3417_v56  ;;  %v3463_v60 = vsel %vm3455_vm2, %v3449_v0, 0.0  ;;  %v3464_v5 = vsel %vm3456_vm3, %v3450_v48, 0.0 }
0x1472   : > { %v3397_v25 = vadd.f32 %v3395_v49, %v3370_v50  ;;  %v3398_v26 = vadd.f32 %v3396_v53, %v3371_v55  ;;  %v3476_v6 = vsel %vm3475_vm6, %v3473_v13, %v3474_v33  ;;  %v3477_v62 = vsel %vm3475_vm6, %v3474_v33, %v3473_v13 }
0x1473   : > { %v3503_v29 = vsel %vm3502_vm7, %v3500_v15, %v3501_v52  ;;  %v3504_v57 = vsel %vm3502_vm7, %v3501_v52, %v3500_v15  ;;  %vm6596_vm8 = vcmp.lt.s32.totalorder %v6285_v14, 8  ;;  %vm6597_vm9 = vcmp.lt.s32.totalorder %v6287_v58, 8 }
0x1474   : > { %v3424_v20 = vadd.f32 %v3422_v51, %v3397_v25  ;;  %v3425_v11 = vadd.f32 %v3423_v28, %v3398_v26  ;;  %v3490_v10 = vsel %vm6596_vm8, %v3476_v6, 0.0  ;;  %v3491_v30 = vsel %vm6597_vm9, %v3477_v62, 0.0 }
0x1475   : > { %v3469_v61 = vmul.f32 %v6292_v19, %v3463_v60  ;;  %v3470_v35 = vmul.f32 %v6292_v19, %v3464_v5  ;;  %v3517_v17 = vsel %vm3509_vm4, %v3503_v29, 0.0  ;;  %v3518_v52 = vsel %vm3510_vm5, %v3504_v57, 0.0 }
0x1476   : > { %v3444_v32 = vadd.f32 %v3442_v4, %v3424_v20  ;;  %v3445_v33 = vadd.f32 %v3443_v12, %v3425_v11  ;;  %v3496_v14 = vmul.f32 %v6305_v27, %v3490_v10  ;;  %v3497_v58 = vmul.f32 %v6305_v27, %v3491_v30 }
0x1477   : > { %v3530_v40 = vrot.slane %v5881_v1, %v6180_v36  ;;  %v3523_v16 = vmul.f32 %v3522_v8, %v3517_v17  ;;  %v3524_v45 = vmul.f32 %v3522_v8, %v3518_v52  ;;  %v3538_v21 = vrot.slane %v5300_v31, %v5964_v18 }
0x1478   : > { %v3471_v37 = vadd.f32 %v3469_v61, %v3444_v32  ;;  %v3472_v38 = vadd.f32 %v3470_v35, %v3445_v33  ;;  %v3544_v53 = vrot.slane %v5881_v1, %v6031_v43  ;;  %v3550_v27 = vrot.slane %v5881_v1, %v6036_v47 }
0x1479   : > { %vm3596_vm4 = vcmask 523264   ;;  %vm6598_vm5 = vmmov 0   ;;  %v3571_v60 = vrot.slane %v5883_v2, %v5969_v22  ;;  %vm6599_vm10 = vcmask 261120  }
0x147a   : > { %v3498_v42 = vadd.f32 %v3496_v14, %v3471_v37  ;;  %v3499_v44 = vadd.f32 %v3497_v58, %v3472_v38  ;;  %vm6600_vm11 = vmmov %vm6599_vm10  ;;  %v5227_v37 = vld [vmem:[%s5910_s27 + $0x8] sm:$0xff]   ;;  %v5228_v38 = vld [vmem:[%s5910_s27] sm:$0xff]  }
0x147b   : > { %vm6601_vm12 = vmmov %vm6599_vm10 }
0x147c   : > { %v3525_v19 = vadd.f32 %v3523_v16, %v3498_v42  ;;  %v3526_v46 = vadd.f32 %v3524_v45, %v3499_v44  ;;  %vm6602_vm13 = vmmov %vm6599_vm10 }
0x147d   : > { %vm6603_vm14 = vmmov %vm6599_vm10 }
0x147e   : > { %v3531_v49 = vsub.f32 %v3525_v19, %v3530_v40  ;;  %v3532_v23 = vsub.f32 %v3526_v46, %v3530_v40  ;;  %v3696_v46 = vrot.slane %v5883_v2, %v6001_v59  ;;  %vm6604_vm15 = vmmov %vm6599_vm10  ;;  %v5232_v59 = vld [vmem:[%s5920_s19 + $0x30] sm:$0xff]  }
0x147f   : > { %vm6605_vm0 = vmmov %vm6599_vm10 }
0x1480   : > { %v3539_v54 = vmul.f32 %v3538_v21, %v3531_v49  ;;  %v3540_v24 = vmul.f32 %v3538_v21, %v3532_v23  ;;  %vm6606_vm1 = vmmov %vm6605_vm0 }
0x1481   : > { %vm6607_vm2 = vmmov %vm6605_vm0 }
0x1482   : > { %v3545_v0 = vmul.f32 %v3544_v53, %v3539_v54  ;;  %v3546_v48 = vmul.f32 %v3544_v53, %v3540_v24  ;;  %v3702_v53 = vrot.slane %v5883_v2, %v5996_v39  ;;  %v5231_v39 = vld [vmem:[%s5920_s19 + $0x38] sm:$0xff]   ;;  %vm6608_vm3 = vmmov %vm6605_vm0 }
0x1483   : > { %5029 = vmatpush3.bf16.msra.mxu1 %v5231_v39  ;;  %vm6609_vm6 = vmmov %vm6605_vm0 }
0x1484   : > { %v3551_v50 = vadd.f32 %v3550_v27, %v3545_v0  ;;  %v3552_v55 = vadd.f32 %v3550_v27, %v3546_v48  ;;  %v5229_v0 = vld [vmem:[%s5915_s21 + $0x8] sm:$0xff]   ;;  %5030 = vmatprep.subr.bf16.mxu1 %v5594_v7  ;;  %vm6610_vm7 = vmmov %vm6605_vm0 }
0x1486   : > { %v4675_v63 = vmul.f32 -1.442695, %v3551_v50  ;;  %v4676_v56 = vmul.f32 -1.442695, %v3552_v55 }
0x1487   : > { %5031 = vmatpush3.bf16.msra.mxu1 %v5232_v59 }
0x1488   : > { %5301 = vpow2.f32 %v4675_v63  ;;  %5032 = vmatprep.subr.bf16.mxu1 %v5594_v7  ;;  %v5234_v63 = vld [vmem:[%s5920_s19 + $0x20] sm:$0xff]  }
0x1489   : > { %5303 = vpow2.f32 %v4676_v56  ;;  %v5235_v56 = vld [vmem:[%s5920_s19 + $0x18] sm:$0xff]  }
0x1495   : > { %v5302_v4 = vpop.eup %5301 }
0x1496   : > { %v5304_v12 = vpop.eup %5303  ;;  %v3559_v13 = vadd.f32 1.0, %v5302_v4  ;;  %v5236_v4 = vld [vmem:[%s5920_s19 + $0x10] sm:$0xff]  }
0x1497   : > { %v3560_v15 = vadd.f32 1.0, %v5304_v12  ;;  %v5237_v12 = vld [vmem:[%s5920_s19 + $0x8] sm:$0xff]  }
0x1498   : > { %5305 = vrcp.f32 %v3559_v13  ;;  %v5238_v13 = vld [vmem:[%s5920_s19] sm:$0xff]  }
0x1499   : > { %5307 = vrcp.f32 %v3560_v15 }
0x14a5   : > { %v5306_v25 = vpop.eup %5305 }
0x14a6   : > { %v5308_v26 = vpop.eup %5307  ;;  %v3565_v51 = vmul.f32 %v5306_v25, %v3551_v50  ;;  %v5230_v50 = vld [vmem:[%s5915_s21] sm:$0xff]  }
0x14a7   : > { %v3566_v28 = vmul.f32 %v5308_v26, %v3552_v55  ;;  %v5233_v55 = vld [vmem:[%s5920_s19 + $0x28] sm:$0xff]  }
0x14a8   : > { %5033 = vmatpush3.bf16.msra.mxu1 %v5233_v55  ;;  %v3964_v55 = vrot.slane %v5883_v2, %v6180_v36 }
0x14a9   : > { %v3567_v1 = vpack.c.bf16 %v3566_v28, %v3565_v51  ;;  %5034 = vmatprep.subr.bf16.mxu1 %v5594_v7  ;;  %v3769_v51 = vrot.slane %v5883_v2, %v6031_v43  ;;  %v3709_v43 = vrot.slane %v5883_v2, %v6008_v9 }
0x14ab   : > { %5009 = vmatmul.mubr.msk.bf16.vlgmr.msra.gmra.mxu0 %vm3596_vm4, %v3567_v1 }
0x14ac   : > { %5016 = vmatprep.mubr.msk.bf16.mxu0 %vm6598_vm5, %v5594_v7  ;;  %5013 = vmatpush3.bf16.msra.mxu0 %v5227_v37 }
0x14ad   : > { %5014 = vmatprep.subr.bf16.mxu0 %v5594_v7  ;;  %5035 = vmatpush3.bf16.msra.mxu1 %v5234_v63 }
0x14ae   : > { %5036 = vmatprep.subr.bf16.mxu1 %v5594_v7 }
0x14b0   : > { %5015 = vmatpush3.bf16.msra.mxu0 %v5228_v38 }
0x14b1   : > { %5020 = vmatprep.subr.bf16.mxu0 %v5594_v7  ;;  %5037 = vmatpush3.bf16.msra.mxu1 %v5235_v56  ;;  %v3970_v56 = vrot.slane %v5895_v3, %v5964_v18 }
0x14b2   : > { %5038 = vmatprep.subr.bf16.mxu1 %v5594_v7 }
0x14b5   : > { %5039 = vmatpush3.bf16.msra.mxu1 %v5236_v4 }
0x14b6   : > { %5040 = vmatprep.subr.bf16.mxu1 %v5594_v7 }
0x14b9   : > { %5041 = vmatpush3.bf16.msra.mxu1 %v5237_v12 }
0x14ba   : > { %5042 = vmatprep.subr.bf16.mxu1 %v5594_v7 }
0x14bd   : > { %5043 = vmatpush3.bf16.msra.mxu1 %v5238_v13 }
0x156b   : > { %v3634_v5 = vpop.f32.mrf.mxu0 }
0x156c   : > { %v3635_v6 = vadd.f32 %v3634_v5, %v3571_v60 }
0x156d   : > { %v5010_v62 = vpop.f32.mrf.mxu0 }
0x156e   : > { %v6387_v20 = vadd.f32 %v3635_v6, %v6210_v34 }
0x156f   : > { %v3637_v11 = vpop.f32.mrf.mxu0 }
0x1570   : > { %v3638_v29 = vadd.f32 %v3637_v11, %v3571_v60  ;;  %v3667_v57 = vsel %vm6599_vm10, %v6387_v20, 0.0 }
0x1571   : > { %3668 = vadd.xlane.f32.xlu0 %v3667_v57  ;;  %v5011_v8 = vpop.f32.mrf.mxu0 }
0x1572   : > { %v6392_v10 = vadd.f32 %v3638_v29, %v6215_v41 }
0x1574   : > { %v3670_v22 = vsel %vm6600_vm11, %v6392_v10, 0.0 }
0x1575   : > { %3671 = vadd.xlane.f32.xlu0 %v3670_v22 }
0x15fa   : > { %v3669_v30 = vpop.xlane.xlu0 %3668 }
0x15fb   : > { %v3673_v31 = vmul.f32 0.03125, %v3669_v30 }
0x15fd   : > { %v3675_v34 = vsub.f32 %v6387_v20, %v3673_v31 }
0x15fe   : > { %v3672_v32 = vpop.xlane.xlu0 %3671 }
0x15ff   : > { %v3674_v33 = vmul.f32 0.03125, %v3672_v32  ;;  %v3677_v61 = vmul.f32 %v3675_v34, %v3675_v34 }
0x1601   : > { %v3676_v35 = vsub.f32 %v6392_v10, %v3674_v33  ;;  %v3679_v17 = vsel %vm6601_vm12, %v3677_v61, 0.0 }
0x1602   : > { %3680 = vadd.xlane.f32.xlu0 %v3679_v17 }
0x1603   : > { %v3678_v52 = vmul.f32 %v3676_v35, %v3676_v35 }
0x1605   : > { %v3682_v41 = vsel %vm6602_vm13, %v3678_v52, 0.0  ;;  %v3841_v52 = vrot.slane %v5883_v2, %v6036_v47 }
0x1606   : > { %3683 = vadd.xlane.f32.xlu1 %v3682_v41 }
0x168b   : > { %v3681_v14 = vpop.xlane.xlu0 %3680 }
0x168c   : > { %v3685_v58 = vmul.f32 0.03125, %v3681_v14 }
0x168e   : > { %v3687_v40 = vadd.f32 1e-05, %v3685_v58 }
0x168f   : > { %v3684_v42 = vpop.xlane.xlu1 %3683 }
0x1690   : > { %5309 = vrsqrt.f32 %v3687_v40  ;;  %v3686_v44 = vmul.f32 0.03125, %v3684_v42 }
0x1692   : > { %v3688_v16 = vadd.f32 1e-05, %v3686_v44 }
0x1694   : > { %5311 = vrsqrt.f32 %v3688_v16 }
0x169d   : > { %v5310_v45 = vpop.eup %5309 }
0x169e   : > { %v3691_v19 = vmul.f32 %v5310_v45, %v3675_v34 }
0x16a0   : > { %v3697_v23 = vmul.f32 %v3696_v46, %v3691_v19 }
0x16a1   : > { %v5312_v21 = vpop.eup %5311 }
0x16a2   : > { %v3692_v49 = vmul.f32 %v5312_v21, %v3676_v35  ;;  %v3703_v24 = vadd.f32 %v3702_v53, %v3697_v23 }
0x16a4   : > { %v3698_v54 = vmul.f32 %v3696_v46, %v3692_v49 }
0x16a6   : > { %v3704_v27 = vadd.f32 %v3702_v53, %v3698_v54 }
0x16a8   : > { %v3705_v48 = vpack.c.bf16 %v3704_v27, %v3703_v24 }
0x16aa   : > { %5017 = vmatmul.mubr.msk.bf16.vlgmr.msra.gmra.mxu0 %vm6603_vm14, %v3705_v48 }
0x16ab   : > { %5021 = vmatpush3.bf16.msra.mxu0 %v5229_v0  ;;  %5024 = vmatprep.mubr.msk.bf16.mxu0 %vm6598_vm5, %v5594_v7 }
0x16ac   : > { %5022 = vmatprep.subr.bf16.mxu0 %v5594_v7 }
0x16af   : > { %5023 = vmatpush3.bf16.msra.mxu0 %v5230_v50 }
0x16b2   : > { %5025 = vmatmul.mubr.msk.bf16.vlgmr.msra.gmra.mxu0 %vm6604_vm15, %v3705_v48 }
0x176a   : > { %v3759_v15 = vpop.f32.mrf.mxu0 }
0x176b   : > { %v3760_v34 = vadd.f32 %v3759_v15, %v3709_v43 }
0x176c   : > { %v5018_v25 = vpop.f32.mrf.mxu0 }
0x176e   : > { %v3762_v26 = vpop.f32.mrf.mxu0 }
0x176f   : > { %v3763_v32 = vadd.f32 %v3762_v26, %v3709_v43 }
0x1770   : > { %v5019_v28 = vpop.f32.mrf.mxu0 }
0x1772   : > { %v3816_v1 = vpop.f32.mrf.mxu0 }
0x1773   : > { %v3817_v60 = vadd.f32 %v3816_v1, %v3769_v51 }
0x1774   : > { %v5026_v5 = vpop.f32.mrf.mxu0 }
0x1775   : > { %v4688_v6 = vmul.f32 -1.442695, %v3817_v60 }
0x1776   : > { %v3819_v62 = vpop.f32.mrf.mxu0 }
0x1777   : > { %5313 = vpow2.f32 %v4688_v6  ;;  %v3820_v11 = vadd.f32 %v3819_v62, %v3769_v51 }
0x1778   : > { %v5027_v29 = vpop.f32.mrf.mxu0 }
0x1779   : > { %v4689_v57 = vmul.f32 -1.442695, %v3820_v11 }
0x177b   : > { %5315 = vpow2.f32 %v4689_v57 }
0x1784   : > { %v5314_v8 = vpop.eup %5313 }
0x1785   : > { %v3829_v7 = vadd.f32 1.0, %v5314_v8 }
0x1787   : > { %5317 = vrcp.f32 %v3829_v7 }
0x1788   : > { %v5316_v22 = vpop.eup %5315 }
0x1789   : > { %v3830_v30 = vadd.f32 1.0, %v5316_v22 }
0x178b   : > { %5319 = vrcp.f32 %v3830_v30 }
0x1794   : > { %v5318_v31 = vpop.eup %5317 }
0x1795   : > { %v3835_v61 = vmul.f32 %v5318_v31, %v3760_v34 }
0x1798   : > { %v5320_v33 = vpop.eup %5319 }
0x1799   : > { %v3836_v35 = vmul.f32 %v5320_v33, %v3763_v32 }
0x179b   : > { %v3837_v17 = vpack.c.bf16 %v3836_v35, %v3835_v61 }
0x179d   : > { %5045 = vmatmul.mubr.bf16.vlgmr.msra.gmra.mxu1 %v3837_v17 }
0x185d   : > { %v3924_v41 = vpop.f32.mrf.mxu1 }
0x185e   : > { %v3925_v37 = vadd.f32 %v3924_v41, %v3841_v52 }
0x185f   : > { %v5046_v38 = vpop.f32.mrf.mxu1 }
0x1860   : > { %v3931_v14 = vmul.f32 0.5, %v3925_v37 }
0x1861   : > { %v3927_v58 = vpop.f32.mrf.mxu1 }
0x1862   : > { %v3928_v40 = vadd.f32 %v3927_v58, %v3841_v52  ;;  %v3933_v42 = vadd.f32 %v3931_v14, %v6387_v20 }
0x1863   : > { %v5047_v9 = vpop.f32.mrf.mxu1 }
0x1864   : > { %v3932_v44 = vmul.f32 0.5, %v3928_v40  ;;  %v3935_v16 = vsel %vm6605_vm0, %v3933_v42, 0.0 }
0x1865   : > { %3936 = vadd.xlane.f32.xlu0 %v3935_v16 }
0x1866   : > { %v3934_v45 = vadd.f32 %v3932_v44, %v6392_v10 }
0x1868   : > { %v3938_v19 = vsel %vm6606_vm1, %v3934_v45, 0.0 }
0x1869   : > { %3939 = vadd.xlane.f32.xlu1 %v3938_v19 }
0x18ee   : > { %v3937_v46 = vpop.xlane.xlu0 %3936 }
0x18ef   : > { %v3941_v47 = vmul.f32 0.03125, %v3937_v46 }
0x18f1   : > { %v3943_v21 = vsub.f32 %v3933_v42, %v3941_v47 }
0x18f2   : > { %v3940_v49 = vpop.xlane.xlu1 %3939 }
0x18f3   : > { %v3942_v23 = vmul.f32 0.03125, %v3940_v49  ;;  %v3945_v53 = vmul.f32 %v3943_v21, %v3943_v21 }
0x18f5   : > { %v3944_v54 = vsub.f32 %v3934_v45, %v3942_v23  ;;  %v3947_v24 = vsel %vm6607_vm2, %v3945_v53, 0.0 }
0x18f6   : > { %3948 = vadd.xlane.f32.xlu0 %v3947_v24 }
0x18f7   : > { %v3946_v20 = vmul.f32 %v3944_v54, %v3944_v54 }
0x18f9   : > { %v3950_v27 = vsel %vm6608_vm3, %v3946_v20, 0.0 }
0x18fa   : > { %3951 = vadd.xlane.f32.xlu1 %v3950_v27 }
0x197f   : > { %v3949_v0 = vpop.xlane.xlu0 %3948 }
0x1980   : > { %v3953_v48 = vmul.f32 0.03125, %v3949_v0 }
0x1982   : > { %v3955_v10 = vadd.f32 1e-05, %v3953_v48 }
0x1983   : > { %v3952_v50 = vpop.xlane.xlu1 %3951 }
0x1984   : > { %5321 = vrsqrt.f32 %v3955_v10  ;;  %v3954_v39 = vmul.f32 0.03125, %v3952_v50 }
0x1986   : > { %v3956_v59 = vadd.f32 1e-05, %v3954_v39 }
0x1988   : > { %5323 = vrsqrt.f32 %v3956_v59 }
0x1991   : > { %v5322_v63 = vpop.eup %5321 }
0x1992   : > { %v3959_v4 = vmul.f32 %v5322_v63, %v3943_v21 }
0x1994   : > { %v3965_v12 = vmul.f32 %v3964_v55, %v3959_v4 }
0x1995   : > { %v5324_v13 = vpop.eup %5323 }
0x1996   : > { %v3971_v15 = vadd.f32 %v3970_v56, %v3965_v12  ;;  %v3960_v25 = vmul.f32 %v5324_v13, %v3944_v54 }
0x1998   : > { %3973 = vst.msk [vmem:[#allocation2] sm:$0xff] %vm6609_vm6, %v3971_v15  ;;  %v3966_v26 = vmul.f32 %v3964_v55, %v3960_v25  ;;  %3978 = sbr.rel (%p4698_p11) target bundleno = 6987 (0x1b4b), region = 148 }
0x199a   : > { %v3972_v51 = vadd.f32 %v3970_v56, %v3966_v26 }
0x199c   : > { %3974 = vst.msk [vmem:[#allocation2 + $0x8] sm:$0xff] %vm6610_vm7, %v3972_v51 }
0x199d   : > { %v5325_v2 = vld [vmem:[%s6533_s15 + $0x8] sm:$0xff]   ;;  %v5607_v36 = vmov 0.0   ;;  %v5326_v3 = vld [vmem:[%s6533_s15] sm:$0xff]   ;;  %vm5608_vm8 = vmmov 0   ;;  %vm6611_vm9 = vcmask 261120   ;;  %vm4013_vm5 = vcmask 1041409  }
0x199e   : > { %5048 = vmatprep.subr.bf16.mxu0 %v5607_v36  ;;  %5056 = vmatprep.subr.bf16.mxu1 %v5607_v36  ;;  %v3979_v18 = vsel %vm6611_vm9, %v3971_v15, 0.0  ;;  %vm6612_vm4 = vmmov %vm6611_vm9  ;;  %v5329_v62 = vld [vmem:[%s6535_s17 + $0x8] sm:$0xff]   ;;  %v5328_v37 = vld [vmem:[%s6613_s0] sm:$0xff]  }
0x199f   : > { %5049 = vmatpush3.bf16.msra.mxu0 %v5325_v2  ;;  %5052 = vmatprep.mubr.msk.bf16.mxu0 %vm5608_vm8, %v5607_v36  ;;  %v3986_v28 = vsel %vm6612_vm4, %v3972_v51, 0.0  ;;  %v3980_v1 = vrot.slane %v3979_v18, 4  ;;  %v5327_v52 = vld [vmem:[%s6613_s0 + $0x8] sm:$0xff]   ;;  %vm6614_vm10 = vmmov %vm6612_vm4  ;;  %v5330_v38 = vld [vmem:[%s6535_s17] sm:$0xff]  }
0x19a0   : > { %5050 = vmatprep.subr.bf16.mxu0 %v5607_v36  ;;  %v3987_v60 = vrot.slane %v3986_v28, 4  ;;  %5060 = vmatprep.mubr.msk.bf16.mxu1 %vm5608_vm8, %v5607_v36  ;;  %vm6615_vm11 = vmmov %vm6612_vm4  ;;  %v4699_v14 = vld [vmem:[#allocation8] ss:$0 sm:$0xff]  ;;  %v5331_v16 = vld [vmem:[#allocation12 + $0x8] sm:$0xff]  }
0x19a1   : > { %v3981_v5 = vadd.f32 %v3980_v1, %v3979_v18  ;;  %5057 = vmatpush3.bf16.msra.mxu1 %v5329_v62  ;;  %v4707_v46 = vld [vmem:[#allocation11] ss:$0 sm:$0xff]  ;;  %vm6616_vm12 = vmmov %vm6612_vm4  ;;  %v5332_v21 = vld [vmem:[#allocation12] sm:$0xff]  }
0x19a2   : > { %v3988_v6 = vadd.f32 %v3987_v60, %v3986_v28  ;;  %5058 = vmatprep.subr.bf16.mxu1 %v5607_v36  ;;  %vm6617_vm13 = vmmov %vm6612_vm4  ;;  %v4703_v27 = vld [vmem:[#allocation9] ss:$0 sm:$0xff]  ;;  %v4711_v59 = vld [vmem:[#allocation14] ss:$0 sm:$0xff] }
0x19a3   : > { %5051 = vmatpush3.bf16.msra.mxu0 %v5326_v3  ;;  %v3982_v11 = vrot.slane %v3981_v5, 2 }
0x19a4   : > { %5064 = vmatprep.subr.bf16.mxu0 %v5607_v36  ;;  %v3989_v29 = vrot.slane %v3988_v6, 2 }
0x19a5   : > { %v3983_v57 = vadd.f32 %v3982_v11, %v3981_v5  ;;  %5059 = vmatpush3.bf16.msra.mxu1 %v5330_v38 }
0x19a6   : > { %v3990_v8 = vadd.f32 %v3989_v29, %v3988_v6  ;;  %5072 = vmatprep.subr.bf16.mxu1 %v5607_v36 }
0x19a7   : > { %v3984_v7 = vrot.slane %v3983_v57, 1 }
0x19a8   : > { %v3991_v22 = vrot.slane %v3990_v8, 1 }
0x19a9   : > { %v3985_v30 = vadd.f32 %v3984_v7, %v3983_v57 }
0x19aa   : > { %v3992_v43 = vadd.f32 %v3991_v22, %v3990_v8 }
0x19ab   : > { %v3994_v31 = vmul.f32 0.125, %v3985_v30 }
0x19ac   : > { %v3995_v34 = vmul.f32 0.125, %v3992_v43 }
0x19ad   : > { %v3996_v32 = vpack.c.bf16 %v3994_v31, %v3994_v31 }
0x19ae   : > { %v3997_v33 = vpack.c.bf16 %v3995_v34, %v3995_v34 }
0x19af   : > { %v4011_v61 = vunpack.c.l.b16 %v3996_v32 }
0x19b0   : > { %v4012_v35 = vunpack.c.l.b16 %v3997_v33 }
0x19b2   : > { %v4014_v17 = vsel %vm4013_vm5, %v4012_v35, %v4011_v61 }
0x19b3   : > { %v4015_v41 = vpack.c.b16 %v4014_v17, %v4014_v17 }
0x19b5   : > { %5053 = vmatmul.mubr.msk.bf16.vlgmr.msra.gmra.mxu0 %vm6614_vm10, %v4015_v41 }
0x19b6   : > { %5065 = vmatpush3.bf16.msra.mxu0 %v5327_v52  ;;  %5068 = vmatprep.mubr.msk.bf16.mxu0 %vm5608_vm8, %v5607_v36 }
0x19b7   : > { %5066 = vmatprep.subr.bf16.mxu0 %v5607_v36 }
0x19ba   : > { %5067 = vmatpush3.bf16.msra.mxu0 %v5328_v37 }
0x19bd   : > { %5069 = vmatmul.mubr.msk.bf16.vlgmr.msra.gmra.mxu0 %vm6615_vm11, %v4015_v41 }
0x1a75   : > { %v4065_v58 = vpop.f32.mrf.mxu0 }
0x1a76   : > { %v4066_v40 = vadd.f32 %v4699_v14, %v4065_v58 }
0x1a77   : > { %v5054_v42 = vpop.f32.mrf.mxu0 }
0x1a78   : > { %v4071_v9 = vmax.f32 %v4066_v40, 0.0 }
0x1a79   : > { %v4068_v44 = vpop.f32.mrf.mxu0 }
0x1a7a   : > { %v4072_v45 = vpack.c.bf16 %v4071_v9, %v4071_v9 }
0x1a7b   : > { %v5055_v19 = vpop.f32.mrf.mxu0 }
0x1a7c   : > { %5061 = vmatmul.mubr.msk.bf16.vlgmr.msra.gmra.mxu1 %vm6616_vm12, %v4072_v45 }
0x1a7d   : > { %5073 = vmatpush3.bf16.msra.mxu1 %v5331_v16  ;;  %v4197_v47 = vpop.f32.mrf.mxu0  ;;  %5076 = vmatprep.mubr.msk.bf16.mxu1 %vm5608_vm8, %v5607_v36 }
0x1a7e   : > { %v4198_v49 = vadd.f32 %v4707_v46, %v4197_v47  ;;  %5074 = vmatprep.subr.bf16.mxu1 %v5607_v36 }
0x1a7f   : > { %v5070_v23 = vpop.f32.mrf.mxu0 }
0x1a80   : > { %v4203_v53 = vmax.f32 %v4198_v49, 0.0 }
0x1a81   : > { %5075 = vmatpush3.bf16.msra.mxu1 %v5332_v21  ;;  %v4200_v54 = vpop.f32.mrf.mxu0 }
0x1a82   : > { %v4204_v24 = vpack.c.bf16 %v4203_v53, %v4203_v53 }
0x1a83   : > { %v5071_v20 = vpop.f32.mrf.mxu0 }
0x1a84   : > { %5077 = vmatmul.mubr.msk.bf16.vlgmr.msra.gmra.mxu1 %vm6617_vm13, %v4204_v24 }
0x1b3c   : > { %v4133_v0 = vpop.f32.mrf.mxu1 }
0x1b3d   : > { %v4134_v48 = vadd.f32 %v4703_v27, %v4133_v0 }
0x1b3e   : > { %v5062_v10 = vpop.f32.mrf.mxu1 }
0x1b3f   : > { %4139 = vst [vmem:[#allocation15] sm:$0x3] %v4134_v48 }
0x1b40   : > { %v4136_v50 = vpop.f32.mrf.mxu1 }
0x1b42   : > { %v5063_v39 = vpop.f32.mrf.mxu1 }
0x1b44   : > { %v4265_v55 = vpop.f32.mrf.mxu1 }
0x1b45   : > { %v4266_v63 = vadd.f32 %v4711_v59, %v4265_v55 }
0x1b46   : > { %v5078_v56 = vpop.f32.mrf.mxu1 }
0x1b47   : > { %4271 = vst [vmem:[%s6618_s7] sm:$0x3] %v4266_v63 }
0x1b48   : > { %v4268_v4 = vpop.f32.mrf.mxu1 }
0x1b4a   : > { %v5079_v12 = vpop.f32.mrf.mxu1 }
0x1b4b PF: > { %s6619_s29 = sld [smem:[#allocation22_spill]]  ;;  %s5609_s23 = smov [#allocation15]  }
0x1b4c   : > { %s4285_s2 = sshll.u32 %s5609_s23, 4  ;;  %s4286_s2 = int_to_ptr.vmem [resolvable:$true] %s4285_s2 }
0x1b4d   : > { %s5515_s30 = scalar_lea.vmem %s4286_s2, 32  ;;  %p5522_p0 = scmp.lt.s32.totalorder %s4286_s2, %s4286_s2 }
0x1b4e   : > { %p5516_p13 = scmp.ne.s32.totalorder %s4286_s2, %s5515_s30  ;;  %p5523_p1 = scmp.lt.s32.totalorder %s5515_s30, %s5515_s30 }
0x1b50   : > { %p5524_p4 = por %p5523_p1, %p5522_p0 }
0x1b51   : > { %s6620_s25 = sadd.s32 4294967295, %s6619_s29  }
0x1b52   : > { %p6494_p12 = scmp.eq.s32.totalorder %s6620_s25, 1 }
0x1b54   : > { %p5517_p2 = pnand %p5516_p13, %p6494_p12 }
0x1b56   : > { %p5518_p3 = pneg %p5517_p2 }
0x1b58   : > { %p5525_p7 = pnand %p5524_p4, %p5518_p3 }
0x1b5a   : > { %5528 = shalt.err (!%p5525_p7)
}
0x1b5b   : > { %s6622_s22 = sld [smem:[#allocation40_spill]] }
0x1b61   : > { %5109 = dma.vmem_to_hbm [thread:$0]  (%p6494_p12), %s4286_s2, 32, %s6622_s22, [#allocation5]  }
0x1b62   : > { %5568 = dma.done.wait (%p6494_p12), [#allocation5], 32  }
0x1b63   : > { %5570 = vsyncadd (%p6494_p12), [#allocation5], 4294967264 }
0x1b64 PF: > { %s6623_s28 = sld [smem:[#allocation22_spill]] }
0x1b65   : > { %s6624_s5 = sld [smem:[#allocation21_spill]] }
0x1b66   : > { %s6625_s26 = sld [smem:[#allocation23_spill]] }
0x1b6a   : > { %s40_s27 = sadd.s32 1, %s6623_s28  }
0x1b6b   : > { %p37_p8 = scmp.ge.s32.totalorder %s40_s27, 4  }
0x1b6d   :  { %39 = sbr.rel (!%p37_p8) target bundleno = 25 (0x19), region = 225 }
0x1b72   :  { %4308 = vsyncpa [#allocation4], 1 }
0x1b73   :  { %4310 = vsyncpa [#allocation4 + $0x1], 1 }
0x1b74   :  { %4311 = vsyncpa [#allocation7], 1 }
0x1b75   :  { %4312 = vsyncpa [#allocation10], 1 }
0x1b76   :  { %4313 = vsyncpa [#allocation13], 1 }
0x1b77   :  { %4314 = vsyncpa [#allocation5], 1 }
0x1b78   :  { %4316 = vsyncpa [#allocation5 + $0x1], 1 }

</bundles_post_ra>
